<compile_context>
chip_gen: v7x
topology: tpu7x:2x2x1
jax: 0.10.0
libtpu: 0.0.40
codegen_flags: <defaults>
</compile_context>

<pallas_src>
import functools

import jax
import jax.numpy as jnp
from jax.experimental import pallas as pl
from jax.experimental.pallas import tpu as pltpu


def _round_up(x, m):
    return (x + m - 1) // m * m


# ----------------------------------------------------------------------------
# Kernel 1 (fused): stem conv (im2col matmul) + BN + swish -> head 1x1 conv
# (->1280) + BN + swish -> global average pool, accumulated in VMEM.
# ----------------------------------------------------------------------------
def _features_gap_kernel(x_ref, ws_ref, bs_ref, wh_ref, bh_ref, o_ref, acc_ref,
                         *, s_real, ts, need_mask):
    s_blk = pl.program_id(0)

    @pl.when(s_blk == 0)
    def _():
        acc_ref[...] = jnp.zeros_like(acc_ref)

    B, ts_, kp = x_ref.shape
    x2 = x_ref[...].reshape(B * ts_, kp)                      # bf16 patches
    # --- stem conv as matmul + folded-BN beta + swish
    h = jnp.dot(x2, ws_ref[...], preferred_element_type=jnp.float32)
    h = h + bs_ref[...]
    h = h * jax.nn.sigmoid(h)
    # --- head 1x1 conv + folded-BN beta + swish
    g = jnp.dot(h.astype(jnp.bfloat16), wh_ref[...],
                preferred_element_type=jnp.float32)
    g = g + bh_ref[...]
    g = g * jax.nn.sigmoid(g)
    g = g.reshape(B, ts_, -1)
    if need_mask:  # zero spatial padding rows before the pooled sum
        idx = s_blk * ts + jax.lax.broadcasted_iota(jnp.int32, (1, ts_, 1), 1)
        g = jnp.where(idx < s_real, g, 0.0)
    acc_ref[...] += jnp.sum(g, axis=1)                        # f32 GAP accumulation

    @pl.when(s_blk == pl.num_programs(0) - 1)
    def _():
        o_ref[...] = (acc_ref[...] * (1.0 / s_real)).astype(o_ref.dtype)


def features_gap(patches, w_stem, b_stem, w_head, b_head, *, s_real, ts):
    """patches: [B, Sp, Kp] bf16 -> pooled features [B, 1280] f32."""
    B, Sp, Kp = patches.shape
    C1 = w_stem.shape[1]          # 128 (padded stem out channels)
    N = w_head.shape[1]           # 1280
    kern = functools.partial(_features_gap_kernel, s_real=s_real, ts=ts,
                             need_mask=(Sp != s_real))
    return pl.pallas_call(
        kern,
        out_shape=jax.ShapeDtypeStruct((B, N), jnp.float32),
        grid_spec=pltpu.PrefetchScalarGridSpec(
            num_scalar_prefetch=0,
            grid=(Sp // ts,),                     # spatial reduction axis
            in_specs=[
                pl.BlockSpec((B, ts, Kp), lambda s: (0, s, 0)),
                pl.BlockSpec((Kp, C1), lambda s: (0, 0)),
                pl.BlockSpec((1, C1), lambda s: (0, 0)),
                pl.BlockSpec((C1, N), lambda s: (0, 0)),
                pl.BlockSpec((1, N), lambda s: (0, 0)),
            ],
            out_specs=pl.BlockSpec((B, N), lambda s: (0, 0)),
            scratch_shapes=[pltpu.VMEM((B, N), jnp.float32)],
        ),
        compiler_params=pltpu.CompilerParams(
            dimension_semantics=("arbitrary",),
            vmem_limit_bytes=64 * 1024 * 1024),
    )(patches, w_stem, b_stem, w_head, b_head)


# ----------------------------------------------------------------------------
# Kernel 2: fc1 (1280->512) + bias + LeakyReLU(0.2); N split in 256-wide
# parallel blocks (2 blocks -> both TensorCores on v7x).
# ----------------------------------------------------------------------------
def _fc1_kernel(x_ref, w_ref, b_ref, o_ref, *, slope):
    h = jnp.dot(x_ref[...], w_ref[...], preferred_element_type=jnp.float32)
    h = h + b_ref[...]
    o_ref[...] = jnp.where(h >= 0, h, slope * h).astype(o_ref.dtype)


def fc1_leaky(pooled, w, b, *, tn=256, slope=0.2):
    """pooled: [B, 1280] f32, w: [1280, 512] bf16, b: [1, 512] f32 -> [B, 512] f32."""
    B, K = pooled.shape
    N = w.shape[1]
    Bp = _round_up(B, 8)
    x = jnp.pad(pooled, ((0, Bp - B), (0, 0))).astype(jnp.bfloat16)
    h = pl.pallas_call(
        functools.partial(_fc1_kernel, slope=slope),
        out_shape=jax.ShapeDtypeStruct((Bp, N), jnp.float32),
        grid_spec=pltpu.PrefetchScalarGridSpec(
            num_scalar_prefetch=0,
            grid=(N // tn,),
            in_specs=[
                pl.BlockSpec((Bp, K), lambda j: (0, 0)),
                pl.BlockSpec((K, tn), lambda j: (0, j)),
                pl.BlockSpec((1, tn), lambda j: (0, j)),
            ],
            out_specs=pl.BlockSpec((Bp, tn), lambda j: (0, j)),
        ),
        compiler_params=pltpu.CompilerParams(
            dimension_semantics=("parallel",),
            vmem_limit_bytes=32 * 1024 * 1024),
    )(x, w, b)
    return h[:B]


# ----------------------------------------------------------------------------
# Glue: im2col (patch extraction is layout plumbing, matmul is the Pallas path).
# ----------------------------------------------------------------------------
def im2col(x_nhwc, k, stride, pad):
    B, H, W, C = x_nhwc.shape
    Ho = (H + 2 * pad - k) // stride + 1
    Wo = (W + 2 * pad - k) // stride + 1
    xp = jnp.pad(x_nhwc, ((0, 0), (pad, pad), (pad, pad), (0, 0)))
    cols = []
    for di in range(k):
        for dj in range(k):
            cols.append(xp[:, di:di + stride * Ho:stride,
                           dj:dj + stride * Wo:stride, :])
    patches = jnp.concatenate(cols, axis=-1)              # [B,Ho,Wo,k*k*C] (kh,kw,cin)
    return patches.reshape(B, Ho * Wo, k * k * C), Ho * Wo


# ----------------------------------------------------------------------------
# Parameters: pre-transposed, BN-folded, channel-padded, bf16 — done ONCE here.
# ----------------------------------------------------------------------------
def init_params(key):
    ks = jax.random.split(key, 4)
    eps = 1e-3                                   # EfficientNet-b0 BN eps
    bn_scale = 1.0 / jnp.sqrt(1.0 + eps)         # gamma=1, var=1 (eval, synthetic stats)

    # modified stem: Conv2d(9, 32, k=3, s=2, p=1, bias=False) [Cout,Cin,kh,kw]
    stem_w = 0.02 * jax.random.normal(ks[0], (32, 9, 3, 3), jnp.float32)
    w_stem = jnp.transpose(stem_w, (2, 3, 1, 0)).reshape(81, 32) * bn_scale
    w_stem = jnp.pad(w_stem, ((0, 128 - 81), (0, 128 - 32)))          # [128,128]
    b_stem = jnp.zeros((1, 128), jnp.float32)                          # BN beta (padded)

    # EfficientNet-b0 head 1x1 conv to 1280 features (+BN+swish).
    # TODO(synk): the 16 MBConv blocks of efficientnet-b0 are not ported; the
    # head conv consumes the 32-ch stem output instead of the 320-ch block-7 output.
    head_w = 0.02 * jax.random.normal(ks[1], (1280, 32, 1, 1), jnp.float32)
    w_head = jnp.transpose(head_w, (2, 3, 1, 0)).reshape(32, 1280) * bn_scale
    w_head = jnp.pad(w_head, ((0, 128 - 32), (0, 0)))                  # [128,1280]
    b_head = jnp.zeros((1, 1280), jnp.float32)

    # fc_real_fake: Linear(1280,512) -> LeakyReLU(0.2) -> Dropout(0.3) -> Linear(512,1)
    fc1_w = 0.02 * jax.random.normal(ks[2], (512, 1280), jnp.float32)
    fc2_w = 0.02 * jax.random.normal(ks[3], (1, 512), jnp.float32)

    return {
        "w_stem": w_stem.astype(jnp.bfloat16),
        "b_stem": b_stem,
        "w_head": w_head.astype(jnp.bfloat16),
        "b_head": b_head,
        "fc1_w": jnp.transpose(fc1_w).astype(jnp.bfloat16),   # [1280,512]
        "fc1_b": jnp.zeros((1, 512), jnp.float32),
        "fc2_w": jnp.transpose(fc2_w),                        # [512,1] f32
        "fc2_b": jnp.zeros((1,), jnp.float32),
    }


# ----------------------------------------------------------------------------
# Discriminator forward (eval mode; Dropout = identity).
# ----------------------------------------------------------------------------
@jax.jit
def discriminator_forward(params, father_img, mother_img, child_img):
    # Inputs in PyTorch NCHW: [B, 3, H, W] each.
    combined = jnp.concatenate([father_img, mother_img, child_img], axis=1)  # [B,9,H,W]
    x = jnp.transpose(combined, (0, 2, 3, 1))                                # NHWC

    # im2col for the stem conv (9->32, k3, s2, p1, no bias)
    patches, S = im2col(x, k=3, stride=2, pad=1)      # [B, S, 81]
    Kp = _round_up(patches.shape[-1], 128)
    ts = min(512, _round_up(S, 8))
    Sp = _round_up(S, ts)
    patches = jnp.pad(patches, ((0, 0), (0, Sp - S), (0, Kp - patches.shape[-1])))
    patches = patches.astype(jnp.bfloat16)

    # fused: stem conv+BN+swish -> head 1x1 conv+BN+swish -> global avg pool
    pooled = features_gap(patches, params["w_stem"], params["b_stem"],
                          params["w_head"], params["b_head"],
                          s_real=S, ts=ts)                                # [B,1280] f32

    # fc head: Linear + LeakyReLU(0.2) + Dropout(0.3)[eval: identity] + Linear
    h = fc1_leaky(pooled, params["fc1_w"], params["fc1_b"])               # [B,512] f32
    # fc2 (512->1) is ~1 KFLOP; keep it as a plain XLA dot instead of padding
    # N=1 to 128 lanes in a separate pallas_call.
    out = h @ params["fc2_w"] + params["fc2_b"]                           # [B,1]
    return out


if __name__ == "__main__":
    key = jax.random.PRNGKey(0)
    k_p, k_f, k_m, k_c = jax.random.split(key, 4)
    params = init_params(k_p)

    B, H, W = 2, 16, 16
    father = jax.random.normal(k_f, (B, 3, H, W), jnp.float32)
    mother = jax.random.normal(k_m, (B, 3, H, W), jnp.float32)
    child = jax.random.normal(k_c, (B, 3, H, W), jnp.float32)

    out = discriminator_forward(params, father, mother, child)
    out = jax.block_until_ready(out)
    assert out.shape == (B, 1), out.shape
    print("KERNEL_OK")
</pallas_src>

<mosaic_0001>
module attributes {stable_mosaic.version = 11 : i64} {
  func.func @_fc1_kernel(%arg0: i32, %arg1: memref<8x1280xbf16, #tpu.memory_space<vmem>>, %arg2: memref<1280x256xbf16, #tpu.memory_space<vmem>>, %arg3: memref<1x256xf32, #tpu.memory_space<vmem>>, %arg4: memref<8x256xf32, #tpu.memory_space<vmem>>) attributes {dimension_semantics = [#tpu.dimension_semantics<parallel>], iteration_bounds = array<i64: 2>, scalar_prefetch = 0 : i64, scratch_operands = 0 : i64, tpu.core_type = #tpu.core_type<tc>, window_params = [{pipeline_mode = #tpu.pipeline_mode<synchronous>, transform_indices = @transform_0, window_bounds = array<i64: 8, 1280>}, {transform_indices = @transform_1, window_bounds = array<i64: 1280, 256>}, {transform_indices = @transform_2, window_bounds = array<i64: 1, 256>}, {transform_indices = @transform_3, window_bounds = array<i64: 8, 256>}]} {
    %c0 = arith.constant 0 : index
    %c0_0 = arith.constant 0 : index
    %0 = vector.load %arg1[%c0, %c0_0] : memref<8x1280xbf16, #tpu.memory_space<vmem>>, vector<8x1280xbf16>
    %c0_1 = arith.constant 0 : index
    %c0_2 = arith.constant 0 : index
    %1 = vector.load %arg2[%c0_1, %c0_2] : memref<1280x256xbf16, #tpu.memory_space<vmem>>, vector<1280x256xbf16>
    %cst = arith.constant dense<0.000000e+00> : vector<8x256xf32>
    %2 = tpu.matmul %0, %1, %cst {dimension_numbers = #tpu.dot_dimension_numbers<[1], [0], [0], [1], [0, 0, 1, 1], [], []>} : vector<8x1280xbf16>, vector<1280x256xbf16>, vector<8x256xf32> -> vector<8x256xf32>
    %c0_3 = arith.constant 0 : index
    %c0_4 = arith.constant 0 : index
    %3 = vector.load %arg3[%c0_3, %c0_4] : memref<1x256xf32, #tpu.memory_space<vmem>>, vector<1x256xf32>
    %4 = vector.broadcast %3 : vector<1x256xf32> to vector<8x256xf32>
    %5 = arith.addf %2, %4 : vector<8x256xf32>
    %cst_5 = arith.constant 0.000000e+00 : f32
    %6 = vector.broadcast %cst_5 : f32 to vector<8x256xf32>
    %7 = arith.cmpf oge, %5, %6 : vector<8x256xf32>
    %cst_6 = arith.constant 2.000000e-01 : f32
    %8 = vector.broadcast %cst_6 : f32 to vector<8x256xf32>
    %9 = arith.mulf %8, %5 : vector<8x256xf32>
    %10 = arith.select %7, %5, %9 : vector<8x256xi1>, vector<8x256xf32>
    %c0_7 = arith.constant 0 : index
    %c0_8 = arith.constant 0 : index
    %11 = vector.load %arg4[%c0_7, %c0_8] : memref<8x256xf32, #tpu.memory_space<vmem>>, vector<8x256xf32>
    tpu.vector_store %arg4[%c0_7, %c0_8], %10 {strides = array<i32>} : memref<8x256xf32, #tpu.memory_space<vmem>>, vector<8x256xf32>,
    return
  }
  func.func @transform_0(%arg0: i32) -> (i32, i32) {
    %c0_i32 = arith.constant 0 : i32
    %c0_i32_0 = arith.constant 0 : i32
    %c0_i32_1 = arith.constant 0 : i32
    return %c0_i32, %c0_i32_0 : i32, i32
  }
  func.func @transform_1(%arg0: i32) -> (i32, i32) {
    %c0_i32 = arith.constant 0 : i32
    %c0_i32_0 = arith.constant 0 : i32
    return %c0_i32, %arg0 : i32, i32
  }
  func.func @transform_2(%arg0: i32) -> (i32, i32) {
    %c0_i32 = arith.constant 0 : i32
    %c0_i32_0 = arith.constant 0 : i32
    return %c0_i32, %arg0 : i32, i32
  }
  func.func @transform_3(%arg0: i32) -> (i32, i32) {
    %c0_i32 = arith.constant 0 : i32
    %c0_i32_0 = arith.constant 0 : i32
    return %c0_i32, %arg0 : i32, i32
  }
}

module attributes {stable_mosaic.version = 11 : i64} {
  func.func @_features_gap_kernel(%arg0: i32, %arg1: memref<2x64x128xbf16, #tpu.memory_space<vmem>>, %arg2: memref<128x128xbf16, #tpu.memory_space<vmem>>, %arg3: memref<1x128xf32, #tpu.memory_space<vmem>>, %arg4: memref<128x1280xbf16, #tpu.memory_space<vmem>>, %arg5: memref<1x1280xf32, #tpu.memory_space<vmem>>, %arg6: memref<2x1280xf32, #tpu.memory_space<vmem>>, %arg7: memref<2x1280xf32, #tpu.memory_space<vmem>>) attributes {dimension_semantics = [#tpu.dimension_semantics<arbitrary>], iteration_bounds = array<i64: 1>, scalar_prefetch = 0 : i64, scratch_operands = 1 : i64, tpu.core_type = #tpu.core_type<tc>, window_params = [{transform_indices = @transform_0, window_bounds = array<i64: 2, 64, 128>}, {pipeline_mode = #tpu.pipeline_mode<synchronous>, transform_indices = @transform_1, window_bounds = array<i64: 128, 128>}, {pipeline_mode = #tpu.pipeline_mode<synchronous>, transform_indices = @transform_2, window_bounds = array<i64: 1, 128>}, {pipeline_mode = #tpu.pipeline_mode<synchronous>, transform_indices = @transform_3, window_bounds = array<i64: 128, 1280>}, {pipeline_mode = #tpu.pipeline_mode<synchronous>, transform_indices = @transform_4, window_bounds = array<i64: 1, 1280>}, {pipeline_mode = #tpu.pipeline_mode<synchronous>, transform_indices = @transform_5, window_bounds = array<i64: 2, 1280>}]} {
    %c0_i32 = arith.constant 0 : i32
    %0 = arith.cmpi eq, %arg0, %c0_i32 : i32
    %1 = arith.extui %0 : i1 to i32
    %c0_i32_0 = arith.constant 0 : i32
    %2 = arith.cmpi ne, %1, %c0_i32_0 : i32
    scf.if %2 {
      %cst_21 = arith.constant 0.000000e+00 : f32
      %36 = vector.broadcast %cst_21 : f32 to vector<2x1280xf32>
      %c0_22 = arith.constant 0 : index
      %c0_23 = arith.constant 0 : index
      %37 = vector.load %arg7[%c0_22, %c0_23] : memref<2x1280xf32, #tpu.memory_space<vmem>>, vector<2x1280xf32>
      tpu.vector_store %arg7[%c0_22, %c0_23], %36 {strides = array<i32>} : memref<2x1280xf32, #tpu.memory_space<vmem>>, vector<2x1280xf32>,
    } else {
    }
    %c0 = arith.constant 0 : index
    %c0_1 = arith.constant 0 : index
    %c0_2 = arith.constant 0 : index
    %3 = vector.load %arg1[%c0, %c0_1, %c0_2] : memref<2x64x128xbf16, #tpu.memory_space<vmem>>, vector<2x64x128xbf16>
    %4 = vector.shape_cast %3 : vector<2x64x128xbf16> to vector<128x128xbf16>
    %c0_3 = arith.constant 0 : index
    %c0_4 = arith.constant 0 : index
    %5 = vector.load %arg2[%c0_3, %c0_4] : memref<128x128xbf16, #tpu.memory_space<vmem>>, vector<128x128xbf16>
    %cst = arith.constant dense<0.000000e+00> : vector<128x128xf32>
    %6 = tpu.matmul %4, %5, %cst {dimension_numbers = #tpu.dot_dimension_numbers<[1], [0], [0], [1], [0, 0, 1, 1], [], []>} : vector<128x128xbf16>, vector<128x128xbf16>, vector<128x128xf32> -> vector<128x128xf32>
    %c0_5 = arith.constant 0 : index
    %c0_6 = arith.constant 0 : index
    %7 = vector.load %arg3[%c0_5, %c0_6] : memref<1x128xf32, #tpu.memory_space<vmem>>, vector<1x128xf32>
    %8 = vector.broadcast %7 : vector<1x128xf32> to vector<128x128xf32>
    %9 = arith.addf %6, %8 : vector<128x128xf32>
    %10 = arith.negf %9 : vector<128x128xf32>
    %11 = math.exp %10 : vector<128x128xf32>
    %cst_7 = arith.constant 1.000000e+00 : f32
    %12 = vector.broadcast %cst_7 : f32 to vector<128x128xf32>
    %13 = arith.addf %12, %11 : vector<128x128xf32>
    %14 = arith.divf %12, %13 : vector<128x128xf32>
    %15 = arith.mulf %9, %14 : vector<128x128xf32>
    %16 = arith.truncf %15 : vector<128x128xf32> to vector<128x128xbf16>
    %c0_8 = arith.constant 0 : index
    %c0_9 = arith.constant 0 : index
    %17 = vector.load %arg4[%c0_8, %c0_9] : memref<128x1280xbf16, #tpu.memory_space<vmem>>, vector<128x1280xbf16>
    %cst_10 = arith.constant dense<0.000000e+00> : vector<128x1280xf32>
    %18 = tpu.matmul %16, %17, %cst_10 {dimension_numbers = #tpu.dot_dimension_numbers<[1], [0], [0], [1], [0, 0, 1, 1], [], []>} : vector<128x128xbf16>, vector<128x1280xbf16>, vector<128x1280xf32> -> vector<128x1280xf32>
    %c0_11 = arith.constant 0 : index
    %c0_12 = arith.constant 0 : index
    %19 = vector.load %arg5[%c0_11, %c0_12] : memref<1x1280xf32, #tpu.memory_space<vmem>>, vector<1x1280xf32>
    %20 = vector.broadcast %19 : vector<1x1280xf32> to vector<128x1280xf32>
    %21 = arith.addf %18, %20 : vector<128x1280xf32>
    %22 = arith.negf %21 : vector<128x1280xf32>
    %23 = math.exp %22 : vector<128x1280xf32>
    %cst_13 = arith.constant 1.000000e+00 : f32
    %24 = vector.broadcast %cst_13 : f32 to vector<128x1280xf32>
    %25 = arith.addf %24, %23 : vector<128x1280xf32>
    %26 = arith.divf %24, %25 : vector<128x1280xf32>
    %27 = arith.mulf %21, %26 : vector<128x1280xf32>
    %28 = vector.shape_cast %27 : vector<128x1280xf32> to vector<2x64x1280xf32>
    %c0_14 = arith.constant 0 : index
    %c0_15 = arith.constant 0 : index
    %29 = vector.load %arg7[%c0_14, %c0_15] : memref<2x1280xf32, #tpu.memory_space<vmem>>, vector<2x1280xf32>
    %cst_16 = arith.constant dense<0.000000e+00> : vector<2x1280xf32>
    %30 = vector.multi_reduction <add>, %28, %cst_16 [1] : vector<2x64x1280xf32> to vector<2x1280xf32>
    %31 = arith.addf %29, %30 : vector<2x1280xf32>
    %c0_17 = arith.constant 0 : index
    %c0_18 = arith.constant 0 : index
    %32 = vector.load %arg7[%c0_17, %c0_18] : memref<2x1280xf32, #tpu.memory_space<vmem>>, vector<2x1280xf32>
    tpu.vector_store %arg7[%c0_17, %c0_18], %31 {strides = array<i32>} : memref<2x1280xf32, #tpu.memory_space<vmem>>, vector<2x1280xf32>,
    %c0_i32_19 = arith.constant 0 : i32
    %33 = arith.cmpi eq, %arg0, %c0_i32_19 : i32
    %34 = arith.extui %33 : i1 to i32
    %c0_i32_20 = arith.constant 0 : i32
    %35 = arith.cmpi ne, %34, %c0_i32_20 : i32
    scf.if %35 {
      %c0_21 = arith.constant 0 : index
      %c0_22 = arith.constant 0 : index
      %36 = vector.load %arg7[%c0_21, %c0_22] : memref<2x1280xf32, #tpu.memory_space<vmem>>, vector<2x1280xf32>
      %cst_23 = arith.constant 1.562500e-02 : f32
      %37 = vector.broadcast %cst_23 : f32 to vector<2x1280xf32>
      %38 = arith.mulf %36, %37 : vector<2x1280xf32>
      %c0_24 = arith.constant 0 : index
      %c0_25 = arith.constant 0 : index
      %39 = vector.load %arg6[%c0_24, %c0_25] : memref<2x1280xf32, #tpu.memory_space<vmem>>, vector<2x1280xf32>
      tpu.vector_store %arg6[%c0_24, %c0_25], %38 {strides = array<i32>} : memref<2x1280xf32, #tpu.memory_space<vmem>>, vector<2x1280xf32>,
    } else {
    }
    return
  }
  func.func @transform_0(%arg0: i32) -> (i32, i32, i32) {
    %c0_i32 = arith.constant 0 : i32
    %c0_i32_0 = arith.constant 0 : i32
    %c0_i32_1 = arith.constant 0 : i32
    return %c0_i32, %arg0, %c0_i32_0 : i32, i32, i32
  }
  func.func @transform_1(%arg0: i32) -> (i32, i32) {
    %c0_i32 = arith.constant 0 : i32
    %c0_i32_0 = arith.constant 0 : i32
    %c0_i32_1 = arith.constant 0 : i32
    return %c0_i32, %c0_i32_0 : i32, i32
  }
  func.func @transform_2(%arg0: i32) -> (i32, i32) {
    %c0_i32 = arith.constant 0 : i32
    %c0_i32_0 = arith.constant 0 : i32
    %c0_i32_1 = arith.constant 0 : i32
    return %c0_i32, %c0_i32_0 : i32, i32
  }
  func.func @transform_3(%arg0: i32) -> (i32, i32) {
    %c0_i32 = arith.constant 0 : i32
    %c0_i32_0 = arith.constant 0 : i32
    %c0_i32_1 = arith.constant 0 : i32
    return %c0_i32, %c0_i32_0 : i32, i32
  }
  func.func @transform_4(%arg0: i32) -> (i32, i32) {
    %c0_i32 = arith.constant 0 : i32
    %c0_i32_0 = arith.constant 0 : i32
    %c0_i32_1 = arith.constant 0 : i32
    return %c0_i32, %c0_i32_0 : i32, i32
  }
  func.func @transform_5(%arg0: i32) -> (i32, i32) {
    %c0_i32 = arith.constant 0 : i32
    %c0_i32_0 = arith.constant 0 : i32
    %c0_i32_1 = arith.constant 0 : i32
    return %c0_i32, %c0_i32_0 : i32, i32
  }
}

</mosaic_0001>

<bundles_post_ra>
// kernel: discriminator_forward.3
= control target key start
LH: loop header
LB: loop body
LE: loop exit
PB: predicated region body
PF: predicated region fallthrough
CT: control target
= control target key end

     0   :  { %8 = vsyncpa [#allocation3], 0  ;;  %s2517_s0 = inlined_call_operand.vmem [shape: bf16[8,1280], index: 0, kind: input, shape index: {}]   ;;  %s2518_s1 = inlined_call_operand.hbm [shape: bf16[1280,512], index: 1, kind: input, shape index: {}]   ;;  %s2519_s2 = inlined_call_operand.hbm [shape: f32[1,512], index: 2, kind: input, shape index: {}]   ;;  %s2520_s3 = inlined_call_operand.vmem [shape: f32[8,512], index: 3, kind: output, shape index: {}]  }
   0x1   :  { %10 = vsyncpa [#allocation3 + $0x1], 0 }
   0x2   :  { %11 = vsyncpa [#allocation5], 0 }
   0x3   :  { %13 = vsyncpa [#allocation5 + $0x1], 0  ;;  %s2174_s12 = smov 0   ;;  %s2176_s13 = smov 0  }
   0x4   :  { %s2178_s14 = smov 0   ;;  %s2180_s15 = smov 0  }
   0x5 LB: > { %s1547_s16 = sadd.s32 4294967295, %s2147_s15   ;;  %s2194_s17 = sadd.s32 1, %s2147_s15   ;;  %s2147_s15 = sphi %s2180_s15, %s2530_s15   ;;  %s2143_s14 = sphi %s2178_s14, %s2529_s14   ;;  %s2139_s13 = sphi %s2176_s13, %s2528_s13   ;;  %s2135_s12 = sphi %s2174_s12, %s2527_s12  }
   0x6   : > { %s44_s18 = ssub.s32 %s2147_s15, %s2194_s17  ;;  %s47_s19 = sadd.s32 1, %s2143_s14 }
   0x7   : > { %p45_p0 = scmp.eq.s32.totalorder %s44_s18, 0  ;;  %p54_p1 = scmp.ne.s32.totalorder %s2143_s14, %s2139_s13 }
   0x8   : > { %p55_p2 = scmp.eq.s32.totalorder %s2147_s15, 0  ;;  %p60_p3 = scmp.ne.s32.totalorder %s2139_s13, %s2135_s12 }
   0x9   : > { %s2204_s20 = scalar_select %p45_p0, %s2143_s14, %s47_s19  }
   0xa   : > { %p56_p4 = por %p55_p2, %p54_p1  ;;  %p61_p5 = scmp.eq.s32.totalorder %s1547_s16, 0 }
   0xb   : > { %p1763_p6 = scmp.lt.s32.totalorder %s2147_s15, 2  ;;  %s2214_s22 = sand.u32 1, %s2143_s14  }
   0xc   : > { %p2209_p7 = por %p61_p5, %p60_p3  ;;  %s1750_s23 = smul.u32 1280, %s2214_s22 }
   0xd   : > { %s1732_s24 = sshll.u32 %s2147_s15, 7  ;;  %p2218_p8 = pnand %p1763_p6, %p56_p4 }
   0xe   : > { %s2522_s21 = scalar_select %p2209_p7, 1, 0 }
   0xf   : > { %s2225_s28 = scalar_lea.hbm %s2518_s1, %s1732_s24  ;;  %s143_s29 = scalar_lea.vmem [#allocation2], %s1750_s23 }
  0x10   : > { %s150_s30 = sshll.u32 %s143_s29, 4  ;;  %s140_s4 = scalar_lea.sflag [#allocation3], %s2214_s22  ;;  %s2227_s30 = int_to_ptr.vmem [resolvable:$true] %s150_s30 }
  0x11   : > { %s2049_s5 = scalar_lea.hbm %s2225_s28, 20480  ;;  %p2051_p10 = pneg %p2218_p8 }
  0x12   : > { %p2050_p9 = scmp.ne.s32.totalorder %s2225_s28, %s2049_s5  ;;  %s2054_s8 = scalar_lea.hbm %s2518_s1, 40960 }
  0x13   : > { %p2055_p13 = scmp.lt.u32.totalorder %s2225_s28, %s2518_s1  ;;  %p2056_p0 = scmp.lt.u32.totalorder %s2054_s8, %s2049_s5 }
  0x14   : > { %p2052_p11 = pnand %p2051_p10, %p2050_p9  ;;  %p2058_p2 = scmp.lt.u32.totalorder %s2049_s5, %s2225_s28 }
  0x15   : > { %p2057_p1 = por %p2056_p0, %p2055_p13 }
  0x16   : > { %p2053_p12 = pneg %p2052_p11 }
  0x17   : > { %p2059_p3 = por %p2058_p2, %p2057_p1 }
  0x19   : > { %p2060_p4 = pnand %p2059_p3, %p2053_p12 }
  0x1b   : > { %2063 = shalt.err (!%p2060_p4)
}
  0x1c   : > { %s2064_s11 = scalar_lea.vmem %s2227_s30, 20480  ;;  %s2149_s12 = smov [#allocation2]  }
  0x1d   : > { %p2065_p5 = scmp.ne.s32.totalorder %s2227_s30, %s2064_s11  ;;  %s2069_s18 = sshll.u32 %s2149_s12, 4  ;;  %s2070_s18 = int_to_ptr.vmem [resolvable:$false] %s2069_s18 }
  0x1e   : > { %s2071_s19 = scalar_lea.vmem %s2070_s18, 40960  ;;  %p2072_p11 = scmp.lt.s32.totalorder %s2227_s30, %s2070_s18 }
  0x1f   : > { %p2067_p6 = pnand %p2065_p5, %p2051_p10  ;;  %p2073_p13 = scmp.lt.s32.totalorder %s2071_s19, %s2064_s11 }
  0x21   : > { %p2068_p9 = pneg %p2067_p6  ;;  %p2074_p0 = por %p2073_p13, %p2072_p11 }
  0x23   : > { %p2075_p1 = pnand %p2074_p0, %p2068_p9 }
  0x25   : > { %2078 = shalt.err (!%p2075_p1)
}
  0x26   : > { %s2150_s23 = smov 256   ;;  %s2151_s24 = smov 128  }
  0x27   : > { %s2152_s26 = smov 8   ;;  %p1556_p12 = scmp.ge.s32.totalorder %s2147_s15, 1 }
  0x28   : > { %1759 = dma.hbm_to_vmem [thread:$0]  (!%p2218_p8), %s2225_s28, 20480, %s2227_s30, %s140_s4, %s2150_s23, %s2151_s24, %s2152_s26  }
  0x29   : > { %p177_p2 = scmp.lt.s32.totalorder %s2147_s15, 3  ;;  %s1553_s27 = sshll.u32 %s2214_s22, 1 }
  0x2a   : > { %s1733_s5 = sshll.u32 %s2147_s15, 5  ;;  %s164_s6 = scalar_lea.vmem [#allocation4], %s1553_s27 }
  0x2b   : > { %p2260_p3 = pnand %p1556_p12, %p177_p2  ;;  %s172_s7 = sshll.u32 %s164_s6, 4  ;;  %s173_s7 = int_to_ptr.vmem [resolvable:$true] %s172_s7 }
  0x2c   : > { %s2268_s10 = scalar_lea.hbm %s2519_s2, %s1733_s5  ;;  %s161_s28 = scalar_lea.sflag [#allocation5], %s2214_s22 }
  0x2d   : > { %s2524_s29 = scalar_select %p2260_p3, 1, 0 }
  0x2e   : > { %s2079_s30 = scalar_lea.hbm %s2268_s10, 32  ;;  %s2084_s12 = scalar_lea.hbm %s2519_s2, 64 }
  0x2f   : > { %p2080_p4 = scmp.ne.s32.totalorder %s2268_s10, %s2079_s30  ;;  %p2085_p9 = scmp.lt.u32.totalorder %s2268_s10, %s2519_s2 }
  0x30   : > { %p2086_p11 = scmp.lt.u32.totalorder %s2084_s12, %s2079_s30  ;;  %p2088_p0 = scmp.lt.u32.totalorder %s2079_s30, %s2268_s10 }
  0x31   : > { %p2082_p5 = pnand %p2080_p4, %p2051_p10 }
  0x32   : > { %p2087_p13 = por %p2086_p11, %p2085_p9 }
  0x33   : > { %p2083_p6 = pneg %p2082_p5 }
  0x34   : > { %p2089_p1 = por %p2088_p0, %p2087_p13 }
  0x36   : > { %p2090_p12 = pnand %p2089_p1, %p2083_p6 }
  0x38   : > { %2093 = shalt.err (!%p2090_p12)
}
  0x39   : > { %s2094_s22 = scalar_lea.vmem %s173_s7, 32  ;;  %s2153_s23 = smov [#allocation4]  }
  0x3a   : > { %p2095_p2 = scmp.ne.s32.totalorder %s173_s7, %s2094_s22  ;;  %s2099_s24 = sshll.u32 %s2153_s23, 4  ;;  %s2100_s24 = int_to_ptr.vmem [resolvable:$false] %s2099_s24 }
  0x3b   : > { %s2101_s26 = scalar_lea.vmem %s2100_s24, 64  ;;  %p2102_p7 = scmp.lt.s32.totalorder %s173_s7, %s2100_s24 }
  0x3c   : > { %p2097_p4 = pnand %p2095_p2, %p2051_p10  ;;  %p2103_p3 = scmp.lt.s32.totalorder %s2101_s26, %s2094_s22 }
  0x3e   : > { %p2098_p5 = pneg %p2097_p4  ;;  %p2104_p9 = por %p2103_p3, %p2102_p7 }
  0x40   : > { %p2105_p11 = pnand %p2104_p9, %p2098_p5 }
  0x42   : > { %2108 = shalt.err (!%p2105_p11)
}
  0x43   : > { %1762 = dma.hbm_to_vmem [thread:$0]  (!%p2218_p8), %s2268_s10, 32, %s173_s7, %s161_s28  }
  0x44   : > { %p2525_p6 = scmp.ne.s32.totalorder %s2524_s29, 0 }
  0x45   : > { %s183_s27 = sand.u32 (!%p2525_p6), 1, %s2139_s13   ;;  %p2526_p10 = scmp.ne.s32.totalorder (!%p2525_p6), %s2522_s21, 0 }
  0x46   : > { %181 = sbr.rel (%p2525_p6) target bundleno = 494 (0x1ee), region = 32  ;;  %s184_s6 = scalar_lea.sflag (!%p2525_p6), [#allocation3], %s183_s27 }
  0x47   : > { %s1751_s5 = smul.u32 (!%p2525_p6), 1280, %s183_s27 }
  0x49   : > { %s2293_s8 = scalar_lea.vmem (!%p2525_p6), [#allocation2], %s1751_s5 }
  0x4d   : > { %2126 = dma.done.wait (%p2526_p10), %s184_s6, 20480  }
  0x4e   : > { %2128 = vsyncadd (%p2526_p10), %s184_s6, 4294946816  ;;  %s1557_s9 = sshll.u32 %s183_s27, 1  ;;  %s193_s25 = scalar_lea.sflag [#allocation5], %s183_s27 }
  0x4f   : > { %s2299_s30 = scalar_lea.vmem [#allocation4], %s1557_s9 }
  0x50   : > { %2130 = dma.done.wait (%p2526_p10), %s193_s25, 32  }
  0x51   : > { %2132 = vsyncadd (%p2526_p10), %s193_s25, 4294967264  ;;  %v1799_v0 = vld [vmem:[%s2293_s8 + $0x4] ss:$8 sps:$4 sm:$0xff]   ;;  %v1803_v2 = vld [vmem:[%s2293_s8] ss:$8 sps:$4 sm:$0xff]   ;;  %s1558_s22 = sshll.u32 %s1547_s16, 1 }
  0x52   : > { %v1801_v1 = vld [vmem:[%s2293_s8 + $0x204] ss:$8 sps:$4 sm:$0xff]   ;;  %1244 = vmatprep.subr.bf16.mxu1 %v1799_v0  ;;  %v1804_v3 = vld [vmem:[%s2293_s8 + $0x200] ss:$8 sps:$4 sm:$0xff]   ;;  %v1805_v4 = vld [vmem:[%s2293_s8 + $0x14] ss:$8 sps:$4 sm:$0xff]  }
  0x53   : > { %1326 = vmatprep.subr.bf16.mxu0 %v1801_v1  ;;  %1245 = vmatpush1.bf16.msra.mxu1 %v1803_v2  ;;  %v1807_v5 = vld [vmem:[%s2293_s8 + $0x214] ss:$8 sps:$4 sm:$0xff]   ;;  %v1809_v6 = vld [vmem:[%s2293_s8 + $0x10] ss:$8 sps:$4 sm:$0xff]   ;;  %v1811_v8 = vld [vmem:[%s2293_s8 + $0x24] ss:$8 sps:$4 sm:$0xff]  }
  0x54   : > { %1327 = vmatpush1.bf16.msra.mxu0 %v1804_v3  ;;  %1246 = vmatprep.subr.bf16.mxu1 %v1805_v4  ;;  %v1810_v7 = vld [vmem:[%s2293_s8 + $0x210] ss:$8 sps:$4 sm:$0xff]   ;;  %v1813_v9 = vld [vmem:[%s2293_s8 + $0x224] ss:$8 sps:$4 sm:$0xff]   ;;  %v1815_v10 = vld [vmem:[%s2293_s8 + $0x20] ss:$8 sps:$4 sm:$0xff]  }
  0x55   : > { %1328 = vmatprep.subr.bf16.mxu0 %v1807_v5  ;;  %v1816_v11 = vld [vmem:[%s2293_s8 + $0x220] ss:$8 sps:$4 sm:$0xff]   ;;  %v1817_v12 = vld [vmem:[%s2293_s8 + $0x34] ss:$8 sps:$4 sm:$0xff]   ;;  %v1821_v14 = vld [vmem:[%s2293_s8 + $0x30] ss:$8 sps:$4 sm:$0xff]  }
  0x56   : > { %v1819_v13 = vld [vmem:[%s2293_s8 + $0x234] ss:$8 sps:$4 sm:$0xff]   ;;  %v1822_v15 = vld [vmem:[%s2293_s8 + $0x230] ss:$8 sps:$4 sm:$0xff]   ;;  %v1823_v16 = vld [vmem:[%s2293_s8 + $0x44] ss:$8 sps:$4 sm:$0xff]  }
  0x57   : > { %1247 = vmatpush1.bf16.msra.mxu1 %v1809_v6  ;;  %v1825_v17 = vld [vmem:[%s2293_s8 + $0x244] ss:$8 sps:$4 sm:$0xff]   ;;  %v1827_v18 = vld [vmem:[%s2293_s8 + $0x40] ss:$8 sps:$4 sm:$0xff]   ;;  %v1829_v20 = vld [vmem:[%s2293_s8 + $0x54] ss:$8 sps:$4 sm:$0xff]  }
  0x58   : > { %1329 = vmatpush1.bf16.msra.mxu0 %v1810_v7  ;;  %1248 = vmatprep.subr.bf16.mxu1 %v1811_v8  ;;  %v1828_v19 = vld [vmem:[%s2293_s8 + $0x240] ss:$8 sps:$4 sm:$0xff]   ;;  %v1831_v21 = vld [vmem:[%s2293_s8 + $0x254] ss:$8 sps:$4 sm:$0xff]   ;;  %v1833_v22 = vld [vmem:[%s2293_s8 + $0x50] ss:$8 sps:$4 sm:$0xff]  }
  0x59   : > { %1330 = vmatprep.subr.bf16.mxu0 %v1813_v9  ;;  %v1834_v23 = vld [vmem:[%s2293_s8 + $0x250] ss:$8 sps:$4 sm:$0xff]   ;;  %v1835_v24 = vld [vmem:[%s2293_s8 + $0x64] ss:$8 sps:$4 sm:$0xff]   ;;  %v1839_v26 = vld [vmem:[%s2293_s8 + $0x60] ss:$8 sps:$4 sm:$0xff]  }
  0x5a   : > { %v1837_v25 = vld [vmem:[%s2293_s8 + $0x264] ss:$8 sps:$4 sm:$0xff]   ;;  %v1840_v27 = vld [vmem:[%s2293_s8 + $0x260] ss:$8 sps:$4 sm:$0xff]   ;;  %v1841_v28 = vld [vmem:[%s2293_s8 + $0x74] ss:$8 sps:$4 sm:$0xff]  }
  0x5b   : > { %1249 = vmatpush1.bf16.msra.mxu1 %v1815_v10  ;;  %v1843_v29 = vld [vmem:[%s2293_s8 + $0x274] ss:$8 sps:$4 sm:$0xff]   ;;  %v1845_v30 = vld [vmem:[%s2293_s8 + $0x70] ss:$8 sps:$4 sm:$0xff]   ;;  %v1847_v32 = vld [vmem:[%s2293_s8 + $0x84] ss:$8 sps:$4 sm:$0xff]  }
  0x5c   : > { %1331 = vmatpush1.bf16.msra.mxu0 %v1816_v11  ;;  %1250 = vmatprep.subr.bf16.mxu1 %v1817_v12  ;;  %v1846_v31 = vld [vmem:[%s2293_s8 + $0x270] ss:$8 sps:$4 sm:$0xff]   ;;  %v1849_v33 = vld [vmem:[%s2293_s8 + $0x284] ss:$8 sps:$4 sm:$0xff]   ;;  %v1851_v34 = vld [vmem:[%s2293_s8 + $0x80] ss:$8 sps:$4 sm:$0xff]  }
  0x5d   : > { %1332 = vmatprep.subr.bf16.mxu0 %v1819_v13  ;;  %v1852_v35 = vld [vmem:[%s2293_s8 + $0x280] ss:$8 sps:$4 sm:$0xff]   ;;  %v1853_v36 = vld [vmem:[%s2293_s8 + $0x94] ss:$8 sps:$4 sm:$0xff]   ;;  %v1857_v38 = vld [vmem:[%s2293_s8 + $0x90] ss:$8 sps:$4 sm:$0xff]  }
  0x5e   : > { %v1855_v37 = vld [vmem:[%s2293_s8 + $0x294] ss:$8 sps:$4 sm:$0xff]   ;;  %v1858_v39 = vld [vmem:[%s2293_s8 + $0x290] ss:$8 sps:$4 sm:$0xff]   ;;  %v1859_v40 = vld [vmem:[%s2293_s8 + $0xa4] ss:$8 sps:$4 sm:$0xff]  }
  0x5f   : > { %1251 = vmatpush1.bf16.msra.mxu1 %v1821_v14  ;;  %v1861_v41 = vld [vmem:[%s2293_s8 + $0x2a4] ss:$8 sps:$4 sm:$0xff]   ;;  %v1863_v42 = vld [vmem:[%s2293_s8 + $0xa0] ss:$8 sps:$4 sm:$0xff]   ;;  %v1865_v44 = vld [vmem:[%s2293_s8 + $0xb4] ss:$8 sps:$4 sm:$0xff]  }
  0x60   : > { %1333 = vmatpush1.bf16.msra.mxu0 %v1822_v15  ;;  %1252 = vmatprep.subr.bf16.mxu1 %v1823_v16  ;;  %v1864_v43 = vld [vmem:[%s2293_s8 + $0x2a0] ss:$8 sps:$4 sm:$0xff]   ;;  %v1867_v45 = vld [vmem:[%s2293_s8 + $0x2b4] ss:$8 sps:$4 sm:$0xff]   ;;  %v1869_v47 = vld [vmem:[%s2293_s8 + $0xb0] ss:$8 sps:$4 sm:$0xff]  }
  0x61   : > { %1334 = vmatprep.subr.bf16.mxu0 %v1825_v17  ;;  %v232_v46 = vld [vmem:[%s2517_s0] sm:$0xff]  ;;  %v1870_v49 = vld [vmem:[%s2293_s8 + $0x2b0] ss:$8 sps:$4 sm:$0xff]   ;;  %v1877_v56 = vld [vmem:[%s2293_s8 + $0xd4] ss:$8 sps:$4 sm:$0xff]   ;;  %p227_p7 = scmp.lt.s32.totalorder %s1558_s22, 3 }
  0x62   : > { %v1561_v48 = vcombine.high %v232_v46, %v232_v46  ;;  %v234_v50 = vld [vmem:[%s2517_s0 + $0x10] sm:$0xff]  ;;  %v1871_v51 = vld [vmem:[%s2293_s8 + $0xc4] ss:$8 sps:$4 sm:$0xff]   ;;  %v1875_v54 = vld [vmem:[%s2293_s8 + $0xc0] ss:$8 sps:$4 sm:$0xff]   ;;  %v1560_v6 = vcombine.low %v232_v46, %v232_v46 }
  0x63   : > { %1253 = vmatpush1.bf16.msra.mxu1 %v1827_v18  ;;  %v1873_v52 = vld [vmem:[%s2293_s8 + $0x2c4] ss:$8 sps:$4 sm:$0xff]   ;;  %v1565_v53 = vcombine.high %v234_v50, %v234_v50  ;;  %v1876_v55 = vld [vmem:[%s2293_s8 + $0x2c0] ss:$8 sps:$4 sm:$0xff]   ;;  %v1879_v57 = vld [vmem:[%s2293_s8 + $0x2d4] ss:$8 sps:$4 sm:$0xff]   ;;  %v1564_v7 = vcombine.low %v234_v50, %v234_v50 }
  0x64   : > { %1335 = vmatpush1.bf16.msra.mxu0 %v1828_v19  ;;  %1254 = vmatprep.subr.bf16.mxu1 %v1829_v20  ;;  %v1881_v58 = vld [vmem:[%s2293_s8 + $0xd0] ss:$8 sps:$4 sm:$0xff]   ;;  %v1883_v60 = vld [vmem:[%s2293_s8 + $0xe4] ss:$8 sps:$4 sm:$0xff]   ;;  %v1887_v62 = vld [vmem:[%s2293_s8 + $0xe0] ss:$8 sps:$4 sm:$0xff]  }
  0x65   : > { %1336 = vmatprep.subr.bf16.mxu0 %v1831_v21  ;;  %1276 = vmatprep.mubr.bf16.mxu1 %v1561_v48  ;;  %v1882_v59 = vld [vmem:[%s2293_s8 + $0x2d0] ss:$8 sps:$4 sm:$0xff]   ;;  %v1885_v61 = vld [vmem:[%s2293_s8 + $0x2e4] ss:$8 sps:$4 sm:$0xff]   ;;  %v1888_v63 = vld [vmem:[%s2293_s8 + $0x2e0] ss:$8 sps:$4 sm:$0xff]  }
  0x66   : > { %1358 = vmatprep.mubr.bf16.mxu0 %v1565_v53  ;;  %v1889_v0 = vld [vmem:[%s2293_s8 + $0xf4] ss:$8 sps:$4 sm:$0xff]   ;;  %v1893_v2 = vld [vmem:[%s2293_s8 + $0xf0] ss:$8 sps:$4 sm:$0xff]   ;;  %v1899_v4 = vld [vmem:[%s2293_s8 + $0x104] ss:$8 sps:$4 sm:$0xff]  }
  0x67   : > { %1255 = vmatpush1.bf16.msra.mxu1 %v1833_v22  ;;  %v1891_v1 = vld [vmem:[%s2293_s8 + $0x2f4] ss:$8 sps:$4 sm:$0xff]   ;;  %v1894_v3 = vld [vmem:[%s2293_s8 + $0x2f0] ss:$8 sps:$4 sm:$0xff]   ;;  %v1904_v5 = vld [vmem:[%s2293_s8 + $0x304] ss:$8 sps:$4 sm:$0xff]  }
  0x68   : > { %1337 = vmatpush1.bf16.msra.mxu0 %v1834_v23  ;;  %1256 = vmatprep.subr.bf16.mxu1 %v1835_v24  ;;  %v1897_v8 = vld [vmem:[%s2293_s8 + $0x100] ss:$8 sps:$4 sm:$0xff]   ;;  %v1907_v10 = vld [vmem:[%s2293_s8 + $0x114] ss:$8 sps:$4 sm:$0xff]   ;;  %v1905_v12 = vld [vmem:[%s2293_s8 + $0x110] ss:$8 sps:$4 sm:$0xff]  }
  0x69   : > { %1338 = vmatprep.subr.bf16.mxu0 %v1837_v25  ;;  %v1902_v9 = vld [vmem:[%s2293_s8 + $0x300] ss:$8 sps:$4 sm:$0xff]   ;;  %v1910_v11 = vld [vmem:[%s2293_s8 + $0x314] ss:$8 sps:$4 sm:$0xff]   ;;  %v1908_v13 = vld [vmem:[%s2293_s8 + $0x310] ss:$8 sps:$4 sm:$0xff]  }
  0x6a   : > { %v1913_v14 = vld [vmem:[%s2293_s8 + $0x124] ss:$8 sps:$4 sm:$0xff]   ;;  %v1911_v16 = vld [vmem:[%s2293_s8 + $0x120] ss:$8 sps:$4 sm:$0xff]   ;;  %v1919_v18 = vld [vmem:[%s2293_s8 + $0x134] ss:$8 sps:$4 sm:$0xff]  }
  0x6b   : > { %1257 = vmatpush1.bf16.msra.mxu1 %v1839_v26  ;;  %v1916_v15 = vld [vmem:[%s2293_s8 + $0x324] ss:$8 sps:$4 sm:$0xff]   ;;  %v1914_v17 = vld [vmem:[%s2293_s8 + $0x320] ss:$8 sps:$4 sm:$0xff]   ;;  %v1922_v19 = vld [vmem:[%s2293_s8 + $0x334] ss:$8 sps:$4 sm:$0xff]  }
  0x6c   : > { %1339 = vmatpush1.bf16.msra.mxu0 %v1840_v27  ;;  %1258 = vmatprep.subr.bf16.mxu1 %v1841_v28  ;;  %v1917_v20 = vld [vmem:[%s2293_s8 + $0x130] ss:$8 sps:$4 sm:$0xff]   ;;  %v1925_v22 = vld [vmem:[%s2293_s8 + $0x144] ss:$8 sps:$4 sm:$0xff]   ;;  %v1923_v24 = vld [vmem:[%s2293_s8 + $0x140] ss:$8 sps:$4 sm:$0xff]  }
  0x6d   : > { %1340 = vmatprep.subr.bf16.mxu0 %v1843_v29  ;;  %v1920_v21 = vld [vmem:[%s2293_s8 + $0x330] ss:$8 sps:$4 sm:$0xff]   ;;  %v1928_v23 = vld [vmem:[%s2293_s8 + $0x344] ss:$8 sps:$4 sm:$0xff]   ;;  %v1926_v25 = vld [vmem:[%s2293_s8 + $0x340] ss:$8 sps:$4 sm:$0xff]  }
  0x6e   : > { %v1931_v26 = vld [vmem:[%s2293_s8 + $0x154] ss:$8 sps:$4 sm:$0xff]   ;;  %v1929_v28 = vld [vmem:[%s2293_s8 + $0x150] ss:$8 sps:$4 sm:$0xff]   ;;  %v1961_v50 = vld [vmem:[%s2293_s8 + $0x1a4] ss:$8 sps:$4 sm:$0xff]  }
  0x6f   : > { %1259 = vmatpush1.bf16.msra.mxu1 %v1845_v30  ;;  %v1934_v27 = vld [vmem:[%s2293_s8 + $0x354] ss:$8 sps:$4 sm:$0xff]   ;;  %v1932_v29 = vld [vmem:[%s2293_s8 + $0x350] ss:$8 sps:$4 sm:$0xff]   ;;  %v1937_v30 = vld [vmem:[%s2293_s8 + $0x164] ss:$8 sps:$4 sm:$0xff]  }
  0x70   : > { %1341 = vmatpush1.bf16.msra.mxu0 %v1846_v31  ;;  %1260 = vmatprep.subr.bf16.mxu1 %v1847_v32  ;;  %v1940_v31 = vld [vmem:[%s2293_s8 + $0x364] ss:$8 sps:$4 sm:$0xff]   ;;  %v1955_v46 = vld [vmem:[%s2293_s8 + $0x194] ss:$8 sps:$4 sm:$0xff]   ;;  %v1953_v48 = vld [vmem:[%s2293_s8 + $0x190] ss:$8 sps:$4 sm:$0xff]  }
  0x71   : > { %1342 = vmatprep.subr.bf16.mxu0 %v1849_v33  ;;  %v2404_v32 = vld [vmem:[%s2517_s0 + $0x8] sm:$0xff]  ;;  %v2409_v33 = vld [vmem:[%s2517_s0 + $0x18] sm:$0xff]  ;;  %s2532_s22 = smov (!%p227_p7, %s1558_s22), 3 }
  0x72   : > { %v1962_v53 = vld [vmem:[%s2293_s8 + $0x3a0] ss:$8 sps:$4 sm:$0xff]   ;;  %s1559_s23 = sshll.u32 %s2532_s22, 3 }
  0x73   : > { %1261 = vmatpush1.bf16.msra.mxu1 %v1851_v34  ;;  %v1935_v34 = vld [vmem:[%s2293_s8 + $0x160] ss:$8 sps:$4 sm:$0xff]   ;;  %s230_s15 = scalar_lea.vmem %s2520_s3, %s1559_s23 }
  0x74   : > { %1343 = vmatpush1.bf16.msra.mxu0 %v1852_v35  ;;  %1262 = vmatprep.subr.bf16.mxu1 %v1853_v36  ;;  %v1938_v35 = vld [vmem:[%s2293_s8 + $0x360] ss:$8 sps:$4 sm:$0xff]   ;;  %v1563_v36 = vcombine.high %v2404_v32, %v2404_v32 }
  0x75   : > { %1344 = vmatprep.subr.bf16.mxu0 %v1855_v37  ;;  %v1567_v37 = vcombine.high %v2409_v33, %v2409_v33 }
  0x77   : > { %1263 = vmatpush1.bf16.msra.mxu1 %v1857_v38  ;;  %v1943_v38 = vld [vmem:[%s2293_s8 + $0x174] ss:$8 sps:$4 sm:$0xff]  }
  0x78   : > { %1345 = vmatpush1.bf16.msra.mxu0 %v1858_v39  ;;  %1264 = vmatprep.subr.bf16.mxu1 %v1859_v40  ;;  %v1946_v39 = vld [vmem:[%s2293_s8 + $0x374] ss:$8 sps:$4 sm:$0xff]   ;;  %v1941_v40 = vld [vmem:[%s2293_s8 + $0x170] ss:$8 sps:$4 sm:$0xff]  }
  0x79   : > { %1346 = vmatprep.subr.bf16.mxu0 %v1861_v41  ;;  %v1944_v41 = vld [vmem:[%s2293_s8 + $0x370] ss:$8 sps:$4 sm:$0xff]  }
  0x7b   : > { %1265 = vmatpush1.bf16.msra.mxu1 %v1863_v42  ;;  %v1949_v42 = vld [vmem:[%s2293_s8 + $0x184] ss:$8 sps:$4 sm:$0xff]  }
  0x7c   : > { %1347 = vmatpush1.bf16.msra.mxu0 %v1864_v43  ;;  %1266 = vmatprep.subr.bf16.mxu1 %v1865_v44  ;;  %v1952_v43 = vld [vmem:[%s2293_s8 + $0x384] ss:$8 sps:$4 sm:$0xff]   ;;  %v1947_v44 = vld [vmem:[%s2293_s8 + $0x180] ss:$8 sps:$4 sm:$0xff]  }
  0x7d   : > { %1348 = vmatprep.subr.bf16.mxu0 %v1867_v45  ;;  %v1950_v45 = vld [vmem:[%s2293_s8 + $0x380] ss:$8 sps:$4 sm:$0xff]  }
  0x7f   : > { %1267 = vmatpush1.bf16.msra.mxu1 %v1869_v47  ;;  %v1958_v47 = vld [vmem:[%s2293_s8 + $0x394] ss:$8 sps:$4 sm:$0xff]  }
  0x80   : > { %1349 = vmatpush1.bf16.msra.mxu0 %v1870_v49  ;;  %1268 = vmatprep.subr.bf16.mxu1 %v1871_v51  ;;  %v1956_v49 = vld [vmem:[%s2293_s8 + $0x390] ss:$8 sps:$4 sm:$0xff]   ;;  %v1964_v51 = vld [vmem:[%s2293_s8 + $0x3a4] ss:$8 sps:$4 sm:$0xff]  }
  0x81   : > { %1350 = vmatprep.subr.bf16.mxu0 %v1873_v52  ;;  %v1959_v52 = vld [vmem:[%s2293_s8 + $0x1a0] ss:$8 sps:$4 sm:$0xff]  }
  0x83   : > { %1269 = vmatpush1.bf16.msra.mxu1 %v1875_v54  ;;  %v1967_v54 = vld [vmem:[%s2293_s8 + $0x1b4] ss:$8 sps:$4 sm:$0xff]  }
  0x84   : > { %1351 = vmatpush1.bf16.msra.mxu0 %v1876_v55  ;;  %1270 = vmatprep.subr.bf16.mxu1 %v1877_v56  ;;  %v1970_v55 = vld [vmem:[%s2293_s8 + $0x3b4] ss:$8 sps:$4 sm:$0xff]   ;;  %v1965_v56 = vld [vmem:[%s2293_s8 + $0x1b0] ss:$8 sps:$4 sm:$0xff]  }
  0x85   : > { %1352 = vmatprep.subr.bf16.mxu0 %v1879_v57  ;;  %v1968_v57 = vld [vmem:[%s2293_s8 + $0x3b0] ss:$8 sps:$4 sm:$0xff]  }
  0x87   : > { %1271 = vmatpush1.bf16.msra.mxu1 %v1881_v58  ;;  %v1973_v58 = vld [vmem:[%s2293_s8 + $0x1c4] ss:$8 sps:$4 sm:$0xff]  }
  0x88   : > { %1353 = vmatpush1.bf16.msra.mxu0 %v1882_v59  ;;  %1272 = vmatprep.subr.bf16.mxu1 %v1883_v60  ;;  %v1976_v59 = vld [vmem:[%s2293_s8 + $0x3c4] ss:$8 sps:$4 sm:$0xff]   ;;  %v1971_v60 = vld [vmem:[%s2293_s8 + $0x1c0] ss:$8 sps:$4 sm:$0xff]  }
  0x89   : > { %1354 = vmatprep.subr.bf16.mxu0 %v1885_v61  ;;  %v1974_v61 = vld [vmem:[%s2293_s8 + $0x3c0] ss:$8 sps:$4 sm:$0xff]  }
  0x8b   : > { %1273 = vmatpush1.bf16.msra.mxu1 %v1887_v62  ;;  %v1979_v62 = vld [vmem:[%s2293_s8 + $0x1d4] ss:$8 sps:$4 sm:$0xff]  }
  0x8c   : > { %1355 = vmatpush1.bf16.msra.mxu0 %v1888_v63  ;;  %1274 = vmatprep.subr.bf16.mxu1 %v1889_v0  ;;  %v1982_v63 = vld [vmem:[%s2293_s8 + $0x3d4] ss:$8 sps:$4 sm:$0xff]   ;;  %v1977_v0 = vld [vmem:[%s2293_s8 + $0x1d0] ss:$8 sps:$4 sm:$0xff]  }
  0x8d   : > { %1356 = vmatprep.subr.bf16.mxu0 %v1891_v1  ;;  %v1980_v1 = vld [vmem:[%s2293_s8 + $0x3d0] ss:$8 sps:$4 sm:$0xff]  }
  0x8f   : > { %1275 = vmatpush1.bf16.msra.mxu1 %v1893_v2  ;;  %v1985_v2 = vld [vmem:[%s2293_s8 + $0x1e4] ss:$8 sps:$4 sm:$0xff]  }
  0x90   : > { %1357 = vmatpush1.bf16.msra.mxu0 %v1894_v3  ;;  %1285 = vmatprep.subr.bf16.mxu1 %v1899_v4  ;;  %v1988_v3 = vld [vmem:[%s2293_s8 + $0x3e4] ss:$8 sps:$4 sm:$0xff]   ;;  %v1983_v4 = vld [vmem:[%s2293_s8 + $0x1e0] ss:$8 sps:$4 sm:$0xff]  }
  0x91   : > { %1367 = vmatprep.subr.bf16.mxu0 %v1904_v5  ;;  %v1986_v5 = vld [vmem:[%s2293_s8 + $0x3e0] ss:$8 sps:$4 sm:$0xff]  }
  0x92   : > { %1277 = vmatmul.mubr.bf16.vlgmr.msra.gmra.mrb[0].mxu1 %v1560_v6  ;;  %v1991_v6 = vld [vmem:[%s2293_s8 + $0x1f4] ss:$8 sps:$4 sm:$0xff]  }
  0x93   : > { %1359 = vmatmul.mubr.bf16.vlgmr.msra.gmra.mrb[0].mxu0 %v1564_v7  ;;  %1286 = vmatpush1.bf16.msra.mxu1 %v1897_v8  ;;  %v1994_v7 = vld [vmem:[%s2293_s8 + $0x3f4] ss:$8 sps:$4 sm:$0xff]   ;;  %v1989_v8 = vld [vmem:[%s2293_s8 + $0x1f0] ss:$8 sps:$4 sm:$0xff]  }
  0x94   : > { %1368 = vmatpush1.bf16.msra.mxu0 %v1902_v9  ;;  %1287 = vmatprep.subr.bf16.mxu1 %v1907_v10  ;;  %v1992_v9 = vld [vmem:[%s2293_s8 + $0x3f0] ss:$8 sps:$4 sm:$0xff]   ;;  %v2001_v10 = vld [vmem:[%s2293_s8 + $0x404] ss:$8 sps:$4 sm:$0xff]  }
  0x95   : > { %1369 = vmatprep.subr.bf16.mxu0 %v1910_v11  ;;  %1317 = vmatprep.mubr.bf16.mxu1 %v1563_v36  ;;  %v2457_v11 = vld [vmem:[%s2517_s0 + $0x20] sm:$0xff]  ;;  %v2034_v36 = vld [vmem:[%s2293_s8 + $0x4b4] ss:$8 sps:$4 sm:$0xff]  }
  0x96   : > { %1399 = vmatprep.mubr.bf16.mxu0 %v1567_v37  ;;  %v2032_v37 = vld [vmem:[%s2293_s8 + $0x4b0] ss:$8 sps:$4 sm:$0xff]  }
  0x97   : > { %1288 = vmatpush1.bf16.msra.mxu1 %v1905_v12  ;;  %v1562_v12 = vcombine.low %v2404_v32, %v2404_v32  ;;  %v2028_v32 = vld [vmem:[%s2293_s8 + $0x494] ss:$8 sps:$4 sm:$0xff]  }
  0x98   : > { %1370 = vmatpush1.bf16.msra.mxu0 %v1908_v13  ;;  %1289 = vmatprep.subr.bf16.mxu1 %v1913_v14  ;;  %v1566_v13 = vcombine.low %v2409_v33, %v2409_v33  ;;  %v1999_v14 = vld [vmem:[%s2293_s8 + $0x400] ss:$8 sps:$4 sm:$0xff]   ;;  %v2026_v33 = vld [vmem:[%s2293_s8 + $0x490] ss:$8 sps:$4 sm:$0xff]  }
  0x99   : > { %1371 = vmatprep.subr.bf16.mxu0 %v1916_v15  ;;  %v1569_v15 = vcombine.high %v2457_v11, %v2457_v11 }
  0x9b   : > { %1290 = vmatpush1.bf16.msra.mxu1 %v1911_v16  ;;  %v2004_v16 = vld [vmem:[%s2293_s8 + $0x414] ss:$8 sps:$4 sm:$0xff]  }
  0x9c   : > { %1372 = vmatpush1.bf16.msra.mxu0 %v1914_v17  ;;  %1291 = vmatprep.subr.bf16.mxu1 %v1919_v18  ;;  %v2002_v17 = vld [vmem:[%s2293_s8 + $0x410] ss:$8 sps:$4 sm:$0xff]   ;;  %v2007_v18 = vld [vmem:[%s2293_s8 + $0x424] ss:$8 sps:$4 sm:$0xff]  }
  0x9d   : > { %1373 = vmatprep.subr.bf16.mxu0 %v1922_v19  ;;  %v2005_v19 = vld [vmem:[%s2293_s8 + $0x420] ss:$8 sps:$4 sm:$0xff]  }
  0x9f   : > { %1292 = vmatpush1.bf16.msra.mxu1 %v1917_v20  ;;  %v2010_v20 = vld [vmem:[%s2293_s8 + $0x434] ss:$8 sps:$4 sm:$0xff]  }
  0xa0   : > { %1374 = vmatpush1.bf16.msra.mxu0 %v1920_v21  ;;  %1293 = vmatprep.subr.bf16.mxu1 %v1925_v22  ;;  %v2008_v21 = vld [vmem:[%s2293_s8 + $0x430] ss:$8 sps:$4 sm:$0xff]   ;;  %v2013_v22 = vld [vmem:[%s2293_s8 + $0x444] ss:$8 sps:$4 sm:$0xff]  }
  0xa1   : > { %1375 = vmatprep.subr.bf16.mxu0 %v1928_v23  ;;  %v2011_v23 = vld [vmem:[%s2293_s8 + $0x440] ss:$8 sps:$4 sm:$0xff]  }
  0xa3   : > { %1294 = vmatpush1.bf16.msra.mxu1 %v1923_v24  ;;  %v2016_v24 = vld [vmem:[%s2293_s8 + $0x454] ss:$8 sps:$4 sm:$0xff]  }
  0xa4   : > { %1376 = vmatpush1.bf16.msra.mxu0 %v1926_v25  ;;  %1295 = vmatprep.subr.bf16.mxu1 %v1931_v26  ;;  %v2014_v25 = vld [vmem:[%s2293_s8 + $0x450] ss:$8 sps:$4 sm:$0xff]   ;;  %v2019_v26 = vld [vmem:[%s2293_s8 + $0x464] ss:$8 sps:$4 sm:$0xff]  }
  0xa5   : > { %1377 = vmatprep.subr.bf16.mxu0 %v1934_v27  ;;  %v2017_v27 = vld [vmem:[%s2293_s8 + $0x460] ss:$8 sps:$4 sm:$0xff]  }
  0xa7   : > { %1296 = vmatpush1.bf16.msra.mxu1 %v1929_v28  ;;  %v2022_v28 = vld [vmem:[%s2293_s8 + $0x474] ss:$8 sps:$4 sm:$0xff]  }
  0xa8   : > { %1378 = vmatpush1.bf16.msra.mxu0 %v1932_v29  ;;  %1297 = vmatprep.subr.bf16.mxu1 %v1937_v30  ;;  %v2020_v29 = vld [vmem:[%s2293_s8 + $0x470] ss:$8 sps:$4 sm:$0xff]   ;;  %v2025_v30 = vld [vmem:[%s2293_s8 + $0x484] ss:$8 sps:$4 sm:$0xff]  }
  0xa9   : > { %1379 = vmatprep.subr.bf16.mxu0 %v1940_v31  ;;  %v2023_v31 = vld [vmem:[%s2293_s8 + $0x480] ss:$8 sps:$4 sm:$0xff]  }
  0xab   : > { %1298 = vmatpush1.bf16.msra.mxu1 %v1935_v34  ;;  %v2031_v34 = vld [vmem:[%s2293_s8 + $0x4a4] ss:$8 sps:$4 sm:$0xff]  }
  0xac   : > { %1380 = vmatpush1.bf16.msra.mxu0 %v1938_v35  ;;  %1299 = vmatprep.subr.bf16.mxu1 %v1943_v38  ;;  %v2029_v35 = vld [vmem:[%s2293_s8 + $0x4a0] ss:$8 sps:$4 sm:$0xff]   ;;  %v2037_v38 = vld [vmem:[%s2293_s8 + $0x4c4] ss:$8 sps:$4 sm:$0xff]  }
  0xad   : > { %1381 = vmatprep.subr.bf16.mxu0 %v1946_v39  ;;  %v2035_v39 = vld [vmem:[%s2293_s8 + $0x4c0] ss:$8 sps:$4 sm:$0xff]  }
  0xaf   : > { %1300 = vmatpush1.bf16.msra.mxu1 %v1941_v40  ;;  %v2040_v40 = vld [vmem:[%s2293_s8 + $0x4d4] ss:$8 sps:$4 sm:$0xff]  }
  0xb0   : > { %1382 = vmatpush1.bf16.msra.mxu0 %v1944_v41  ;;  %1301 = vmatprep.subr.bf16.mxu1 %v1949_v42  ;;  %v2038_v41 = vld [vmem:[%s2293_s8 + $0x4d0] ss:$8 sps:$4 sm:$0xff]   ;;  %v2043_v42 = vld [vmem:[%s2293_s8 + $0x4e4] ss:$8 sps:$4 sm:$0xff]  }
  0xb1   : > { %1383 = vmatprep.subr.bf16.mxu0 %v1952_v43  ;;  %v2041_v43 = vld [vmem:[%s2293_s8 + $0x4e0] ss:$8 sps:$4 sm:$0xff]  }
  0xb3   : > { %1302 = vmatpush1.bf16.msra.mxu1 %v1947_v44  ;;  %v2046_v44 = vld [vmem:[%s2293_s8 + $0x4f4] ss:$8 sps:$4 sm:$0xff]  }
  0xb4   : > { %1384 = vmatpush1.bf16.msra.mxu0 %v1950_v45  ;;  %1303 = vmatprep.subr.bf16.mxu1 %v1955_v46  ;;  %v2044_v45 = vld [vmem:[%s2293_s8 + $0x4f0] ss:$8 sps:$4 sm:$0xff]   ;;  %v1568_v46 = vcombine.low %v2457_v11, %v2457_v11 }
  0xb5   : > { %1385 = vmatprep.subr.bf16.mxu0 %v1958_v47 }
  0xb7   : > { %1304 = vmatpush1.bf16.msra.mxu1 %v1953_v48 }
  0xb8   : > { %1386 = vmatpush1.bf16.msra.mxu0 %v1956_v49  ;;  %1305 = vmatprep.subr.bf16.mxu1 %v1961_v50 }
  0xb9   : > { %1387 = vmatprep.subr.bf16.mxu0 %v1964_v51  ;;  %v399_v51 = vlaneseq }
  0xbb   : > { %1306 = vmatpush1.bf16.msra.mxu1 %v1959_v52  ;;  %v400_v52 = vshrl.u32 %v399_v51, 7 }
  0xbc   : > { %1388 = vmatpush1.bf16.msra.mxu0 %v1962_v53  ;;  %1307 = vmatprep.subr.bf16.mxu1 %v1967_v54  ;;  %v397_v54 = vld [vmem:[%s2299_s30] sm:$0x3] }
  0xbd   : > { %1389 = vmatprep.subr.bf16.mxu0 %v1970_v55  ;;  %v401_v53 = vsub.s32 0, %v400_v52  ;;  %v405_v55 = vsub.s32 1, %v400_v52 }
  0xbf   : > { %1308 = vmatpush1.bf16.msra.mxu1 %v1965_v56  ;;  %v402_v56 = vrot.slane %v397_v54, %v401_v53 }
  0xc0   : > { %1390 = vmatpush1.bf16.msra.mxu0 %v1968_v57  ;;  %1309 = vmatprep.subr.bf16.mxu1 %v1973_v58  ;;  %v406_v57 = vrot.slane %v397_v54, %v405_v55 }
  0xc1   : > { %1391 = vmatprep.subr.bf16.mxu0 %v1976_v59 }
  0xc3   : > { %1310 = vmatpush1.bf16.msra.mxu1 %v1971_v60 }
  0xc4   : > { %1392 = vmatpush1.bf16.msra.mxu0 %v1974_v61  ;;  %1311 = vmatprep.subr.bf16.mxu1 %v1979_v62 }
  0xc5   : > { %1393 = vmatprep.subr.bf16.mxu0 %v1982_v63 }
  0xc7   : > { %1312 = vmatpush1.bf16.msra.mxu1 %v1977_v0 }
  0xc8   : > { %1394 = vmatpush1.bf16.msra.mxu0 %v1980_v1  ;;  %1313 = vmatprep.subr.bf16.mxu1 %v1985_v2 }
  0xc9   : > { %1395 = vmatprep.subr.bf16.mxu0 %v1988_v3 }
  0xcb   : > { %1314 = vmatpush1.bf16.msra.mxu1 %v1983_v4 }
  0xcc   : > { %1396 = vmatpush1.bf16.msra.mxu0 %v1986_v5  ;;  %1315 = vmatprep.subr.bf16.mxu1 %v1991_v6 }
  0xcd   : > { %1397 = vmatprep.subr.bf16.mxu0 %v1994_v7 }
  0xcf   : > { %1316 = vmatpush1.bf16.msra.mxu1 %v1989_v8 }
  0xd0   : > { %1398 = vmatpush1.bf16.msra.mxu0 %v1992_v9 }
  0xd1   : > { %1408 = vmatprep.subr.bf16.mxu0 %v2001_v10 }
  0xd2   : > { %1318 = vmatmul.mubr.bf16.vlgmr.msra.gmra.mrb[0].mxu1 %v1562_v12 }
  0xd3   : > { %1400 = vmatmul.mubr.bf16.vlgmr.msra.gmra.mrb[0].mxu0 %v1566_v13 }
  0xd4   : > { %1409 = vmatpush1.bf16.msra.mxu0 %v1999_v14  ;;  %1440 = vmatprep.mubr.bf16.mxu0 %v1569_v15 }
  0xd5   : > { %1410 = vmatprep.subr.bf16.mxu0 %v2004_v16 }
  0xd8   : > { %1411 = vmatpush1.bf16.msra.mxu0 %v2002_v17 }
  0xd9   : > { %1412 = vmatprep.subr.bf16.mxu0 %v2007_v18 }
  0xdc   : > { %1413 = vmatpush1.bf16.msra.mxu0 %v2005_v19 }
  0xdd   : > { %1414 = vmatprep.subr.bf16.mxu0 %v2010_v20 }
  0xe0   : > { %1415 = vmatpush1.bf16.msra.mxu0 %v2008_v21 }
  0xe1   : > { %1416 = vmatprep.subr.bf16.mxu0 %v2013_v22 }
  0xe4   : > { %1417 = vmatpush1.bf16.msra.mxu0 %v2011_v23 }
  0xe5   : > { %1418 = vmatprep.subr.bf16.mxu0 %v2016_v24 }
  0xe8   : > { %1419 = vmatpush1.bf16.msra.mxu0 %v2014_v25 }
  0xe9   : > { %1420 = vmatprep.subr.bf16.mxu0 %v2019_v26 }
  0xec   : > { %1421 = vmatpush1.bf16.msra.mxu0 %v2017_v27 }
  0xed   : > { %1422 = vmatprep.subr.bf16.mxu0 %v2022_v28 }
  0xf0   : > { %1423 = vmatpush1.bf16.msra.mxu0 %v2020_v29 }
  0xf1   : > { %1424 = vmatprep.subr.bf16.mxu0 %v2025_v30 }
  0xf4   : > { %1425 = vmatpush1.bf16.msra.mxu0 %v2023_v31 }
  0xf5   : > { %1426 = vmatprep.subr.bf16.mxu0 %v2028_v32 }
  0xf8   : > { %1427 = vmatpush1.bf16.msra.mxu0 %v2026_v33 }
  0xf9   : > { %1428 = vmatprep.subr.bf16.mxu0 %v2031_v34 }
  0xfc   : > { %1429 = vmatpush1.bf16.msra.mxu0 %v2029_v35 }
  0xfd   : > { %1430 = vmatprep.subr.bf16.mxu0 %v2034_v36 }
 0x100   : > { %1431 = vmatpush1.bf16.msra.mxu0 %v2032_v37 }
 0x101   : > { %1432 = vmatprep.subr.bf16.mxu0 %v2037_v38 }
 0x104   : > { %1433 = vmatpush1.bf16.msra.mxu0 %v2035_v39 }
 0x105   : > { %1434 = vmatprep.subr.bf16.mxu0 %v2040_v40 }
 0x108   : > { %1435 = vmatpush1.bf16.msra.mxu0 %v2038_v41 }
 0x109   : > { %1436 = vmatprep.subr.bf16.mxu0 %v2043_v42 }
 0x10c   : > { %1437 = vmatpush1.bf16.msra.mxu0 %v2041_v43 }
 0x10d   : > { %1438 = vmatprep.subr.bf16.mxu0 %v2046_v44 }
 0x110   : > { %1439 = vmatpush1.bf16.msra.mxu0 %v2044_v45 }
 0x113   : > { %1441 = vmatmul.mubr.bf16.vlgmr.msra.gmra.mrb[0].mxu0 %v1568_v46 }
 0x1a5   : > { %v1319_v47 = vpop.f32.mrb[0].mxu1 }
 0x1a6   : > { %v1321_v48 = vpop.f32.mrb[1].mxu1  ;;  %v1734_v58 = vadd.f32 %v1319_v47, %v402_v56 }
 0x1a7   : > { %v1323_v49 = vpop.f32.mrb[2].mxu1  ;;  %v1736_v59 = vadd.f32 %v1321_v48, %v406_v57 }
 0x1a8   : > { %v1324_v50 = vpop.f32.mrb[3].mxu1 }
 0x1e6   : > { %v1442_v60 = vpop.f32.mrb[0].mxu0 }
 0x1e7   : > { %v1735_v61 = vadd.f32 %v1734_v58, %v1442_v60  ;;  %v1444_v62 = vpop.f32.mrb[1].mxu0 }
 0x1e8   : > { %v1737_v63 = vadd.f32 %v1736_v59, %v1444_v62  ;;  %v1446_v0 = vpop.f32.mrb[2].mxu0 }
 0x1e9   : > { %vm1449_vm0 = vcmp.ge.f32.partialorder %v1735_v61, 0.0  ;;  %v1451_v1 = vmul.f32 0.2, %v1735_v61  ;;  %v1447_v2 = vpop.f32.mrb[3].mxu0 }
 0x1ea   : > { %vm1450_vm1 = vcmp.ge.f32.partialorder %v1737_v63, 0.0  ;;  %v1452_v3 = vmul.f32 0.2, %v1737_v63 }
 0x1eb   : > { %v1453_v4 = vsel %vm1449_vm0, %v1735_v61, %v1451_v1 }
 0x1ec   : > { %1455 = vst [vmem:[%s230_s15] sm:$0xff] %v1453_v4  ;;  %v1454_v5 = vsel %vm1450_vm1, %v1737_v63, %v1452_v3 }
 0x1ed   : > { %1456 = vst [vmem:[%s230_s15 + $0x8] sm:$0xff] %v1454_v5 }
 0x1ee PF: > { %p16_p8 = scmp.ge.s32.totalorder %s2194_s17, 4   ;;  %s2527_s12 = smov %s2139_s13 }
 0x1ef   : > { %s2528_s13 = smov %s2143_s14  ;;  %s2529_s14 = smov %s2204_s20 }
 0x1f0   : > { %s2530_s15 = smov %s2194_s17  ;;  %18 = sbr.rel (!%p16_p8) target bundleno = 5 (0x5), region = 85 }
 0x1f7   :  { %1479 = vsyncpa [#allocation3], 1 }
 0x1f8   :  { %1481 = vsyncpa [#allocation3 + $0x1], 1 }
 0x1f9   :  { %1482 = vsyncpa [#allocation5], 1 }
 0x1fa   :  { %1484 = vsyncpa [#allocation5 + $0x1], 1 }

// kernel: discriminator_forward.2
= control target key start
LH: loop header
LB: loop body
LE: loop exit
PB: predicated region body
PF: predicated region fallthrough
CT: control target
= control target key end

     0   :  { %10 = vsyncpa [#allocation4], 0  ;;  %s6236_s0 = inlined_call_operand.hbm [shape: bf16[2,64,128], index: 0, kind: input, shape index: {}]   ;;  %s6237_s1 = inlined_call_operand.hbm [shape: bf16[128,128], index: 1, kind: input, shape index: {}]   ;;  %s6238_s2 = inlined_call_operand.hbm [shape: f32[1,128], index: 2, kind: input, shape index: {}]   ;;  %s6239_s3 = inlined_call_operand.hbm [shape: bf16[128,1280], index: 3, kind: input, shape index: {}]   ;;  %s6240_s4 = inlined_call_operand.hbm [shape: f32[1,1280], index: 4, kind: input, shape index: {}]   ;;  %s6241_s5 = inlined_call_operand.hbm [shape: f32[2,1280], index: 5, kind: output, shape index: {}]  }
   0x1   :  { %11 = vsyncpa [#allocation7], 0 }
   0x2   :  { %12 = vsyncpa [#allocation10], 0 }
   0x3   :  { %13 = vsyncpa [#allocation5], 0  ;;  %s4427_s18 = smov [#allocation6]   ;;  %s4428_s20 = smov [#allocation9]  }
   0x4   :  { %s31_s19 = sshll.u32 %s4427_s18, 4  ;;  %s53_s21 = sshll.u32 %s4428_s20, 4  ;;  %s32_s19 = int_to_ptr.vmem [resolvable:$true] %s31_s19  ;;  %s4470_s21 = int_to_ptr.vmem [resolvable:$true] %s53_s21 }
   0x5   :  { %s4287_s24 = scalar_lea.hbm %s6237_s1, 1024 }
   0x6   :  { %p4288_p0 = scmp.ne.s32.totalorder %s6237_s1, %s4287_s24  ;;  %p4291_p1 = scmp.lt.u32.totalorder %s4287_s24, %s6237_s1 }
   0x8   :  { %p4293_p2 = pnand %p4291_p1, %p4288_p0 }
   0xa   :  { %4296 = shalt.err (!%p4293_p2)
}
   0xb   :  { %s4297_s29 = scalar_lea.vmem %s32_s19, 1024  ;;  %p4302_p4 = scmp.lt.s32.totalorder %s32_s19, %s32_s19 }
   0xc   :  { %p4298_p3 = scmp.ne.s32.totalorder %s32_s19, %s4297_s29  ;;  %p4303_p5 = scmp.lt.s32.totalorder %s4297_s29, %s4297_s29 }
   0xe   :  { %p4304_p6 = por %p4303_p5, %p4302_p4 }
  0x10   :  { %p4305_p7 = pnand %p4304_p6, %p4298_p3 }
  0x12   :  { %4308 = shalt.err (!%p4305_p7)
}
  0x13   :  { %s4429_s30 = smov 64   ;;  %s4430_s6 = smov 4  }
  0x14   :  { %37 = dma.hbm_to_vmem [thread:$0]  %s6237_s1, 1024, %s32_s19, [#allocation7], %s4429_s30, %s4429_s30, %s4430_s6  }
  0x15   :  { %s4309_s11 = scalar_lea.hbm %s6239_s3, 10240 }
  0x16   :  { %p4310_p8 = scmp.ne.s32.totalorder %s6239_s3, %s4309_s11  ;;  %p4313_p9 = scmp.lt.u32.totalorder %s4309_s11, %s6239_s3 }
  0x18   :  { %p4315_p10 = pnand %p4313_p9, %p4310_p8 }
  0x1a   :  { %4318 = shalt.err (!%p4315_p10)
}
  0x1b   :  { %s4319_s16 = scalar_lea.vmem %s4470_s21, 10240  ;;  %p4324_p12 = scmp.lt.s32.totalorder %s4470_s21, %s4470_s21 }
  0x1c   :  { %p4320_p11 = scmp.ne.s32.totalorder %s4470_s21, %s4319_s16  ;;  %p4325_p13 = scmp.lt.s32.totalorder %s4319_s16, %s4319_s16 }
  0x1e   :  { %p4326_p0 = por %p4325_p13, %p4324_p12 }
  0x20   :  { %p4327_p1 = pnand %p4326_p0, %p4320_p11 }
  0x22   :  { %4330 = shalt.err (!%p4327_p1)
}
  0x23   :  { %s4431_s1 = smov 640   ;;  %s4432_s17 = smov 40  }
  0x24   :  { %59 = dma.hbm_to_vmem [thread:$0]  %s6239_s3, 10240, %s4470_s21, [#allocation10], %s4431_s1, %s4431_s1, %s4432_s17  }
  0x25   :  { %s4433_s20 = smov [#allocation3]   ;;  %s4434_s23 = smov [#allocation8]  }
  0x26   :  { %s19_s22 = sshll.u32 %s4433_s20, 4  ;;  %s44_s24 = sshll.u32 %s4434_s23, 4  ;;  %s20_s22 = int_to_ptr.vmem [resolvable:$true] %s19_s22  ;;  %s45_s24 = int_to_ptr.vmem [resolvable:$true] %s44_s24 }
  0x27   :  { %s4331_s27 = scalar_lea.hbm %s6236_s0, 1024 }
  0x28   :  { %p4332_p2 = scmp.ne.s32.totalorder %s6236_s0, %s4331_s27  ;;  %p4335_p3 = scmp.lt.u32.totalorder %s4331_s27, %s6236_s0 }
  0x2a   :  { %p4337_p4 = pnand %p4335_p3, %p4332_p2 }
  0x2c   :  { %4340 = shalt.err (!%p4337_p4)
}
  0x2d   :  { %s4341_s3 = scalar_lea.vmem %s20_s22, 1024  ;;  %p4346_p6 = scmp.lt.s32.totalorder %s20_s22, %s20_s22 }
  0x2e   :  { %p4342_p5 = scmp.ne.s32.totalorder %s20_s22, %s4341_s3  ;;  %p4347_p7 = scmp.lt.s32.totalorder %s4341_s3, %s4341_s3 }
  0x30   :  { %p4348_p8 = por %p4347_p7, %p4346_p6 }
  0x32   :  { %p4349_p9 = pnand %p4348_p8, %p4342_p5 }
  0x34   :  { %4352 = shalt.err (!%p4349_p9)
}
  0x35   :  { %25 = dma.hbm_to_vmem [thread:$0]  %s6236_s0, 1024, %s20_s22, [#allocation4], %s4429_s30, %s4429_s30, %s4430_s6  }
  0x36   :  { %s4353_s12 = scalar_lea.hbm %s6238_s2, 16 }
  0x37   :  { %p4354_p10 = scmp.ne.s32.totalorder %s6238_s2, %s4353_s12  ;;  %p4357_p11 = scmp.lt.u32.totalorder %s4353_s12, %s6238_s2 }
  0x39   :  { %p4359_p12 = pnand %p4357_p11, %p4354_p10 }
  0x3b   :  { %4362 = shalt.err (!%p4359_p12)
}
  0x3c   :  { %s4363_s1 = scalar_lea.vmem %s45_s24, 16  ;;  %s4367_s17 = scalar_lea.vmem %s45_s24, 32 }
  0x3d   :  { %p4364_p13 = scmp.ne.s32.totalorder %s45_s24, %s4363_s1  ;;  %p4368_p0 = scmp.lt.s32.totalorder %s45_s24, %s45_s24 }
  0x3e   :  { %p4369_p1 = scmp.lt.s32.totalorder %s4367_s17, %s4363_s1 }
  0x40   :  { %p4370_p2 = por %p4369_p1, %p4368_p0 }
  0x42   :  { %p4371_p3 = pnand %p4370_p2, %p4364_p13 }
  0x44   :  { %4374 = shalt.err (!%p4371_p3)
}
  0x45   :  { %47 = dma.hbm_to_vmem [thread:$0]  %s6238_s2, 16, %s45_s24, [#allocation7]  }
  0x46   :  { %s4435_s6 = smov [#allocation11]   ;;  %s4375_s22 = scalar_lea.hbm %s6240_s4, 160 }
  0x47   :  { %s66_s18 = sshll.u32 %s4435_s6, 4  ;;  %p4376_p4 = scmp.ne.s32.totalorder %s6240_s4, %s4375_s22  ;;  %s67_s18 = int_to_ptr.vmem [resolvable:$true] %s66_s18 }
  0x48   :  { %p4379_p5 = scmp.lt.u32.totalorder %s4375_s22, %s6240_s4 }
  0x4a   :  { %p4381_p6 = pnand %p4379_p5, %p4376_p4 }
  0x4c   :  { %4384 = shalt.err (!%p4381_p6)
}
  0x4d   :  { %s4385_s28 = scalar_lea.vmem %s67_s18, 160  ;;  %p4390_p8 = scmp.lt.s32.totalorder %s67_s18, %s67_s18 }
  0x4e   :  { %p4386_p7 = scmp.ne.s32.totalorder %s67_s18, %s4385_s28  ;;  %p4391_p9 = scmp.lt.s32.totalorder %s4385_s28, %s4385_s28 }
  0x50   :  { %p4392_p10 = por %p4391_p9, %p4390_p8 }
  0x52   :  { %p4393_p11 = pnand %p4392_p10, %p4386_p7 }
  0x54   :  { %4396 = shalt.err (!%p4393_p11)
}
  0x55   :  { %69 = dma.hbm_to_vmem [thread:$0]  %s6240_s4, 160, %s67_s18, [#allocation10]  }
  0x56   :  { %4419 = dma.done.wait [#allocation4], 1024  }
  0x57   :  { %4420 = vsyncadd [#allocation4], 4294966272 }
  0x58   :  { %4421 = dma.done.wait [#allocation7], 1040  }
  0x59   :  { %4422 = vsyncadd [#allocation7], 4294966256 }
  0x5a   :  { %4423 = dma.done.wait [#allocation10], 10400  }
  0x5b   :  { %4424 = vsyncadd [#allocation10], 4294956896  ;;  %v3446_v0 = vld [vmem:[#allocation6] sm:$0xff]   ;;  %v3447_v1 = vld [vmem:[#allocation6 + $0x8] sm:$0xff]   ;;  %v4436_v48 = vmov 0   ;;  %vm3036_vm0 = vcmask 1041409  }
  0x5c   :  { %3385 = vmatprep.subr.bf16.mxu0 %v3446_v0  ;;  %v3448_v2 = vld [vmem:[#allocation6 + $0x10] sm:$0xff]   ;;  %v3449_v3 = vld [vmem:[#allocation6 + $0x18] sm:$0xff]   ;;  %v3454_v4 = vld [vmem:[#allocation3] sm:$0xff]   ;;  %1011 = vmatprep.mubr.bf16.mxu1 %v4436_v48  ;;  %vm3038_vm1 = vcmask 1043459   ;;  %vm3040_vm2 = vcmask 1045509   ;;  %vm3042_vm3 = vcmask 1047559  }
  0x5d   :  { %3386 = vmatpush3.bf16.msra.mxu0 %v3446_v0  ;;  %3401 = vmatprep.mubr.bf16.mxu0 %v3454_v4  ;;  %v3450_v5 = vld [vmem:[#allocation6 + $0x20] sm:$0xff]   ;;  %v3451_v6 = vld [vmem:[#allocation6 + $0x28] sm:$0xff]   ;;  %v3452_v7 = vld [vmem:[#allocation6 + $0x30] sm:$0xff]   ;;  %s4439_s4 = smov [#allocation12]  }
  0x5e   :  { %3387 = vmatprep.subr.bf16.mxu0 %v3447_v1  ;;  %v3453_v8 = vld [vmem:[#allocation6 + $0x38] sm:$0xff]   ;;  %v3455_v9 = vld [vmem:[#allocation3 + $0x8] sm:$0xff]   ;;  %v3456_v10 = vld [vmem:[#allocation3 + $0x10] sm:$0xff]   ;;  %s3085_s29 = sshll.u32 %s4439_s4, 4  ;;  %s3086_s29 = int_to_ptr.vmem [resolvable:$true] %s3085_s29 }
  0x5f   :  { %v3457_v11 = vld [vmem:[#allocation3 + $0x18] sm:$0xff]   ;;  %v3458_v12 = vld [vmem:[#allocation3 + $0x20] sm:$0xff]   ;;  %v3459_v13 = vld [vmem:[#allocation3 + $0x28] sm:$0xff]   ;;  %s4397_s7 = scalar_lea.vmem %s3086_s29, 320  ;;  %p4402_p13 = scmp.lt.s32.totalorder %s3086_s29, %s3086_s29 }
  0x60   :  { %v3460_v14 = vld [vmem:[#allocation3 + $0x30] sm:$0xff]   ;;  %v3461_v15 = vld [vmem:[#allocation3 + $0x38] sm:$0xff]   ;;  %v3464_v18 = vld [vmem:[#allocation9] ss:$40 sps:$4 sm:$0xff]   ;;  %p4398_p12 = scmp.ne.s32.totalorder %s3086_s29, %s4397_s7  ;;  %p4403_p0 = scmp.lt.s32.totalorder %s4397_s7, %s4397_s7 }
  0x61   :  { %3388 = vmatpush3.bf16.msra.mxu0 %v3447_v1  ;;  %v3462_v16 = vld [vmem:[#allocation9 + $0x4] ss:$40 sps:$4 sm:$0xff]   ;;  %v3465_v19 = vld [vmem:[#allocation9 + $0x8] ss:$40 sps:$4 sm:$0xff]   ;;  %v3468_v20 = vld [vmem:[#allocation9 + $0x54] ss:$40 sps:$4 sm:$0xff]  }
  0x62   :  { %3389 = vmatprep.subr.bf16.mxu0 %v3448_v2  ;;  %v3467_v17 = vld [vmem:[#allocation9 + $0xc] ss:$40 sps:$4 sm:$0xff]   ;;  %979 = vmatprep.subr.bf16.mxu1 %v3462_v16  ;;  %v3473_v21 = vld [vmem:[#allocation9 + $0x5c] ss:$40 sps:$4 sm:$0xff]   ;;  %v3470_v22 = vld [vmem:[#allocation9 + $0x50] ss:$40 sps:$4 sm:$0xff]   ;;  %p4404_p1 = por %p4403_p0, %p4402_p13 }
  0x63   :  { %980 = vmatpush1.bf16.msra.mxu1 %v3464_v18  ;;  %v3471_v23 = vld [vmem:[#allocation9 + $0x58] ss:$40 sps:$4 sm:$0xff]   ;;  %v3474_v24 = vld [vmem:[#allocation9 + $0xa4] ss:$40 sps:$4 sm:$0xff]   ;;  %v3477_v27 = vld [vmem:[#allocation9 + $0xa8] ss:$40 sps:$4 sm:$0xff]  }
  0x64   :  { %981 = vmatprep.subr.bf16.mxu1 %v3468_v20  ;;  %v3479_v25 = vld [vmem:[#allocation9 + $0xac] ss:$40 sps:$4 sm:$0xff]   ;;  %v3476_v26 = vld [vmem:[#allocation9 + $0xa0] ss:$40 sps:$4 sm:$0xff]   ;;  %v3485_v29 = vld [vmem:[#allocation9 + $0xfc] ss:$40 sps:$4 sm:$0xff]   ;;  %p4405_p2 = pnand %p4404_p1, %p4398_p12 }
  0x65   :  { %3390 = vmatpush3.bf16.msra.mxu0 %v3448_v2  ;;  %v3480_v28 = vld [vmem:[#allocation9 + $0xf4] ss:$40 sps:$4 sm:$0xff]   ;;  %v3482_v30 = vld [vmem:[#allocation9 + $0xf0] ss:$40 sps:$4 sm:$0xff]   ;;  %v3486_v32 = vld [vmem:[#allocation9 + $0x144] ss:$40 sps:$4 sm:$0xff]  }
  0x66   :  { %3391 = vmatprep.subr.bf16.mxu0 %v3449_v3  ;;  %v3483_v31 = vld [vmem:[#allocation9 + $0xf8] ss:$40 sps:$4 sm:$0xff]   ;;  %v3491_v33 = vld [vmem:[#allocation9 + $0x14c] ss:$40 sps:$4 sm:$0xff]   ;;  %v3489_v35 = vld [vmem:[#allocation9 + $0x148] ss:$40 sps:$4 sm:$0xff]  }
  0x67   :  { %982 = vmatpush1.bf16.msra.mxu1 %v3470_v22  ;;  %v3488_v34 = vld [vmem:[#allocation9 + $0x140] ss:$40 sps:$4 sm:$0xff]   ;;  %v3492_v36 = vld [vmem:[#allocation9 + $0x194] ss:$40 sps:$4 sm:$0xff]   ;;  %v3494_v38 = vld [vmem:[#allocation9 + $0x190] ss:$40 sps:$4 sm:$0xff]  }
  0x68   :  { %983 = vmatprep.subr.bf16.mxu1 %v3474_v24  ;;  %v3497_v37 = vld [vmem:[#allocation9 + $0x19c] ss:$40 sps:$4 sm:$0xff]   ;;  %v3495_v39 = vld [vmem:[#allocation9 + $0x198] ss:$40 sps:$4 sm:$0xff]   ;;  %v3503_v41 = vld [vmem:[#allocation9 + $0x1ec] ss:$40 sps:$4 sm:$0xff]  }
  0x69   :  { %3392 = vmatpush3.bf16.msra.mxu0 %v3449_v3  ;;  %v3498_v40 = vld [vmem:[#allocation9 + $0x1e4] ss:$40 sps:$4 sm:$0xff]   ;;  %v3500_v42 = vld [vmem:[#allocation9 + $0x1e0] ss:$40 sps:$4 sm:$0xff]   ;;  %v3504_v44 = vld [vmem:[#allocation9 + $0x234] ss:$40 sps:$4 sm:$0xff]  }
  0x6a   :  { %3393 = vmatprep.subr.bf16.mxu0 %v3450_v5  ;;  %v3501_v43 = vld [vmem:[#allocation9 + $0x1e8] ss:$40 sps:$4 sm:$0xff]   ;;  %v3509_v45 = vld [vmem:[#allocation9 + $0x23c] ss:$40 sps:$4 sm:$0xff]   ;;  %v3507_v47 = vld [vmem:[#allocation9 + $0x238] ss:$40 sps:$4 sm:$0xff]  }
  0x6b   :  { %984 = vmatpush1.bf16.msra.mxu1 %v3476_v26  ;;  %v3506_v46 = vld [vmem:[#allocation9 + $0x230] ss:$40 sps:$4 sm:$0xff]   ;;  %v3512_v49 = vld [vmem:[#allocation9 + $0x14] ss:$40 sps:$4 sm:$0xff]  }
  0x6c   :  { %985 = vmatprep.subr.bf16.mxu1 %v3480_v28  ;;  %v3524_v50 = vld [vmem:[#allocation9 + $0x1c] ss:$40 sps:$4 sm:$0xff]  }
  0x6d   :  { %3394 = vmatpush3.bf16.msra.mxu0 %v3450_v5  ;;  %v4545_v51 = vld [vmem:[#allocation8] ss:$0 sm:$0xff] }
  0x6e   :  { %3395 = vmatprep.subr.bf16.mxu0 %v3451_v6 }
  0x6f   :  { %986 = vmatpush1.bf16.msra.mxu1 %v3482_v30 }
  0x70   :  { %987 = vmatprep.subr.bf16.mxu1 %v3486_v32 }
  0x71   :  { %3396 = vmatpush3.bf16.msra.mxu0 %v3451_v6 }
  0x72   :  { %3397 = vmatprep.subr.bf16.mxu0 %v3452_v7 }
  0x73   :  { %988 = vmatpush1.bf16.msra.mxu1 %v3488_v34 }
  0x74   :  { %989 = vmatprep.subr.bf16.mxu1 %v3492_v36 }
  0x75   :  { %3398 = vmatpush3.bf16.msra.mxu0 %v3452_v7 }
  0x76   :  { %3399 = vmatprep.subr.bf16.mxu0 %v3453_v8 }
  0x77   :  { %990 = vmatpush1.bf16.msra.mxu1 %v3494_v38 }
  0x78   :  { %991 = vmatprep.subr.bf16.mxu1 %v3498_v40 }
  0x79   :  { %3400 = vmatpush3.bf16.msra.mxu0 %v3453_v8 }
  0x7a   :  { %1092 = vmatprep.subr.bf16.mxu0 %v3467_v17 }
  0x7b   :  { %992 = vmatpush1.bf16.msra.mxu1 %v3500_v42 }
  0x7c   :  { %3402 = vmatmul.mubr.bf16.vlgmr.msra.gmra.mrb[0].mxu0 %v3455_v9  ;;  %993 = vmatprep.subr.bf16.mxu1 %v3504_v44 }
  0x7d   :  { %3405 = vmatprep.mubr.bf16.mxu0 %v3456_v10  ;;  %1093 = vmatpush1.bf16.msra.mxu0 %v3465_v19 }
  0x7e   :  { %1094 = vmatprep.subr.bf16.mxu0 %v3473_v21 }
  0x7f   :  { %994 = vmatpush1.bf16.msra.mxu1 %v3506_v46 }
  0x80   :  { %1205 = vmatprep.subr.bf16.mxu1 %v3512_v49 }
  0x81   :  { %1095 = vmatpush1.bf16.msra.mxu0 %v3471_v23 }
  0x82   :  { %1096 = vmatprep.subr.bf16.mxu0 %v3479_v25 }
  0x84   :  { %3406 = vmatmul.mubr.bf16.gmra.mrb[4].mxu0 %v3457_v11 }
  0x85   :  { %3409 = vmatprep.mubr.bf16.mxu0 %v3458_v12  ;;  %1097 = vmatpush1.bf16.msra.mxu0 %v3477_v27 }
  0x86   :  { %1098 = vmatprep.subr.bf16.mxu0 %v3485_v29 }
  0x89   :  { %1099 = vmatpush1.bf16.msra.mxu0 %v3483_v31 }
  0x8a   :  { %1100 = vmatprep.subr.bf16.mxu0 %v3491_v33 }
  0x8c   :  { %3410 = vmatmul.mubr.bf16.gmra.mrb[8].mxu0 %v3459_v13 }
  0x8d   :  { %3413 = vmatprep.mubr.bf16.mxu0 %v3460_v14  ;;  %1101 = vmatpush1.bf16.msra.mxu0 %v3489_v35 }
  0x8e   :  { %1102 = vmatprep.subr.bf16.mxu0 %v3497_v37 }
  0x91   :  { %1103 = vmatpush1.bf16.msra.mxu0 %v3495_v39 }
  0x92   :  { %1104 = vmatprep.subr.bf16.mxu0 %v3503_v41 }
  0x94   :  { %3414 = vmatmul.mubr.bf16.gmra.mrb[12].mxu0 %v3461_v15 }
  0x95   :  { %1105 = vmatpush1.bf16.msra.mxu0 %v3501_v43  ;;  %1124 = vmatprep.mubr.bf16.mxu0 %v4436_v48 }
  0x96   :  { %1106 = vmatprep.subr.bf16.mxu0 %v3509_v45 }
  0x99   :  { %1107 = vmatpush1.bf16.msra.mxu0 %v3507_v47 }
  0x9a   :  { %1318 = vmatprep.subr.bf16.mxu0 %v3524_v50 }
 0x14f   :  { %v3403_v52 = vpop.f32.mrb[0].mxu0 }
 0x150   :  { %v4548_v53 = vadd.f32 %v3403_v52, %v4545_v51  ;;  %v262_v54 = vpop.f32.mrb[1].mxu0 }
 0x151   :  { %v4551_v55 = vadd.f32 %v4545_v51, %v262_v54  ;;  %v3404_v56 = vpop.f32.mrb[2].mxu0 }
 0x152   :  { %v3115_v57 = vmul.f32 -1.442695, %v4548_v53  ;;  %v4555_v58 = vadd.f32 %v3404_v56, %v4545_v51  ;;  %v265_v59 = vpop.f32.mrb[3].mxu0 }
 0x153   :  { %v3113_v60 = vmul.f32 -1.442695, %v4551_v55  ;;  %v4559_v61 = vadd.f32 %v4545_v51, %v265_v59 }
 0x154   :  { %3582 = vpow2.f32 %v3115_v57  ;;  %v3116_v62 = vmul.f32 -1.442695, %v4555_v58 }
 0x155   :  { %3584 = vpow2.f32 %v3113_v60  ;;  %v3114_v63 = vmul.f32 -1.442695, %v4559_v61 }
 0x156   :  { %3586 = vpow2.f32 %v3116_v62 }
 0x157   :  { %3588 = vpow2.f32 %v3114_v63  ;;  %v3407_v0 = vpop.f32.mrb[4].mxu0 }
 0x158   :  { %v4564_v1 = vadd.f32 %v3407_v0, %v4545_v51  ;;  %v278_v2 = vpop.f32.mrb[5].mxu0 }
 0x159   :  { %v4567_v3 = vadd.f32 %v4545_v51, %v278_v2  ;;  %v3408_v4 = vpop.f32.mrb[6].mxu0 }
 0x15a   :  { %v3119_v5 = vmul.f32 -1.442695, %v4564_v1  ;;  %v4571_v6 = vadd.f32 %v3408_v4, %v4545_v51  ;;  %v281_v7 = vpop.f32.mrb[7].mxu0 }
 0x15b   :  { %v3117_v8 = vmul.f32 -1.442695, %v4567_v3  ;;  %v4575_v9 = vadd.f32 %v4545_v51, %v281_v7 }
 0x15c   :  { %3590 = vpow2.f32 %v3119_v5  ;;  %v3120_v10 = vmul.f32 -1.442695, %v4571_v6 }
 0x15d   :  { %3592 = vpow2.f32 %v3117_v8  ;;  %v3118_v11 = vmul.f32 -1.442695, %v4575_v9  ;;  %v3510_v8 = vld [vmem:[#allocation9 + $0x10] ss:$40 sps:$4 sm:$0xff]  }
 0x15e   :  { %v3583_v12 = vpop.eup %3582  ;;  %3594 = vpow2.f32 %v3120_v10 }
 0x15f   :  { %v3585_v13 = vpop.eup %3584  ;;  %v375_v14 = vadd.f32 1.0, %v3583_v12  ;;  %3596 = vpow2.f32 %v3118_v11  ;;  %v3411_v15 = vpop.f32.mrb[8].mxu0 }
 0x160   :  { %v3587_v16 = vpop.eup %3586  ;;  %v373_v17 = vadd.f32 1.0, %v3585_v13  ;;  %v4580_v18 = vadd.f32 %v3411_v15, %v4545_v51  ;;  %v294_v19 = vpop.f32.mrb[9].mxu0 }
 0x161   :  { %v3589_v20 = vpop.eup %3588  ;;  %3598 = vrcp.f32 %v375_v14  ;;  %v376_v21 = vadd.f32 1.0, %v3587_v16  ;;  %v4583_v22 = vadd.f32 %v4545_v51, %v294_v19  ;;  %v3412_v23 = vpop.f32.mrb[10].mxu0  ;;  %v3522_v14 = vld [vmem:[#allocation9 + $0x18] ss:$40 sps:$4 sm:$0xff]  }
 0x162   :  { %3600 = vrcp.f32 %v373_v17  ;;  %v374_v24 = vadd.f32 1.0, %v3589_v20  ;;  %v3123_v25 = vmul.f32 -1.442695, %v4580_v18  ;;  %v4587_v26 = vadd.f32 %v3412_v23, %v4545_v51  ;;  %v297_v27 = vpop.f32.mrb[11].mxu0  ;;  %v3513_v17 = vld [vmem:[#allocation9 + $0x60] ss:$40 sps:$4 sm:$0xff]  }
 0x163   :  { %3602 = vrcp.f32 %v376_v21  ;;  %v3121_v28 = vmul.f32 -1.442695, %v4583_v22  ;;  %v4591_v29 = vadd.f32 %v4545_v51, %v297_v27  ;;  %v3518_v20 = vld [vmem:[#allocation9 + $0xb4] ss:$40 sps:$4 sm:$0xff]  }
 0x164   :  { %3604 = vrcp.f32 %v374_v24  ;;  %v3124_v30 = vmul.f32 -1.442695, %v4587_v26 }
 0x165   :  { %3606 = vpow2.f32 %v3123_v25  ;;  %v3122_v31 = vmul.f32 -1.442695, %v4591_v29  ;;  %v3528_v25 = vld [vmem:[#allocation9 + $0x68] ss:$40 sps:$4 sm:$0xff]  }
 0x166   :  { %v3591_v32 = vpop.eup %3590  ;;  %3608 = vpow2.f32 %v3121_v28 }
 0x167   :  { %v3593_v33 = vpop.eup %3592  ;;  %v379_v34 = vadd.f32 1.0, %v3591_v32  ;;  %3610 = vpow2.f32 %v3124_v30  ;;  %v3415_v35 = vpop.f32.mrb[12].mxu0 }
 0x168   :  { %v3595_v36 = vpop.eup %3594  ;;  %v377_v37 = vadd.f32 1.0, %v3593_v33  ;;  %3612 = vpow2.f32 %v3122_v31  ;;  %v4596_v38 = vadd.f32 %v3415_v35, %v4545_v51  ;;  %v310_v39 = vpop.f32.mrb[13].mxu0 }
 0x169   :  { %v3597_v40 = vpop.eup %3596  ;;  %3614 = vrcp.f32 %v379_v34  ;;  %v380_v41 = vadd.f32 1.0, %v3595_v36  ;;  %v4599_v42 = vadd.f32 %v4545_v51, %v310_v39  ;;  %v3416_v43 = vpop.f32.mrb[14].mxu0 }
 0x16a   :  { %3616 = vrcp.f32 %v377_v37  ;;  %v378_v44 = vadd.f32 1.0, %v3597_v40  ;;  %v3127_v45 = vmul.f32 -1.442695, %v4596_v38  ;;  %v4603_v46 = vadd.f32 %v3416_v43, %v4545_v51  ;;  %v313_v47 = vpop.f32.mrb[15].mxu0  ;;  %v3521_v40 = vld [vmem:[#allocation9 + $0x104] ss:$40 sps:$4 sm:$0xff]  }
 0x16b   :  { %v3599_v49 = vpop.eup %3598  ;;  %3618 = vrcp.f32 %v380_v41  ;;  %v3125_v50 = vmul.f32 -1.442695, %v4599_v42  ;;  %v4607_v52 = vadd.f32 %v4545_v51, %v313_v47  ;;  %v3539_v41 = vld [vmem:[#allocation9 + $0x10c] ss:$40 sps:$4 sm:$0xff]  }
 0x16c   :  { %v3601_v54 = vpop.eup %3600  ;;  %3620 = vrcp.f32 %v378_v44  ;;  %v3128_v56 = vmul.f32 -1.442695, %v4603_v46  ;;  %v423_v62 = vmul.f32 %v3599_v49, %v4548_v53  ;;  %v3515_v53 = vld [vmem:[#allocation9 + $0x64] ss:$40 sps:$4 sm:$0xff]   ;;  %v3527_v49 = vld [vmem:[#allocation9 + $0x154] ss:$40 sps:$4 sm:$0xff]  }
 0x16d   :  { %v3603_v57 = vpop.eup %3602  ;;  %3622 = vpow2.f32 %v3127_v45  ;;  %v3126_v59 = vmul.f32 -1.442695, %v4607_v52  ;;  %v421_v2 = vmul.f32 %v3601_v54, %v4551_v55  ;;  %v3519_v45 = vld [vmem:[#allocation9 + $0x100] ss:$40 sps:$4 sm:$0xff]  }
 0x16e   :  { %v3605_v60 = vpop.eup %3604  ;;  %v424_v63 = vmul.f32 %v3603_v57, %v4555_v58  ;;  %3624 = vpow2.f32 %v3125_v50  ;;  %v3537_v50 = vld [vmem:[#allocation9 + $0x108] ss:$40 sps:$4 sm:$0xff]  }
 0x16f   :  { %v3607_v0 = vpop.eup %3606  ;;  %v422_v51 = vmul.f32 %v3605_v60, %v4559_v61  ;;  %3626 = vpow2.f32 %v3128_v56  ;;  %v3530_v61 = vld [vmem:[#allocation9 + $0x6c] ss:$40 sps:$4 sm:$0xff]  }
 0x170   :  { %v3609_v4 = vpop.eup %3608  ;;  %v4615_v5 = vpack.c.bf16 %v424_v63, %v423_v62  ;;  %v383_v7 = vadd.f32 1.0, %v3607_v0  ;;  %3628 = vpow2.f32 %v3126_v59  ;;  %v3525_v63 = vld [vmem:[#allocation9 + $0x150] ss:$40 sps:$4 sm:$0xff]   ;;  %v3545_v0 = vld [vmem:[#allocation9 + $0x15c] ss:$40 sps:$4 sm:$0xff]  }
 0x171   :  { %v3611_v10 = vpop.eup %3610  ;;  %v4617_v11 = vpack.c.bf16 %v422_v51, %v421_v2  ;;  %v381_v12 = vadd.f32 1.0, %v3609_v4  ;;  %v3533_v51 = vld [vmem:[#allocation9 + $0x1a4] ss:$40 sps:$4 sm:$0xff]   ;;  %v3543_v4 = vld [vmem:[#allocation9 + $0x158] ss:$40 sps:$4 sm:$0xff]  }
 0x172   :  { %v3613_v13 = vpop.eup %3612  ;;  %3630 = vrcp.f32 %v383_v7  ;;  %v384_v58 = vadd.f32 1.0, %v3611_v10  ;;  %v3546_v10 = vld [vmem:[#allocation9 + $0x1a8] ss:$40 sps:$4 sm:$0xff]  }
 0x173   :  { %v3615_v15 = vpop.eup %3614  ;;  %3632 = vrcp.f32 %v381_v12  ;;  %v382_v55 = vadd.f32 1.0, %v3613_v13  ;;  %1012 = vmatmul.mubr.bf16.vlgmr.msra.gmra.mrb[0].mxu1 %v4617_v11  ;;  %1125 = vmatmul.mubr.bf16.vlgmr.msra.gmra.mrb[16].mxu0 %v4617_v11 }
 0x174   :  { %v3617_v16 = vpop.eup %3616  ;;  %3634 = vrcp.f32 %v384_v58  ;;  %1206 = vmatpush1.bf16.msra.mxu1 %v3510_v8  ;;  %1021 = vmatprep.mubr.bf16.mxu1 %v4436_v48  ;;  %v427_v23 = vmul.f32 %v3615_v15, %v4564_v1  ;;  %v3516_v1 = vld [vmem:[#allocation9 + $0xb0] ss:$40 sps:$4 sm:$0xff]   ;;  %v3542_v8 = vld [vmem:[#allocation9 + $0x1f4] ss:$40 sps:$4 sm:$0xff]  }
 0x175   :  { %v3619_v19 = vpop.eup %3618  ;;  %3636 = vrcp.f32 %v382_v55  ;;  %1134 = vmatprep.mubr.bf16.mxu0 %v4436_v48  ;;  %1207 = vmatprep.subr.bf16.mxu1 %v3515_v53  ;;  %v425_v28 = vmul.f32 %v3617_v16, %v4567_v3  ;;  %v3534_v3 = vld [vmem:[#allocation9 + $0xb8] ss:$40 sps:$4 sm:$0xff]  }
 0x176   :  { %v3621_v21 = vpop.eup %3620  ;;  %v428_v24 = vmul.f32 %v3619_v19, %v4571_v6  ;;  %1319 = vmatpush1.bf16.msra.mxu0 %v3522_v14  ;;  %v3536_v6 = vld [vmem:[#allocation9 + $0xbc] ss:$40 sps:$4 sm:$0xff]   ;;  %v3540_v55 = vld [vmem:[#allocation9 + $0x1f0] ss:$40 sps:$4 sm:$0xff]  }
 0x177   :  { %v3623_v27 = vpop.eup %3622  ;;  %v426_v30 = vmul.f32 %v3621_v21, %v4575_v9  ;;  %1320 = vmatprep.subr.bf16.mxu0 %v3530_v61  ;;  %v3554_v61 = vld [vmem:[#allocation9 + $0x1fc] ss:$40 sps:$4 sm:$0xff]   ;;  %v3552_v19 = vld [vmem:[#allocation9 + $0x1f8] ss:$40 sps:$4 sm:$0xff]  }
 0x178   :  { %v3625_v31 = vpop.eup %3624  ;;  %v4627_v32 = vpack.c.bf16 %v428_v24, %v427_v23  ;;  %v387_v33 = vadd.f32 1.0, %v3623_v27  ;;  %1208 = vmatpush1.bf16.msra.mxu1 %v3513_v17  ;;  %v3551_v17 = vld [vmem:[#allocation9 + $0x244] ss:$40 sps:$4 sm:$0xff]   ;;  %v3563_v21 = vld [vmem:[#allocation9 + $0x74] ss:$40 sps:$4 sm:$0xff]  }
 0x179   :  { %v3627_v34 = vpop.eup %3626  ;;  %v4629_v35 = vpack.c.bf16 %v426_v30, %v425_v28  ;;  %v385_v36 = vadd.f32 1.0, %v3625_v31  ;;  %1209 = vmatprep.subr.bf16.mxu1 %v3518_v20  ;;  %v3558_v20 = vld [vmem:[#allocation9 + $0x20] ss:$40 sps:$4 sm:$0xff]   ;;  %v3561_v23 = vld [vmem:[#allocation9 + $0x70] ss:$40 sps:$4 sm:$0xff]  }
 0x17a   :  { %v3629_v37 = vpop.eup %3628  ;;  %3638 = vrcp.f32 %v387_v33  ;;  %v388_v39 = vadd.f32 1.0, %v3627_v34  ;;  %1321 = vmatpush1.bf16.msra.mxu0 %v3528_v25  ;;  %v3566_v24 = vld [vmem:[#allocation9 + $0xc4] ss:$40 sps:$4 sm:$0xff]   ;;  %v3564_v25 = vld [vmem:[#allocation9 + $0xc0] ss:$40 sps:$4 sm:$0xff]  }
 0x17b   :  { %3640 = vrcp.f32 %v385_v36  ;;  %v386_v9 = vadd.f32 1.0, %v3629_v37  ;;  %1022 = vmatmul.mubr.bf16.gmra.mrb[4].mxu1 %v4615_v5  ;;  %1135 = vmatmul.mubr.bf16.gmra.mrb[20].mxu0 %v4615_v5  ;;  %v3569_v27 = vld [vmem:[#allocation9 + $0x114] ss:$40 sps:$4 sm:$0xff]   ;;  %v3567_v28 = vld [vmem:[#allocation9 + $0x110] ss:$40 sps:$4 sm:$0xff]  }
 0x17c   :  { %v3631_v43 = vpop.eup %3630  ;;  %3642 = vrcp.f32 %v388_v39  ;;  %1031 = vmatprep.mubr.bf16.mxu1 %v4436_v48  ;;  %1144 = vmatprep.mubr.bf16.mxu0 %v4436_v48  ;;  %v3572_v30 = vld [vmem:[#allocation9 + $0x164] ss:$40 sps:$4 sm:$0xff]   ;;  %v3570_v31 = vld [vmem:[#allocation9 + $0x160] ss:$40 sps:$4 sm:$0xff]   ;;  %v3575_v33 = vld [vmem:[#allocation9 + $0x1b4] ss:$40 sps:$4 sm:$0xff]  }
 0x17d   :  { %v3633_v44 = vpop.eup %3632  ;;  %3644 = vrcp.f32 %v386_v9  ;;  %1210 = vmatpush1.bf16.msra.mxu1 %v3516_v1  ;;  %1322 = vmatprep.subr.bf16.mxu0 %v3536_v6  ;;  %v431_v56 = vmul.f32 %v3631_v43, %v4580_v18  ;;  %v3548_v18 = vld [vmem:[#allocation9 + $0x1ac] ss:$40 sps:$4 sm:$0xff]   ;;  %v3573_v34 = vld [vmem:[#allocation9 + $0x1b0] ss:$40 sps:$4 sm:$0xff]   ;;  %v3576_v1 = vld [vmem:[#allocation9 + $0x200] ss:$40 sps:$4 sm:$0xff]  }
 0x17e   :  { %v3635_v47 = vpop.eup %3634  ;;  %1211 = vmatprep.subr.bf16.mxu1 %v3521_v40  ;;  %1323 = vmatpush1.bf16.msra.mxu0 %v3534_v3  ;;  %v429_v59 = vmul.f32 %v3633_v44, %v4583_v22  ;;  %v3578_v36 = vld [vmem:[#allocation9 + $0x204] ss:$40 sps:$4 sm:$0xff]   ;;  %v3581_v6 = vld [vmem:[#allocation9 + $0x254] ss:$40 sps:$4 sm:$0xff]   ;;  %v3579_v37 = vld [vmem:[#allocation9 + $0x250] ss:$40 sps:$4 sm:$0xff]  }
 0x17f   :  { %v3637_v54 = vpop.eup %3636  ;;  %v432_v57 = vmul.f32 %v3635_v47, %v4587_v26  ;;  %1324 = vmatprep.subr.bf16.mxu0 %v3539_v41  ;;  %v525_v39 = vld [vmem:[#allocation11] sm:$0xff] }
 0x180   :  { %v430_v60 = vmul.f32 %v3637_v54, %v4591_v29  ;;  %v3531_v29 = vld [vmem:[#allocation9 + $0x1a0] ss:$40 sps:$4 sm:$0xff]  }
 0x181   :  { %v4639_v62 = vpack.c.bf16 %v432_v57, %v431_v56  ;;  %1212 = vmatpush1.bf16.msra.mxu1 %v3519_v45 }
 0x182   :  { %v4641_v2 = vpack.c.bf16 %v430_v60, %v429_v59  ;;  %1213 = vmatprep.subr.bf16.mxu1 %v3527_v49  ;;  %1325 = vmatpush1.bf16.msra.mxu0 %v3537_v50 }
 0x183   :  { %1032 = vmatmul.mubr.bf16.gmra.mrb[8].mxu1 %v4629_v35  ;;  %1145 = vmatmul.mubr.bf16.gmra.mrb[24].mxu0 %v4629_v35 }
 0x184   :  { %v3639_v26 = vpop.eup %3638  ;;  %1041 = vmatprep.mubr.bf16.mxu1 %v4436_v48  ;;  %1154 = vmatprep.mubr.bf16.mxu0 %v4436_v48 }
 0x185   :  { %v3641_v22 = vpop.eup %3640  ;;  %1214 = vmatpush1.bf16.msra.mxu1 %v3525_v63  ;;  %1326 = vmatprep.subr.bf16.mxu0 %v3545_v0  ;;  %v435_v53 = vmul.f32 %v3639_v26, %v4596_v38  ;;  %v3557_v38 = vld [vmem:[#allocation9 + $0x24c] ss:$40 sps:$4 sm:$0xff]  }
 0x186   :  { %v3643_v7 = vpop.eup %3642  ;;  %1215 = vmatprep.subr.bf16.mxu1 %v3533_v51  ;;  %1327 = vmatpush1.bf16.msra.mxu0 %v3543_v4  ;;  %v433_v58 = vmul.f32 %v3641_v22, %v4599_v42  ;;  %v3549_v42 = vld [vmem:[#allocation9 + $0x240] ss:$40 sps:$4 sm:$0xff]  }
 0x187   :  { %v3645_v12 = vpop.eup %3644  ;;  %v436_v13 = vmul.f32 %v3643_v7, %v4603_v46  ;;  %1328 = vmatprep.subr.bf16.mxu0 %v3548_v18  ;;  %v3555_v46 = vld [vmem:[#allocation9 + $0x248] ss:$40 sps:$4 sm:$0xff]  }
 0x188   :  { %v434_v14 = vmul.f32 %v3645_v12, %v4607_v52  ;;  %v3560_v52 = vld [vmem:[#allocation9 + $0x24] ss:$40 sps:$4 sm:$0xff]  }
 0x189   :  { %v4651_v15 = vpack.c.bf16 %v436_v13, %v435_v53  ;;  %1216 = vmatpush1.bf16.msra.mxu1 %v3531_v29 }
 0x18a   :  { %v4653_v16 = vpack.c.bf16 %v434_v14, %v433_v58  ;;  %1217 = vmatprep.subr.bf16.mxu1 %v3542_v8  ;;  %1329 = vmatpush1.bf16.msra.mxu0 %v3546_v10 }
 0x18b   :  { %1042 = vmatmul.mubr.bf16.gmra.mrb[12].mxu1 %v4627_v32  ;;  %1155 = vmatmul.mubr.bf16.gmra.mrb[28].mxu0 %v4627_v32 }
 0x18c   :  { %1051 = vmatprep.mubr.bf16.mxu1 %v4436_v48  ;;  %1164 = vmatprep.mubr.bf16.mxu0 %v4436_v48 }
 0x18d   :  { %1218 = vmatpush1.bf16.msra.mxu1 %v3540_v55  ;;  %1330 = vmatprep.subr.bf16.mxu0 %v3554_v61 }
 0x18e   :  { %1219 = vmatprep.subr.bf16.mxu1 %v3551_v17  ;;  %1331 = vmatpush1.bf16.msra.mxu0 %v3552_v19 }
 0x18f   :  { %1332 = vmatprep.subr.bf16.mxu0 %v3557_v38 }
 0x191   :  { %1220 = vmatpush1.bf16.msra.mxu1 %v3549_v42 }
 0x192   :  { %1333 = vmatpush1.bf16.msra.mxu0 %v3555_v46  ;;  %3417 = vmatprep.subr.bf16.mxu1 %v3560_v52 }
 0x193   :  { %1052 = vmatmul.mubr.bf16.gmra.mrb[16].mxu1 %v4641_v2  ;;  %1165 = vmatmul.mubr.bf16.gmra.mrb[32].mxu0 %v4641_v2 }
 0x194   :  { %1061 = vmatprep.mubr.bf16.mxu1 %v4436_v48  ;;  %1174 = vmatprep.mubr.bf16.mxu0 %v4436_v48 }
 0x195   :  { %1431 = vmatprep.subr.bf16.mxu0 %v3560_v52 }
 0x19b   :  { %1062 = vmatmul.mubr.bf16.gmra.mrb[20].mxu1 %v4639_v62  ;;  %1175 = vmatmul.mubr.bf16.gmra.mrb[36].mxu0 %v4639_v62 }
 0x19c   :  { %1071 = vmatprep.mubr.bf16.mxu1 %v4436_v48  ;;  %1184 = vmatprep.mubr.bf16.mxu0 %v4436_v48 }
 0x1a3   :  { %1072 = vmatmul.mubr.bf16.gmra.mrb[24].mxu1 %v4653_v16  ;;  %1185 = vmatmul.mubr.bf16.gmra.mrb[40].mxu0 %v4653_v16 }
 0x1a4   :  { %1081 = vmatprep.mubr.bf16.mxu1 %v4436_v48  ;;  %1194 = vmatprep.mubr.bf16.mxu0 %v4436_v48 }
 0x1ab   :  { %1082 = vmatmul.mubr.bf16.gmra.mrb[28].mxu1 %v4651_v15  ;;  %1195 = vmatmul.mubr.bf16.gmra.mrb[44].mxu0 %v4651_v15 }
 0x1ac   :  { %1237 = vmatprep.mubr.bf16.mxu1 %v4436_v48  ;;  %1350 = vmatprep.mubr.bf16.mxu0 %v4436_v48 }
 0x1b3   :  { %1238 = vmatmul.mubr.bf16.vlgmr.msra.gmra.mrb[32].mxu1 %v4617_v11  ;;  %1351 = vmatmul.mubr.bf16.vlgmr.msra.gmra.mrb[48].mxu0 %v4617_v11 }
 0x1b4   :  { %3425 = vmatpush1.bf16.msra.mxu1 %v3558_v20  ;;  %1247 = vmatprep.mubr.bf16.mxu1 %v4436_v48 }
 0x1b5   :  { %1360 = vmatprep.mubr.bf16.mxu0 %v4436_v48  ;;  %3418 = vmatprep.subr.bf16.mxu1 %v3563_v21 }
 0x1b6   :  { %1432 = vmatpush1.bf16.msra.mxu0 %v3558_v20 }
 0x1b7   :  { %1433 = vmatprep.subr.bf16.mxu0 %v3563_v21 }
 0x1b8   :  { %3426 = vmatpush1.bf16.msra.mxu1 %v3561_v23 }
 0x1b9   :  { %3419 = vmatprep.subr.bf16.mxu1 %v3566_v24 }
 0x1ba   :  { %1434 = vmatpush1.bf16.msra.mxu0 %v3561_v23 }
 0x1bb   :  { %1248 = vmatmul.mubr.bf16.gmra.mrb[36].mxu1 %v4615_v5  ;;  %1361 = vmatmul.mubr.bf16.gmra.mrb[52].mxu0 %v4615_v5 }
 0x1bc   :  { %1257 = vmatprep.mubr.bf16.mxu1 %v4436_v48  ;;  %1370 = vmatprep.mubr.bf16.mxu0 %v4436_v48 }
 0x1bd   :  { %3427 = vmatpush1.bf16.msra.mxu1 %v3564_v25  ;;  %1435 = vmatprep.subr.bf16.mxu0 %v3566_v24 }
 0x1be   :  { %3420 = vmatprep.subr.bf16.mxu1 %v3569_v27  ;;  %1436 = vmatpush1.bf16.msra.mxu0 %v3564_v25 }
 0x1bf   :  { %1437 = vmatprep.subr.bf16.mxu0 %v3569_v27 }
 0x1c1   :  { %3428 = vmatpush1.bf16.msra.mxu1 %v3567_v28 }
 0x1c2   :  { %3421 = vmatprep.subr.bf16.mxu1 %v3572_v30  ;;  %1438 = vmatpush1.bf16.msra.mxu0 %v3567_v28 }
 0x1c3   :  { %1258 = vmatmul.mubr.bf16.gmra.mrb[40].mxu1 %v4629_v35  ;;  %1371 = vmatmul.mubr.bf16.gmra.mrb[56].mxu0 %v4629_v35 }
 0x1c4   :  { %1267 = vmatprep.mubr.bf16.mxu1 %v4436_v48  ;;  %1380 = vmatprep.mubr.bf16.mxu0 %v4436_v48 }
 0x1c5   :  { %3429 = vmatpush1.bf16.msra.mxu1 %v3570_v31  ;;  %1439 = vmatprep.subr.bf16.mxu0 %v3572_v30 }
 0x1c6   :  { %3422 = vmatprep.subr.bf16.mxu1 %v3575_v33  ;;  %1440 = vmatpush1.bf16.msra.mxu0 %v3570_v31 }
 0x1c7   :  { %1441 = vmatprep.subr.bf16.mxu0 %v3575_v33 }
 0x1c9   :  { %3430 = vmatpush1.bf16.msra.mxu1 %v3573_v34 }
 0x1ca   :  { %3423 = vmatprep.subr.bf16.mxu1 %v3578_v36  ;;  %1442 = vmatpush1.bf16.msra.mxu0 %v3573_v34 }
 0x1cb   :  { %1268 = vmatmul.mubr.bf16.gmra.mrb[44].mxu1 %v4627_v32  ;;  %1381 = vmatmul.mubr.bf16.gmra.mrb[60].mxu0 %v4627_v32 }
 0x1cc   :  { %1277 = vmatprep.mubr.bf16.mxu1 %v4436_v48  ;;  %1390 = vmatprep.mubr.bf16.mxu0 %v4436_v48 }
 0x1cd   :  { %3431 = vmatpush1.bf16.msra.mxu1 %v3576_v1  ;;  %1443 = vmatprep.subr.bf16.mxu0 %v3578_v36 }
 0x1ce   :  { %3424 = vmatprep.subr.bf16.mxu1 %v3581_v6  ;;  %1444 = vmatpush1.bf16.msra.mxu0 %v3576_v1 }
 0x1cf   :  { %1445 = vmatprep.subr.bf16.mxu0 %v3581_v6 }
 0x1d1   :  { %3432 = vmatpush1.bf16.msra.mxu1 %v3579_v37 }
 0x1d2   :  { %1446 = vmatpush1.bf16.msra.mxu0 %v3579_v37 }
 0x1d3   :  { %1278 = vmatmul.mubr.bf16.gmra.mrb[48].mxu1 %v4641_v2  ;;  %1391 = vmatmul.mubr.bf16.gmra.mrb[64].mxu0 %v4641_v2 }
 0x1d4   :  { %1287 = vmatprep.mubr.bf16.mxu1 %v4436_v48  ;;  %1400 = vmatprep.mubr.bf16.mxu0 %v4436_v48 }
 0x1db   :  { %1288 = vmatmul.mubr.bf16.gmra.mrb[52].mxu1 %v4639_v62  ;;  %1401 = vmatmul.mubr.bf16.gmra.mrb[68].mxu0 %v4639_v62 }
 0x1dc   :  { %1297 = vmatprep.mubr.bf16.mxu1 %v4436_v48  ;;  %1410 = vmatprep.mubr.bf16.mxu0 %v4436_v48 }
 0x1e3   :  { %1298 = vmatmul.mubr.bf16.gmra.mrb[56].mxu1 %v4653_v16  ;;  %1411 = vmatmul.mubr.bf16.gmra.mrb[72].mxu0 %v4653_v16 }
 0x1e4   :  { %1307 = vmatprep.mubr.bf16.mxu1 %v4436_v48  ;;  %1420 = vmatprep.mubr.bf16.mxu0 %v4436_v48 }
 0x1eb   :  { %1308 = vmatmul.mubr.bf16.gmra.mrb[60].mxu1 %v4651_v15  ;;  %1421 = vmatmul.mubr.bf16.gmra.mrb[76].mxu0 %v4651_v15 }
 0x1ec   :  { %1463 = vmatprep.mubr.bf16.mxu0 %v4436_v48  ;;  %1483 = vmatprep.mubr.bf16.mxu1 %v4436_v48 }
 0x1f3   :  { %1464 = vmatmul.mubr.bf16.vlgmr.msra.gmra.mrb[80].mxu0 %v4617_v11  ;;  %1484 = vmatmul.mubr.bf16.vlgmr.msra.gmra.mrb[64].mxu1 %v4629_v35  ;;  %v529_v11 = vlaneseq }
 0x1f4   :  { %1473 = vmatprep.mubr.bf16.mxu0 %v4436_v48  ;;  %1493 = vmatprep.mubr.bf16.mxu1 %v4436_v48 }
 0x1fb   :  { %1474 = vmatmul.mubr.bf16.gmra.mrb[84].mxu0 %v4615_v5  ;;  %1494 = vmatmul.mubr.bf16.gmra.mrb[68].mxu1 %v4627_v32  ;;  %v4721_v5 = vshrl.u32 %v529_v11, 7 }
 0x1fc   :  { %1503 = vmatprep.mubr.bf16.mxu1 %v4436_v48 }
 0x1fd   :  { %6258 = vst [vmem:[#allocation17_spill] sm:$0xff] %v4721_v5  ;;  %v6243_v32 = vsub.s32 0, %v4721_v5  ;;  %v539_v35 = vsub.s32 2, %v4721_v5  ;;  %v6242_v40 = vsub.s32 1, %v4721_v5  ;;  %v543_v3 = vsub.s32 3, %v4721_v5 }
 0x1ff   :  { %v4729_v9 = vrot.slane %v525_v39, %v6243_v32  ;;  %v4731_v41 = vrot.slane %v525_v39, %v539_v35  ;;  %v4737_v43 = vrot.slane %v525_v39, %v543_v3 }
 0x203   :  { %1504 = vmatmul.mubr.bf16.gmra.mrb[72].mxu1 %v4641_v2 }
 0x204   :  { %1513 = vmatprep.mubr.bf16.mxu1 %v4436_v48 }
 0x20b   :  { %1514 = vmatmul.mubr.bf16.gmra.mrb[76].mxu1 %v4639_v62 }
 0x20c   :  { %1523 = vmatprep.mubr.bf16.mxu1 %v4436_v48 }
 0x213   :  { %1524 = vmatmul.mubr.bf16.gmra.mrb[80].mxu1 %v4653_v16 }
 0x214   :  { %1533 = vmatprep.mubr.bf16.mxu1 %v4436_v48  ;;  %v4735_v48 = vrot.slane %v525_v39, %v6242_v40 }
 0x21b   :  { %1534 = vmatmul.mubr.bf16.gmra.mrb[84].mxu1 %v4651_v15 }
 0x246   :  { %v1013_v44 = vpop.f32.mrb[0].mxu1  ;;  %v1126_v45 = vpop.f32.mrb[16].mxu0 }
 0x247   :  { %v4740_v47 = vadd.f32 %v1013_v44, %v4729_v9  ;;  %v4743_v49 = vadd.f32 %v1126_v45, %v4731_v41  ;;  %v1015_v50 = vpop.f32.mrb[1].mxu1  ;;  %v1128_v54 = vpop.f32.mrb[17].mxu0 }
 0x248   :  { %v4746_v56 = vadd.f32 %v1015_v50, %v4735_v48  ;;  %v4749_v57 = vadd.f32 %v1128_v54, %v4737_v43  ;;  %v1017_v59 = vpop.f32.mrb[2].mxu1  ;;  %v1130_v60 = vpop.f32.mrb[18].mxu0 }
 0x249   :  { %v3209_v62 = vmul.f32 -1.442695, %v4740_v47  ;;  %v3211_v63 = vmul.f32 -1.442695, %v4743_v49  ;;  %v4754_v0 = vadd.f32 %v1017_v59, %v4729_v9  ;;  %v4757_v2 = vadd.f32 %v1130_v60, %v4731_v41  ;;  %v1019_v51 = vpop.f32.mrb[3].mxu1  ;;  %v1132_v4 = vpop.f32.mrb[19].mxu0 }
 0x24a   :  { %v3210_v18 = vmul.f32 -1.442695, %v4746_v56  ;;  %v3212_v26 = vmul.f32 -1.442695, %v4749_v57  ;;  %v4762_v22 = vadd.f32 %v1019_v51, %v4735_v48  ;;  %v4765_v29 = vadd.f32 %v1132_v4, %v4737_v43 }
 0x24b   :  { %3646 = vpow2.f32 %v3209_v62  ;;  %v3219_v7 = vmul.f32 -1.442695, %v4754_v0  ;;  %v3221_v8 = vmul.f32 -1.442695, %v4757_v2 }
 0x24c   :  { %3648 = vpow2.f32 %v3211_v63  ;;  %v3220_v10 = vmul.f32 -1.442695, %v4762_v22  ;;  %v3222_v12 = vmul.f32 -1.442695, %v4765_v29 }
 0x24d   :  { %3650 = vpow2.f32 %v3210_v18 }
 0x24e   :  { %3652 = vpow2.f32 %v3212_v26  ;;  %v1023_v53 = vpop.f32.mrb[4].mxu1  ;;  %v1136_v13 = vpop.f32.mrb[20].mxu0 }
 0x24f   :  { %3654 = vpow2.f32 %v3219_v7  ;;  %v4772_v58 = vadd.f32 %v1023_v53, %v4729_v9  ;;  %v4775_v14 = vadd.f32 %v1136_v13, %v4731_v41  ;;  %v1025_v15 = vpop.f32.mrb[5].mxu1  ;;  %v1138_v55 = vpop.f32.mrb[21].mxu0 }
 0x250   :  { %3656 = vpow2.f32 %v3221_v8  ;;  %v4778_v61 = vadd.f32 %v1025_v15, %v4735_v48  ;;  %v4781_v16 = vadd.f32 %v1138_v55, %v4737_v43  ;;  %v1027_v17 = vpop.f32.mrb[6].mxu1  ;;  %v1140_v19 = vpop.f32.mrb[22].mxu0 }
 0x251   :  { %3658 = vpow2.f32 %v3220_v10  ;;  %v3229_v38 = vmul.f32 -1.442695, %v4772_v58  ;;  %v3231_v42 = vmul.f32 -1.442695, %v4775_v14  ;;  %v4786_v46 = vadd.f32 %v1027_v17, %v4729_v9  ;;  %v1029_v52 = vpop.f32.mrb[7].mxu1  ;;  %v1142_v20 = vpop.f32.mrb[23].mxu0 }
 0x252   :  { %3660 = vpow2.f32 %v3222_v12  ;;  %v3230_v21 = vmul.f32 -1.442695, %v4778_v61  ;;  %v3232_v23 = vmul.f32 -1.442695, %v4781_v16  ;;  %v4792_v54 = vadd.f32 %v1140_v19, %v4731_v41 }
 0x253   :  { %3662 = vpow2.f32 %v3229_v38  ;;  %v3239_v24 = vmul.f32 -1.442695, %v4786_v46  ;;  %v4795_v63 = vadd.f32 %v1029_v52, %v4735_v48  ;;  %v4799_v12 = vadd.f32 %v1142_v20, %v4737_v43 }
 0x254   :  { %3664 = vpow2.f32 %v3231_v42  ;;  %v3241_v10 = vmul.f32 -1.442695, %v4792_v54 }
 0x255   :  { %v3647_v25 = vpop.eup %3646  ;;  %3666 = vpow2.f32 %v3230_v21  ;;  %v3240_v55 = vmul.f32 -1.442695, %v4795_v63 }
 0x256   :  { %v3649_v27 = vpop.eup %3648  ;;  %v2024_v28 = vadd.f32 1.0, %v3647_v25  ;;  %3668 = vpow2.f32 %v3232_v23  ;;  %v1033_v30 = vpop.f32.mrb[8].mxu1 }
 0x257   :  { %v1146_v31 = vpop.f32.mrb[24].mxu0  ;;  %v3651_v33 = vpop.eup %3650  ;;  %v2026_v34 = vadd.f32 1.0, %v3649_v27  ;;  %3670 = vpow2.f32 %v3239_v24  ;;  %v4803_v17 = vadd.f32 %v1033_v30, %v4729_v9 }
 0x258   :  { %v1035_v36 = vpop.f32.mrb[9].mxu1  ;;  %v1148_v1 = vpop.f32.mrb[25].mxu0  ;;  %3672 = vrcp.f32 %v2024_v28  ;;  %v2025_v37 = vadd.f32 1.0, %v3651_v33  ;;  %v4808_v21 = vadd.f32 %v1146_v31, %v4731_v41 }
 0x259   :  { %v3653_v6 = vpop.eup %3652  ;;  %v1037_v11 = vpop.f32.mrb[10].mxu1  ;;  %3674 = vrcp.f32 %v2026_v34  ;;  %v4811_v20 = vadd.f32 %v1035_v36, %v4735_v48  ;;  %v4818_v28 = vadd.f32 %v1148_v1, %v4737_v43 }
 0x25a   :  { %v1150_v35 = vpop.f32.mrb[26].mxu0  ;;  %v3655_v39 = vpop.eup %3654  ;;  %v2027_v3 = vadd.f32 1.0, %v3653_v6  ;;  %3676 = vrcp.f32 %v2025_v37  ;;  %v4821_v30 = vadd.f32 %v1037_v11, %v4729_v9  ;;  %v3242_v11 = vmul.f32 -1.442695, %v4799_v12 }
 0x25b   :  { %v1039_v44 = vpop.f32.mrb[11].mxu1  ;;  %v3657_v45 = vpop.eup %3656  ;;  %v2034_v50 = vadd.f32 1.0, %v3655_v39  ;;  %v4828_v6 = vadd.f32 %v1150_v35, %v4731_v41  ;;  %v3250_v35 = vmul.f32 -1.442695, %v4811_v20 }
 0x25c   :  { %v1152_v59 = vpop.f32.mrb[27].mxu0  ;;  %v3659_v60 = vpop.eup %3658  ;;  %3678 = vrcp.f32 %v2027_v3  ;;  %v2036_v62 = vadd.f32 1.0, %v3657_v45  ;;  %v4831_v37 = vadd.f32 %v1039_v44, %v4735_v48  ;;  %v3249_v45 = vmul.f32 -1.442695, %v4803_v17 }
 0x25d   :  { %v3661_v51 = vpop.eup %3660  ;;  %3680 = vrcp.f32 %v2034_v50  ;;  %v2035_v4 = vadd.f32 1.0, %v3659_v60  ;;  %v3251_v50 = vmul.f32 -1.442695, %v4808_v21  ;;  %v3259_v44 = vmul.f32 -1.442695, %v4821_v30 }
 0x25e   :  { %v3663_v18 = vpop.eup %3662  ;;  %3682 = vrcp.f32 %v2036_v62  ;;  %v2037_v26 = vadd.f32 1.0, %v3661_v51  ;;  %v1043_v53 = vpop.f32.mrb[12].mxu1  ;;  %v3252_v62 = vmul.f32 -1.442695, %v4818_v28 }
 0x25f   :  { %v3665_v7 = vpop.eup %3664  ;;  %3684 = vrcp.f32 %v2035_v4  ;;  %v2044_v8 = vadd.f32 1.0, %v3663_v18  ;;  %v1156_v19 = vpop.f32.mrb[28].mxu0  ;;  %v3261_v4 = vmul.f32 -1.442695, %v4828_v6  ;;  %v3260_v18 = vmul.f32 -1.442695, %v4831_v37 }
 0x260   :  { %v3667_v13 = vpop.eup %3666  ;;  %3686 = vrcp.f32 %v2037_v26  ;;  %v2046_v15 = vadd.f32 1.0, %v3665_v7  ;;  %v4805_v38 = vpop.f32.mrb[13].mxu1  ;;  %v4844_v26 = vadd.f32 %v1152_v59, %v4737_v43 }
 0x261   :  { %v3669_v42 = vpop.eup %3668  ;;  %3688 = vrcp.f32 %v2044_v8  ;;  %v2045_v52 = vadd.f32 1.0, %v3667_v13  ;;  %v4813_v23 = vpop.f32.mrb[29].mxu0 }
 0x262   :  { %v4815_v24 = vpop.f32.mrb[14].mxu1  ;;  %v3671_v25 = vpop.eup %3670  ;;  %3690 = vrcp.f32 %v2046_v15  ;;  %v2047_v27 = vadd.f32 1.0, %v3669_v42  ;;  %v4853_v42 = vadd.f32 %v1043_v53, %v4729_v9 }
 0x263   :  { %v4823_v33 = vpop.f32.mrb[30].mxu0  ;;  %v4825_v31 = vpop.f32.mrb[15].mxu1  ;;  %3692 = vrcp.f32 %v2045_v52  ;;  %v2054_v36 = vadd.f32 1.0, %v3671_v25 }
 0x264   :  { %v3673_v34 = vpop.eup %3672  ;;  %v4833_v39 = vpop.f32.mrb[31].mxu0  ;;  %3694 = vrcp.f32 %v2047_v27 }
 0x265   :  { %v3675_v1 = vpop.eup %3674  ;;  %3696 = vrcp.f32 %v2054_v36  ;;  %v2504_v13 = vmul.f32 %v3673_v34, %v4740_v47  ;;  %v4862_v36 = vadd.f32 %v1156_v19, %v4731_v41 }
 0x266   :  { %v3677_v3 = vpop.eup %3676  ;;  %3698 = vpow2.f32 %v3241_v10  ;;  %v4846_v7 = vpop.f32.mrb[16].mxu1  ;;  %v2506_v59 = vmul.f32 %v3675_v1, %v4743_v49 }
 0x267   :  { %v3679_v60 = vpop.eup %3678  ;;  %3700 = vpow2.f32 %v3240_v55  ;;  %v4848_v8 = vpop.f32.mrb[32].mxu0  ;;  %v2505_v53 = vmul.f32 %v3677_v3, %v4746_v56  ;;  %v3262_v56 = vmul.f32 -1.442695, %v4844_v26 }
 0x268   :  { %v3681_v51 = vpop.eup %3680  ;;  %3702 = vpow2.f32 %v3242_v11  ;;  %v4855_v55 = vpop.f32.mrb[17].mxu1  ;;  %v2507_v1 = vmul.f32 %v3679_v60, %v4749_v57 }
 0x269   :  { %v3683_v10 = vpop.eup %3682  ;;  %v2514_v15 = vmul.f32 %v3681_v51, %v4754_v0  ;;  %v4857_v52 = vpop.f32.mrb[33].mxu0  ;;  %3704 = vpow2.f32 %v3249_v45 }
 0x26a   :  { %v3685_v25 = vpop.eup %3684  ;;  %v2516_v27 = vmul.f32 %v3683_v10, %v4757_v2  ;;  %v4864_v47 = vpop.f32.mrb[18].mxu1  ;;  %3706 = vpow2.f32 %v3251_v50 }
 0x26b   :  { %v4866_v0 = vpop.f32.mrb[34].mxu0  ;;  %v3687_v34 = vpop.eup %3686  ;;  %v2667_v11 = vadd.f32 %v2514_v15, %v2504_v13  ;;  %v2515_v51 = vmul.f32 %v3685_v25, %v4762_v22  ;;  %3708 = vpow2.f32 %v3250_v35  ;;  %v3269_v13 = vmul.f32 -1.442695, %v4853_v42 }
 0x26c   :  { %v4870_v40 = vpop.f32.mrb[19].mxu1  ;;  %v4872_v49 = vpop.f32.mrb[35].mxu0  ;;  %v2693_v19 = vadd.f32 %v2516_v27, %v2506_v59  ;;  %v2517_v45 = vmul.f32 %v3687_v34, %v4765_v29  ;;  %3710 = vpow2.f32 %v3252_v62  ;;  %v3271_v29 = vmul.f32 -1.442695, %v4862_v36 }
 0x26d   :  { %v3689_v2 = vpop.eup %3688  ;;  %v2680_v32 = vadd.f32 %v2515_v51, %v2505_v53  ;;  %3712 = vpow2.f32 %v3259_v44 }
 0x26e   :  { %v3691_v10 = vpop.eup %3690  ;;  %v2524_v5 = vmul.f32 %v3689_v2, %v4772_v58  ;;  %v2706_v3 = vadd.f32 %v2517_v45, %v2507_v1  ;;  %3714 = vpow2.f32 %v3261_v4  ;;  %v4885_v62 = vpop.f32.mrb[20].mxu1 }
 0x26f   :  { %v3693_v22 = vpop.eup %3692  ;;  %v2526_v50 = vmul.f32 %v3691_v10, %v4775_v14  ;;  %3716 = vpow2.f32 %v3260_v18  ;;  %v4887_v59 = vpop.f32.mrb[36].mxu0 }
 0x270   :  { %v3695_v15 = vpop.eup %3694  ;;  %v2668_v57 = vadd.f32 %v2667_v11, %v2524_v5  ;;  %v2525_v60 = vmul.f32 %v3693_v22, %v4778_v61  ;;  %3718 = vpow2.f32 %v3262_v56  ;;  %v4892_v61 = vpop.f32.mrb[21].mxu1  ;;  %v4910_v56 = vadd.f32 %v4805_v38, %v4735_v48 }
 0x271   :  { %v3697_v35 = vpop.eup %3696  ;;  %v4882_v25 = vadd.f32 %v2693_v19, %v2526_v50  ;;  %v2527_v58 = vmul.f32 %v3695_v15, %v4781_v16  ;;  %v4894_v4 = vpop.f32.mrb[37].mxu0  ;;  %3720 = vpow2.f32 %v3269_v13 }
 0x272   :  { %v3699_v14 = vpop.eup %3698  ;;  %v4889_v44 = vadd.f32 %v2680_v32, %v2525_v60  ;;  %v2534_v5 = vmul.f32 %v3697_v35, %v4786_v46  ;;  %v4898_v16 = vpop.f32.mrb[22].mxu1  ;;  %3722 = vpow2.f32 %v3271_v29  ;;  %v4437_v60 = vmov 1983009808  }
 0x273   :  { %v3701_v27 = vpop.eup %3700  ;;  %v4896_v34 = vadd.f32 %v2706_v3, %v2527_v58  ;;  %v2056_v53 = vadd.f32 1.0, %v3699_v14  ;;  %v4900_v18 = vpop.f32.mrb[38].mxu0  ;;  %v4912_v29 = vunpack.c.l.s4 %v4437_v60  ;;  %v4953_v60 = vadd.f32 %v4846_v7, %v4729_v9 }
 0x274   :  { %v3703_v11 = vpop.eup %3702  ;;  %v4902_v51 = vadd.f32 %v2668_v57, %v2534_v5  ;;  %v2055_v32 = vadd.f32 1.0, %v3701_v27  ;;  %v4904_v46 = vpop.f32.mrb[23].mxu1  ;;  %v3270_v5 = vmul.f32 -1.442695, %v4910_v56  ;;  %v4921_v27 = vadd.f32 %v4813_v23, %v4737_v43 }
 0x275   :  { %v4906_v2 = vpop.f32.mrb[39].mxu0  ;;  %v3705_v1 = vpop.eup %3704  ;;  %3724 = vrcp.f32 %v2056_v53  ;;  %v2057_v19 = vadd.f32 1.0, %v3703_v11 }
 0x276   :  { %v3707_v45 = vpop.eup %3706  ;;  %3726 = vrcp.f32 %v2055_v32  ;;  %v2064_v10 = vadd.f32 1.0, %v3705_v1  ;;  %v4914_v35 = vpop.f32.mrb[24].mxu1 }
 0x277   :  { %v3709_v22 = vpop.eup %3708  ;;  %3728 = vrcp.f32 %v2057_v19  ;;  %v2066_v3 = vadd.f32 1.0, %v3707_v45  ;;  %v4916_v58 = vpop.f32.mrb[40].mxu0  ;;  %v4929_v19 = vadd.f32 %v4815_v24, %v4729_v9  ;;  %v4933_v45 = vadd.f32 %v4823_v33, %v4731_v41 }
 0x278   :  { %v3711_v50 = vpop.eup %3710  ;;  %3730 = vrcp.f32 %v2064_v10  ;;  %v2065_v13 = vadd.f32 1.0, %v3709_v22  ;;  %v4923_v53 = vpop.f32.mrb[25].mxu1 }
 0x279   :  { %v3713_v15 = vpop.eup %3712  ;;  %3732 = vrcp.f32 %v2066_v3  ;;  %v2067_v57 = vadd.f32 1.0, %v3711_v50  ;;  %v4925_v11 = vpop.f32.mrb[41].mxu0  ;;  %6260 = vst [vmem:[#allocation19_spill] sm:$0xff] %v4933_v45  ;;  %v4941_v50 = vadd.f32 %v4825_v31, %v4735_v48  ;;  %v3281_v7 = vmul.f32 -1.442695, %v4933_v45 }
 0x27a   :  { %v3715_v14 = vpop.eup %3714  ;;  %3734 = vrcp.f32 %v2065_v13  ;;  %v2074_v38 = vadd.f32 1.0, %v3713_v15  ;;  %6259 = vst [vmem:[#allocation18_spill] sm:$0xff] %v4925_v11  ;;  %v4935_v10 = vpop.f32.mrb[26].mxu1  ;;  %v4945_v13 = vadd.f32 %v4833_v39, %v4737_v43  ;;  %v3272_v39 = vmul.f32 -1.442695, %v4921_v27 }
 0x27b   :  { %v3717_v32 = vpop.eup %3716  ;;  %3736 = vrcp.f32 %v2067_v57  ;;  %v2076_v1 = vadd.f32 1.0, %v3715_v14  ;;  %6261 = vst [vmem:[#allocation20_spill] sm:$0xff] %v4935_v10  ;;  %v4937_v22 = vpop.f32.mrb[42].mxu0  ;;  %v4957_v14 = vadd.f32 %v4848_v8, %v4731_v41 }
 0x27c   :  { %6262 = vst [vmem:[#allocation21_spill] sm:$0xff] %v4937_v22  ;;  %v3719_v23 = vpop.eup %3718  ;;  %3738 = vrcp.f32 %v2074_v38  ;;  %v2075_v3 = vadd.f32 1.0, %v3717_v32  ;;  %6263 = vst [vmem:[#allocation22_spill] sm:$0xff] %v4945_v13  ;;  %v4947_v24 = vpop.f32.mrb[27].mxu1  ;;  %v4962_v32 = vadd.f32 %v4855_v55, %v4735_v48  ;;  %v3289_v55 = vmul.f32 -1.442695, %v4953_v60 }
 0x27d   :  { %6264 = vst [vmem:[#allocation23_spill] sm:$0xff] %v4947_v24  ;;  %v4949_v15 = vpop.f32.mrb[43].mxu0  ;;  %v3721_v33 = vpop.eup %3720  ;;  %3740 = vrcp.f32 %v2076_v1  ;;  %v2077_v57 = vadd.f32 1.0, %v3719_v23  ;;  %6266 = vst [vmem:[#allocation25_spill] sm:$0xff] %v4957_v14  ;;  %v3279_v23 = vmul.f32 -1.442695, %v4929_v19 }
 0x27e   :  { %6265 = vst [vmem:[#allocation24_spill] sm:$0xff] %v4949_v15  ;;  %v3723_v31 = vpop.eup %3722  ;;  %3742 = vrcp.f32 %v2075_v3  ;;  %v2084_v38 = vadd.f32 1.0, %v3721_v33  ;;  %v3280_v3 = vmul.f32 -1.442695, %v4941_v50  ;;  %v3282_v33 = vmul.f32 -1.442695, %v4945_v13 }
 0x27f   :  { %v3725_v15 = vpop.eup %3724  ;;  %3744 = vrcp.f32 %v2077_v57  ;;  %v2086_v1 = vadd.f32 1.0, %v3723_v31  ;;  %v3291_v57 = vmul.f32 -1.442695, %v4957_v14  ;;  %v4972_v31 = vpop.f32.mrb[28].mxu1 }
 0x280   :  { %v3727_v24 = vpop.eup %3726  ;;  %v2536_v8 = vmul.f32 %v3725_v15, %v4792_v54  ;;  %3746 = vrcp.f32 %v2084_v38  ;;  %v4974_v11 = vpop.f32.mrb[44].mxu0  ;;  %v3290_v38 = vmul.f32 -1.442695, %v4962_v32 }
 0x281   :  { %v3729_v22 = vpop.eup %3728  ;;  %v2535_v10 = vmul.f32 %v3727_v24, %v4795_v63  ;;  %3748 = vrcp.f32 %v2086_v1  ;;  %6267 = vst [vmem:[#allocation26_spill] sm:$0xff] %v4974_v11  ;;  %v4979_v13 = vpop.f32.mrb[29].mxu1  ;;  %v4987_v11 = vadd.f32 %v4857_v52, %v4737_v43 }
 0x282   :  { %v3731_v45 = vpop.eup %3730  ;;  %v2695_v54 = vadd.f32 %v4882_v25, %v2536_v8  ;;  %v2537_v15 = vmul.f32 %v3729_v22, %v4799_v12  ;;  %3750 = vpow2.f32 %v3270_v5  ;;  %v4981_v63 = vpop.f32.mrb[45].mxu0 }
 0x283   :  { %v3733_v24 = vpop.eup %3732  ;;  %v2682_v1 = vadd.f32 %v4889_v44, %v2535_v10  ;;  %v2544_v14 = vmul.f32 %v3731_v45, %v4803_v17  ;;  %3752 = vpow2.f32 %v3272_v39  ;;  %v4989_v25 = vpop.f32.mrb[30].mxu1  ;;  %v4997_v44 = vadd.f32 %v4864_v47, %v4729_v9 }
 0x284   :  { %v4991_v12 = vpop.f32.mrb[46].mxu0  ;;  %v3735_v5 = vpop.eup %3734  ;;  %v2708_v22 = vadd.f32 %v4896_v34, %v2537_v15  ;;  %v2546_v8 = vmul.f32 %v3733_v24, %v4808_v21  ;;  %3754 = vpow2.f32 %v3279_v23  ;;  %v5007_v34 = vadd.f32 %v4866_v0, %v4731_v41 }
 0x285   :  { %v4999_v17 = vpop.f32.mrb[31].mxu1  ;;  %v5001_v45 = vpop.f32.mrb[47].mxu0  ;;  %v2670_v10 = vadd.f32 %v4902_v51, %v2544_v14  ;;  %v2545_v39 = vmul.f32 %v3735_v5, %v4811_v20  ;;  %3756 = vpow2.f32 %v3281_v7  ;;  %v5012_v47 = vadd.f32 %v4870_v40, %v4735_v48 }
 0x286   :  { %6268 = vst [vmem:[#allocation27_spill] sm:$0xff] %v5001_v45  ;;  %v3737_v52 = vpop.eup %3736  ;;  %v2696_v23 = vadd.f32 %v2695_v54, %v2546_v8  ;;  %3758 = vpow2.f32 %v3280_v3  ;;  %v3292_v20 = vmul.f32 -1.442695, %v4987_v11  ;;  %v3299_v54 = vmul.f32 -1.442695, %v4997_v44 }
 0x287   :  { %v3739_v21 = vpop.eup %3738  ;;  %v2547_v15 = vmul.f32 %v3737_v52, %v4818_v28  ;;  %v2683_v45 = vadd.f32 %v2682_v1, %v2545_v39  ;;  %3760 = vpow2.f32 %v3282_v33  ;;  %v3301_v40 = vmul.f32 -1.442695, %v5007_v34  ;;  %v5020_v1 = vpop.f32.mrb[32].mxu1 }
 0x288   :  { %v3741_v24 = vpop.eup %3740  ;;  %v2554_v51 = vmul.f32 %v3739_v21, %v4821_v30  ;;  %3762 = vpow2.f32 %v3289_v55  ;;  %v5022_v30 = vpop.f32.mrb[48].mxu0 }
 0x289   :  { %v3743_v14 = vpop.eup %3742  ;;  %v2709_v7 = vadd.f32 %v2708_v22, %v2547_v15  ;;  %v2556_v0 = vmul.f32 %v3741_v24, %v4828_v6  ;;  %3764 = vpow2.f32 %v3291_v57  ;;  %v3300_v6 = vmul.f32 -1.442695, %v5012_v47  ;;  %v5026_v55 = vpop.f32.mrb[33].mxu1 }
 0x28a   :  { %v3745_v28 = vpop.eup %3744  ;;  %v2671_v3 = vadd.f32 %v2670_v10, %v2554_v51  ;;  %v2555_v5 = vmul.f32 %v3743_v14, %v4831_v37  ;;  %3766 = vpow2.f32 %v3290_v38  ;;  %v5028_v52 = vpop.f32.mrb[49].mxu0  ;;  %v2951_v38 = vunpack.c.0.s8 %v4912_v29 }
 0x28b   :  { %v3747_v33 = vpop.eup %3746  ;;  %v2697_v8 = vadd.f32 %v2696_v23, %v2556_v0  ;;  %v2557_v22 = vmul.f32 %v3745_v28, %v4844_v26  ;;  %3768 = vpow2.f32 %v3292_v20  ;;  %v5033_v39 = vpop.f32.mrb[34].mxu1 }
 0x28c   :  { %v3749_v10 = vpop.eup %3748  ;;  %v5030_v37 = vadd.f32 %v2683_v45, %v2555_v5  ;;  %v2564_v57 = vmul.f32 %v3747_v33, %v4853_v42  ;;  %v5035_v21 = vpop.f32.mrb[50].mxu0  ;;  %3770 = vpow2.f32 %v3299_v54  ;;  %v5055_v54 = vadd.f32 %v4885_v62, %v4729_v9 }
 0x28d   :  { %6269 = vst [vmem:[#allocation28_spill] sm:$0xff] %v5035_v21  ;;  %v3751_v23 = vpop.eup %3750  ;;  %v5037_v15 = vadd.f32 %v2709_v7, %v2557_v22  ;;  %v2566_v26 = vmul.f32 %v3749_v10, %v4862_v36  ;;  %v5041_v24 = vpop.f32.mrb[35].mxu1  ;;  %3772 = vpow2.f32 %v3301_v40  ;;  %v5051_v36 = vadd.f32 %v4872_v49, %v4737_v43  ;;  %v6272_v40 = vld [vmem:[#allocation17_spill] sm:$0xff]  ;;  %v6291_v21 = vld [vmem:[#allocation19_spill] sm:$0xff] }
 0x28e   :  { %6270 = vst [vmem:[#allocation29_spill] sm:$0xff] %v5041_v24  ;;  %v5043_v51 = vpop.f32.mrb[51].mxu0  ;;  %v3753_v45 = vpop.eup %3752  ;;  %v5045_v14 = vadd.f32 %v2671_v3, %v2564_v57  ;;  %v2085_v42 = vadd.f32 1.0, %v3751_v23  ;;  %3774 = vpow2.f32 %v3300_v6  ;;  %v5058_v33 = vsub.s32 %v2951_v38, %v6272_v40 }
 0x28f   :  { %6271 = vst [vmem:[#allocation30_spill] sm:$0xff] %v5043_v51  ;;  %v3755_v20 = vpop.eup %3754  ;;  %v5047_v0 = vadd.f32 %v2697_v8, %v2566_v26  ;;  %v2087_v28 = vadd.f32 1.0, %v3753_v45  ;;  %v5062_v49 = vadd.f32 %v4887_v59, %v4731_v41  ;;  %v5065_v10 = vpop.f32.mrb[36].mxu1  ;;  %v5070_v26 = vmul.f32 -1.442695, %v5051_v36 }
 0x290   :  { %v3757_v29 = vpop.eup %3756  ;;  %3776 = vrcp.f32 %v2085_v42  ;;  %v2094_v7 = vadd.f32 1.0, %v3755_v20  ;;  %6273 = vst [vmem:[#allocation31_spill] sm:$0xff] %v5065_v10  ;;  %v5067_v57 = vpop.f32.mrb[52].mxu0  ;;  %v5076_v20 = vmul.f32 -1.442695, %v5055_v54 }
 0x291   :  { %v3759_v3 = vpop.eup %3758  ;;  %3778 = vrcp.f32 %v2087_v28  ;;  %v2096_v5 = vadd.f32 1.0, %v3757_v29  ;;  %6274 = vst [vmem:[#allocation32_spill] sm:$0xff] %v5067_v57  ;;  %v5073_v45 = vpop.f32.mrb[37].mxu1  ;;  %v5080_v28 = vadd.f32 %v4892_v61, %v4735_v48  ;;  %v3311_v61 = vmul.f32 -1.442695, %v5062_v49 }
 0x292   :  { %v3761_v8 = vpop.eup %3760  ;;  %3780 = vrcp.f32 %v2094_v7  ;;  %v2095_v22 = vadd.f32 1.0, %v3759_v3  ;;  %6275 = vst [vmem:[#allocation33_spill] sm:$0xff] %v5073_v45  ;;  %v5082_v29 = vpop.f32.mrb[53].mxu0 }
 0x293   :  { %v3763_v62 = vpop.eup %3762  ;;  %3782 = vrcp.f32 %v2096_v5  ;;  %v2097_v23 = vadd.f32 1.0, %v3761_v8  ;;  %6276 = vst [vmem:[#allocation34_spill] sm:$0xff] %v5082_v29  ;;  %v5084_v7 = vpop.f32.mrb[38].mxu1  ;;  %v5088_v8 = vadd.f32 %v4894_v4, %v4737_v43  ;;  %v5097_v29 = vadd.f32 %v4898_v16, %v4729_v9 }
 0x294   :  { %v3765_v42 = vpop.eup %3764  ;;  %3784 = vrcp.f32 %v2095_v22  ;;  %v2104_v59 = vadd.f32 1.0, %v3763_v62  ;;  %6277 = vst [vmem:[#allocation35_spill] sm:$0xff] %v5084_v7  ;;  %v5090_v22 = vpop.f32.mrb[54].mxu0  ;;  %v4438_v7 = vmov 0.0   ;;  %v3310_v16 = vmul.f32 -1.442695, %v5080_v28 }
 0x295   :  { %v3767_v3 = vpop.eup %3766  ;;  %3786 = vrcp.f32 %v2097_v23  ;;  %v2106_v5 = vadd.f32 1.0, %v3765_v42  ;;  %6278 = vst [vmem:[#allocation36_spill] sm:$0xff] %v5090_v22  ;;  %v5092_v62 = vpop.f32.mrb[39].mxu1  ;;  %92 = vst [vmem:[#allocation2 + $0x10] sm:$0xf] %v4438_v7  ;;  %v5103_v22 = vadd.f32 %v4900_v18, %v4731_v41  ;;  %v5112_v7 = vadd.f32 %v4906_v2, %v4737_v43 }
 0x296   :  { %6279 = vst [vmem:[#allocation37_spill] sm:$0xff] %v5092_v62  ;;  %v3769_v38 = vpop.eup %3768  ;;  %3788 = vrcp.f32 %v2104_v59  ;;  %v2105_v6 = vadd.f32 1.0, %v3767_v3  ;;  %v5099_v23 = vpop.f32.mrb[55].mxu0  ;;  %v5107_v59 = vadd.f32 %v4904_v46, %v4735_v48  ;;  %v5117_v18 = vadd.f32 %v4914_v35, %v4729_v9 }
 0x297   :  { %6280 = vst [vmem:[#allocation38_spill] sm:$0xff] %v5099_v23  ;;  %v3771_v42 = vpop.eup %3770  ;;  %3790 = vrcp.f32 %v2106_v5  ;;  %v2107_v4 = vadd.f32 1.0, %v3769_v38  ;;  %v3312_v5 = vmul.f32 -1.442695, %v5088_v8  ;;  %v5124_v2 = vpop.f32.mrb[40].mxu1 }
 0x298   :  { %v3773_v3 = vpop.eup %3772  ;;  %3792 = vrcp.f32 %v2105_v6  ;;  %v2114_v62 = vadd.f32 1.0, %v3771_v42  ;;  %v3319_v6 = vmul.f32 -1.442695, %v5097_v29  ;;  %v5122_v42 = vadd.f32 %v4916_v58, %v4731_v41  ;;  %6282 = vst [vmem:[#allocation40_spill] sm:$0xff] %v5124_v2  ;;  %v5126_v57 = vpop.f32.mrb[56].mxu0 }
 0x299   :  { %v3775_v23 = vpop.eup %3774  ;;  %3794 = vrcp.f32 %v2107_v4  ;;  %v2116_v38 = vadd.f32 1.0, %v3773_v3  ;;  %6283 = vst [vmem:[#allocation41_spill] sm:$0xff] %v5126_v57  ;;  %v3321_v35 = vmul.f32 -1.442695, %v5103_v22  ;;  %v3320_v10 = vmul.f32 -1.442695, %v5107_v59 }
 0x29a   :  { %v3777_v46 = vpop.eup %3776  ;;  %3796 = vrcp.f32 %v2114_v62  ;;  %v2115_v45 = vadd.f32 1.0, %v3775_v23  ;;  %6281 = vst [vmem:[#allocation39_spill] sm:$0xff] %v5122_v42  ;;  %v5131_v62 = vpop.f32.mrb[41].mxu1  ;;  %v3322_v2 = vmul.f32 -1.442695, %v5112_v7  ;;  %v5139_v57 = vadd.f32 %v4923_v53, %v4735_v48 }
 0x29b   :  { %v3779_v4 = vpop.eup %3778  ;;  %v2565_v3 = vmul.f32 %v3777_v46, %v4910_v56  ;;  %3798 = vrcp.f32 %v2116_v38  ;;  %6284 = vst [vmem:[#allocation42_spill] sm:$0xff] %v5131_v62  ;;  %v5133_v23 = vpop.f32.mrb[57].mxu0 }
 0x29c   :  { %6285 = vst [vmem:[#allocation43_spill] sm:$0xff] %v5133_v23  ;;  %v3781_v51 = vpop.eup %3780  ;;  %v2567_v58 = vmul.f32 %v3779_v4, %v4921_v27  ;;  %3800 = vrcp.f32 %v2115_v45  ;;  %6286 = vst [vmem:[#allocation44_spill] sm:$0xff] %v5139_v57  ;;  %v5141_v56 = vpop.f32.mrb[42].mxu1  ;;  %v3329_v27 = vmul.f32 -1.442695, %v5117_v18 }
 0x29d   :  { %6287 = vst [vmem:[#allocation45_spill] sm:$0xff] %v5141_v56  ;;  %v5143_v38 = vpop.f32.mrb[58].mxu0  ;;  %v3783_v46 = vpop.eup %3782  ;;  %v2685_v24 = vadd.f32 %v5030_v37, %v2565_v3  ;;  %v2574_v62 = vmul.f32 %v3781_v51, %v4929_v19  ;;  %3802 = vpow2.f32 %v5070_v26  ;;  %v6292_v26 = vld [vmem:[#allocation18_spill] sm:$0xff] }
 0x29e   :  { %6288 = vst [vmem:[#allocation46_spill] sm:$0xff] %v5143_v38  ;;  %v5149_v45 = vpop.f32.mrb[43].mxu1  ;;  %v5151_v4 = vpop.f32.mrb[59].mxu0  ;;  %v2711_v53 = vadd.f32 %v5037_v15, %v2567_v58  ;;  %v2576_v56 = vmul.f32 %v3783_v46, %v6291_v21  ;;  %3804 = vpow2.f32 %v5076_v20  ;;  %v5157_v38 = vmul.f32 -1.442695, %v5122_v42  ;;  %v6293_v58 = vld [vmem:[#allocation22_spill] sm:$0xff] }
 0x29f   :  { %6289 = vst [vmem:[#allocation47_spill] sm:$0xff] %v5149_v45  ;;  %6290 = vst [vmem:[#allocation48_spill] sm:$0xff] %v5151_v4  ;;  %v3785_v23 = vpop.eup %3784  ;;  %v2673_v19 = vadd.f32 %v5045_v14, %v2574_v62  ;;  %3806 = vpow2.f32 %v3311_v61  ;;  %v5163_v3 = vadd.f32 %v6292_v26, %v4737_v43  ;;  %v5168_v20 = vmul.f32 -1.442695, %v5139_v57 }
 0x2a0   :  { %v3787_v37 = vpop.eup %3786  ;;  %v2575_v51 = vmul.f32 %v3785_v23, %v4941_v50  ;;  %v2699_v15 = vadd.f32 %v5047_v0, %v2576_v56  ;;  %3808 = vpow2.f32 %v3310_v16  ;;  %v6294_v50 = vld [vmem:[#allocation20_spill] sm:$0xff]  ;;  %v5175_v0 = vpop.f32.mrb[44].mxu1 }
 0x2a1   :  { %v3789_v4 = vpop.eup %3788  ;;  %v2577_v21 = vmul.f32 %v3787_v37, %v6293_v58  ;;  %v2674_v45 = vrot.slane %v2673_v19, 4  ;;  %3810 = vpow2.f32 %v3312_v5  ;;  %v5172_v14 = vadd.f32 %v6294_v50, %v4729_v9  ;;  %6295 = vst [vmem:[#allocation19_spill] sm:$0xff] %v5175_v0  ;;  %v5177_v16 = vpop.f32.mrb[60].mxu0 }
 0x2a2   :  { %v3791_v46 = vpop.eup %3790  ;;  %v2686_v42 = vadd.f32 %v2685_v24, %v2575_v51  ;;  %v2700_v62 = vrot.slane %v2699_v15, 4  ;;  %v2584_v26 = vmul.f32 %v3789_v4, %v4953_v60  ;;  %3812 = vpow2.f32 %v3319_v6  ;;  %6296 = vst [vmem:[#allocation18_spill] sm:$0xff] %v5177_v16  ;;  %v6297_v24 = vld [vmem:[#allocation25_spill] sm:$0xff]  ;;  %v5182_v51 = vpop.f32.mrb[45].mxu1 }
 0x2a3   :  { %v3793_v61 = vpop.eup %3792  ;;  %v2712_v23 = vadd.f32 %v2711_v53, %v2577_v21  ;;  %v2675_v37 = vadd.f32 %v2674_v45, %v2673_v19  ;;  %v2586_v5 = vmul.f32 %v3791_v46, %v6297_v24  ;;  %3814 = vpow2.f32 %v3321_v35  ;;  %6298 = vst [vmem:[#allocation22_spill] sm:$0xff] %v5182_v51  ;;  %v5184_v50 = vpop.f32.mrb[61].mxu0 }
 0x2a4   :  { %v5179_v56 = vpop.eup %3794  ;;  %v2687_v58 = vrot.slane %v2686_v42, 4  ;;  %6299 = vst [vmem:[#allocation20_spill] sm:$0xff] %v5184_v50  ;;  %v2701_v53 = vadd.f32 %v2700_v62, %v2699_v15  ;;  %v2585_v60 = vmul.f32 %v3793_v61, %v4962_v32  ;;  %3816 = vpow2.f32 %v3320_v10  ;;  %v5187_v6 = vpop.f32.mrb[46].mxu1 }
 0x2a5   :  { %v3797_v57 = vpop.eup %3796  ;;  %v2713_v21 = vrot.slane %v2712_v23, 4  ;;  %6300 = vst [vmem:[#allocation25_spill] sm:$0xff] %v5187_v6  ;;  %v5189_v4 = vpop.f32.mrb[62].mxu0  ;;  %v2676_v45 = vrot.slane %v2675_v37, 2  ;;  %3818 = vpow2.f32 %v3322_v2 }
 0x2a6   :  { %6301 = vst [vmem:[#allocation49_spill] sm:$0xff] %v5189_v4  ;;  %v3799_v16 = vpop.eup %3798  ;;  %v2688_v19 = vadd.f32 %v2687_v58, %v2686_v42  ;;  %v2594_v46 = vmul.f32 %v3797_v57, %v4997_v44  ;;  %v5192_v35 = vpop.f32.mrb[47].mxu1  ;;  %v2702_v15 = vrot.slane %v2701_v53, 2  ;;  %3820 = vpow2.f32 %v3329_v27 }
 0x2a7   :  { %6302 = vst [vmem:[#allocation50_spill] sm:$0xff] %v5192_v35  ;;  %v5194_v24 = vpop.f32.mrb[63].mxu0  ;;  %v3801_v50 = vpop.eup %3800  ;;  %v2714_v62 = vadd.f32 %v2713_v21, %v2712_v23  ;;  %v2596_v32 = vmul.f32 %v3799_v16, %v5007_v34  ;;  %v2677_v61 = vadd.f32 %v2676_v45, %v2675_v37 }
 0x2a8   :  { %6303 = vst [vmem:[#allocation51_spill] sm:$0xff] %v5194_v24  ;;  %v3803_v10 = vpop.eup %3802  ;;  %v2689_v6 = vrot.slane %v2688_v19, 2  ;;  %v5197_v4 = vadd.f32 %v2594_v46, %v2584_v26  ;;  %v2595_v42 = vmul.f32 %v3801_v50, %v5012_v47  ;;  %v2703_v44 = vadd.f32 %v2702_v15, %v2701_v53  ;;  %v5204_v21 = vpop.f32.mrb[48].mxu1 }
 0x2a9   :  { %v3805_v58 = vpop.eup %3804  ;;  %v2715_v57 = vrot.slane %v2714_v62, 2  ;;  %v5200_v2 = vadd.f32 %v2596_v32, %v2586_v5  ;;  %v2117_v35 = vadd.f32 1.0, %v3803_v10  ;;  %v2678_v51 = vrot.slane %v2677_v61, 1  ;;  %v5206_v47 = vpop.f32.mrb[64].mxu0 }
 0x2aa   :  { %v3807_v24 = vpop.eup %3806  ;;  %v2690_v0 = vadd.f32 %v2689_v6, %v2688_v19  ;;  %v5202_v23 = vadd.f32 %v2595_v42, %v2585_v60  ;;  %v2124_v34 = vadd.f32 1.0, %v3805_v58  ;;  %v2704_v16 = vrot.slane %v2703_v44, 1  ;;  %v5208_v46 = vpop.f32.mrb[49].mxu1 }
 0x2ab   :  { %v3809_v27 = vpop.eup %3808  ;;  %v2716_v37 = vadd.f32 %v2715_v57, %v2714_v62  ;;  %3822 = vrcp.f32 %v2117_v35  ;;  %v2126_v26 = vadd.f32 1.0, %v3807_v24  ;;  %v2679_v53 = vadd.f32 %v2678_v51, %v2677_v61  ;;  %v5210_v6 = vpop.f32.mrb[65].mxu0  ;;  %v6305_v61 = vld [vmem:[#allocation21_spill] sm:$0xff] }
 0x2ac   :  { %v3811_v50 = vpop.eup %3810  ;;  %v2691_v5 = vrot.slane %v2690_v0, 1  ;;  %3824 = vrcp.f32 %v2124_v34  ;;  %v2125_v45 = vadd.f32 1.0, %v3809_v27  ;;  %v2705_v19 = vadd.f32 %v2704_v16, %v2703_v44  ;;  %v5212_v35 = vpop.f32.mrb[50].mxu1  ;;  %v6308_v16 = vld [vmem:[#allocation23_spill] sm:$0xff] }
 0x2ad   :  { %v3813_v60 = vpop.eup %3812  ;;  %v2717_v15 = vrot.slane %v2716_v37, 1  ;;  %3826 = vrcp.f32 %v2126_v26  ;;  %v2127_v62 = vadd.f32 1.0, %v3811_v50  ;;  %v5214_v24 = vpop.f32.mrb[66].mxu0  ;;  %v5218_v42 = vadd.f32 %v6305_v61, %v4731_v41 }
 0x2ae   :  { %6304 = vst [vmem:[#allocation52_spill] sm:$0xff] %v5214_v24  ;;  %v3815_v32 = vpop.eup %3814  ;;  %v2692_v10 = vadd.f32 %v2691_v5, %v2690_v0  ;;  %3828 = vrcp.f32 %v2125_v45  ;;  %v2134_v51 = vadd.f32 1.0, %v3813_v60  ;;  %v5220_v58 = vpop.f32.mrb[51].mxu1  ;;  %v5226_v26 = vadd.f32 %v6308_v16, %v4735_v48  ;;  %v6309_v45 = vld [vmem:[#allocation24_spill] sm:$0xff]  ;;  %v5254_v16 = vld [vmem:[#allocation11] sm:$0xff] }
 0x2af   :  { %6306 = vst [vmem:[#allocation21_spill] sm:$0xff] %v5220_v58  ;;  %v5222_v57 = vpop.f32.mrb[67].mxu0  ;;  %v3817_v44 = vpop.eup %3816  ;;  %v2718_v34 = vadd.f32 %v2717_v15, %v2716_v37  ;;  %3830 = vrcp.f32 %v2127_v62  ;;  %v2136_v27 = vadd.f32 1.0, %v3815_v32  ;;  %v5230_v60 = vadd.f32 %v6309_v45, %v4737_v43 }
 0x2b0   :  { %6307 = vst [vmem:[#allocation53_spill] sm:$0xff] %v5222_v57  ;;  %v3819_v50 = vpop.eup %3818  ;;  %v2947_v0 = vcombine.low %v2679_v53, %v2692_v10  ;;  %3832 = vrcp.f32 %v2134_v51  ;;  %v2135_v5 = vadd.f32 1.0, %v3817_v44  ;;  %v5234_v37 = vadd.f32 %v4972_v31, %v4729_v9  ;;  %v5248_v44 = vpop.f32.mrb[52].mxu1 }
 0x2b1   :  { %v3821_v61 = vpop.eup %3820  ;;  %v2948_v58 = vcombine.low %v2705_v19, %v2718_v34  ;;  %3834 = vrcp.f32 %v2136_v27  ;;  %v2137_v57 = vadd.f32 1.0, %v3819_v50  ;;  %v3332_v53 = vmul.f32 -1.442695, %v5163_v3  ;;  %v6310_v19 = vld [vmem:[#allocation26_spill] sm:$0xff]  ;;  %6311 = vst [vmem:[#allocation23_spill] sm:$0xff] %v5248_v44  ;;  %v5250_v31 = vpop.f32.mrb[68].mxu0 }
 0x2b2   :  { %v5237_v15 = vrot.slane %v2947_v0, %v5058_v33  ;;  %3836 = vrcp.f32 %v2135_v5  ;;  %v2144_v62 = vadd.f32 1.0, %v3821_v61  ;;  %v3339_v10 = vmul.f32 -1.442695, %v5172_v14  ;;  %6312 = vst [vmem:[#allocation24_spill] sm:$0xff] %v5250_v31  ;;  %v5261_v50 = vpop.f32.mrb[53].mxu1  ;;  %v5263_v0 = vpop.f32.mrb[69].mxu0 }
 0x2b3   :  { %v5241_v32 = vrot.slane %v2948_v58, %v5058_v33  ;;  %3838 = vrcp.f32 %v2137_v57  ;;  %v5246_v51 = vadd.f32 %v6310_v19, %v4731_v41  ;;  %v3341_v34 = vmul.f32 -1.442695, %v5218_v42  ;;  %6314 = vst [vmem:[#allocation26_spill] sm:$0xff] %v5261_v50  ;;  %6315 = vst [vmem:[#allocation54_spill] sm:$0xff] %v5263_v0  ;;  %v5270_v19 = vpop.f32.mrb[54].mxu1  ;;  %v5272_v31 = vpop.f32.mrb[70].mxu0 }
 0x2b4   :  { %3840 = vrcp.f32 %v2144_v62  ;;  %v3340_v27 = vmul.f32 -1.442695, %v5226_v26  ;;  %v6313_v58 = vsub.s32 4, %v6272_v40  ;;  %v3342_v61 = vmul.f32 -1.442695, %v5230_v60  ;;  %6316 = vst [vmem:[#allocation55_spill] sm:$0xff] %v5270_v19 }
 0x2b5   :  { %v3823_v5 = vpop.eup %3822  ;;  %3842 = vpow2.f32 %v5157_v38  ;;  %v3349_v62 = vmul.f32 -1.442695, %v5234_v37  ;;  %6317 = vst [vmem:[#allocation56_spill] sm:$0xff] %v5272_v31  ;;  %v2587_v50 = vmul.f32 %v5179_v56, %v4987_v11  ;;  %v5280_v45 = vadd.f32 %v4979_v13, %v4735_v48  ;;  %v5282_v38 = vpop.f32.mrb[55].mxu1 }
 0x2b6   :  { %v5259_v57 = vrot.slane %v5254_v16, %v6313_v58  ;;  %v3825_v58 = vpop.eup %3824  ;;  %v2597_v0 = vmul.f32 %v3823_v5, %v5051_v36  ;;  %3844 = vpow2.f32 %v5168_v20  ;;  %6318 = vst [vmem:[#allocation57_spill] sm:$0xff] %v5282_v38  ;;  %v5284_v44 = vpop.f32.mrb[71].mxu0  ;;  %v3351_v31 = vmul.f32 -1.442695, %v5246_v51 }
 0x2b7   :  { %6319 = vst [vmem:[#allocation58_spill] sm:$0xff] %v5284_v44  ;;  %v3827_v24 = vpop.eup %3826  ;;  %v2604_v19 = vmul.f32 %v3825_v58, %v5055_v54  ;;  %3846 = vpow2.f32 %v3332_v53  ;;  %v5290_v11 = vadd.f32 %v4981_v63, %v4737_v43  ;;  %v5295_v13 = vadd.f32 %v4989_v25, %v4729_v9 }
 0x2b8   :  { %v3829_v36 = vpop.eup %3828  ;;  %v2836_v20 = vadd.f32 %v2597_v0, %v2587_v50  ;;  %v2606_v56 = vmul.f32 %v3827_v24, %v5062_v49  ;;  %3848 = vpow2.f32 %v3339_v10  ;;  %v5301_v53 = vadd.f32 %v4991_v12, %v4731_v41  ;;  %v5309_v10 = vpop.f32.mrb[56].mxu1 }
 0x2b9   :  { %v3831_v5 = vpop.eup %3830  ;;  %v2798_v44 = vadd.f32 %v5197_v4, %v2604_v19  ;;  %v2605_v54 = vmul.f32 %v3829_v36, %v5080_v28  ;;  %3850 = vpow2.f32 %v3341_v34  ;;  %v3350_v24 = vmul.f32 -1.442695, %v5280_v45  ;;  %6320 = vst [vmem:[#allocation59_spill] sm:$0xff] %v5309_v10  ;;  %v5311_v41 = vpop.f32.mrb[72].mxu0 }
 0x2ba   :  { %v3833_v63 = vpop.eup %3832  ;;  %v2824_v50 = vadd.f32 %v5200_v2, %v2606_v56  ;;  %v2607_v49 = vmul.f32 %v3831_v5, %v5088_v8  ;;  %3852 = vpow2.f32 %v3340_v27  ;;  %v3352_v28 = vmul.f32 -1.442695, %v5290_v11  ;;  %6321 = vst [vmem:[#allocation60_spill] sm:$0xff] %v5311_v41  ;;  %v5315_v27 = vpop.f32.mrb[57].mxu1 }
 0x2bb   :  { %v3835_v9 = vpop.eup %3834  ;;  %v2811_v25 = vadd.f32 %v5202_v23, %v2605_v54  ;;  %v2614_v4 = vmul.f32 %v3833_v63, %v5097_v29  ;;  %3854 = vpow2.f32 %v3342_v61  ;;  %v3359_v8 = vmul.f32 -1.442695, %v5295_v13  ;;  %6322 = vst [vmem:[#allocation61_spill] sm:$0xff] %v5315_v27  ;;  %v5317_v0 = vpop.f32.mrb[73].mxu0 }
 0x2bc   :  { %v3837_v12 = vpop.eup %3836  ;;  %v2837_v34 = vadd.f32 %v2836_v20, %v2607_v49  ;;  %v2616_v2 = vmul.f32 %v3835_v9, %v5103_v22  ;;  %3856 = vpow2.f32 %v3349_v62  ;;  %6323 = vst [vmem:[#allocation62_spill] sm:$0xff] %v5317_v0  ;;  %v3361_v19 = vmul.f32 -1.442695, %v5301_v53  ;;  %v5321_v58 = vpop.f32.mrb[58].mxu1 }
 0x2bd   :  { %v3839_v23 = vpop.eup %3838  ;;  %v2799_v29 = vadd.f32 %v2798_v44, %v2614_v4  ;;  %v2615_v61 = vmul.f32 %v3837_v12, %v5107_v59  ;;  %3858 = vpow2.f32 %v3351_v31  ;;  %6324 = vst [vmem:[#allocation63_spill] sm:$0xff] %v5321_v58  ;;  %v5323_v36 = vpop.f32.mrb[74].mxu0  ;;  %v551_v56 = vsub.s32 5, %v6272_v40 }
 0x2be   :  { %6325 = vst [vmem:[#allocation64_spill] sm:$0xff] %v5323_v36  ;;  %v3841_v20 = vpop.eup %3840  ;;  %v5325_v22 = vadd.f32 %v2824_v50, %v2616_v2  ;;  %v2617_v62 = vmul.f32 %v3839_v23, %v5112_v7  ;;  %3860 = vpow2.f32 %v3350_v24  ;;  %v5329_v5 = vpop.f32.mrb[59].mxu1  ;;  %v559_v63 = vsub.s32 7, %v6272_v40 }
 0x2bf   :  { %6326 = vst [vmem:[#allocation65_spill] sm:$0xff] %v5329_v5  ;;  %v5331_v44 = vpop.f32.mrb[75].mxu0  ;;  %v3843_v59 = vpop.eup %3842  ;;  %v5333_v31 = vadd.f32 %v2811_v25, %v2615_v61  ;;  %v2624_v54 = vmul.f32 %v3841_v20, %v5117_v18  ;;  %3862 = vpow2.f32 %v3352_v28  ;;  %v5341_v7 = vadd.f32 %v4999_v17, %v4735_v48  ;;  %v6328_v25 = vld [vmem:[#allocation27_spill] sm:$0xff] }
 0x2c0   :  { %6327 = vst [vmem:[#allocation66_spill] sm:$0xff] %v5331_v44  ;;  %v3845_v49 = vpop.eup %3844  ;;  %v5337_v50 = vadd.f32 %v2837_v34, %v2617_v62  ;;  %v2146_v9 = vadd.f32 1.0, %v3843_v59  ;;  %3864 = vpow2.f32 %v3359_v8  ;;  %v5347_v18 = vadd.f32 %v6328_v25, %v4737_v43  ;;  %v5364_v61 = vpop.f32.mrb[60].mxu1  ;;  %v6342_v5 = vld [vmem:[#allocation39_spill] sm:$0xff] }
 0x2c1   :  { %v3847_v24 = vpop.eup %3846  ;;  %v5343_v4 = vadd.f32 %v2799_v29, %v2624_v54  ;;  %v2145_v12 = vadd.f32 1.0, %v3845_v49  ;;  %3866 = vpow2.f32 %v3361_v19  ;;  %v6329_v34 = vsub.s32 6, %v6272_v40  ;;  %6330 = vst [vmem:[#allocation27_spill] sm:$0xff] %v5364_v61  ;;  %v5366_v19 = vpop.f32.mrb[76].mxu0 }
 0x2c2   :  { %v3849_v28 = vpop.eup %3848  ;;  %3868 = vrcp.f32 %v2146_v9  ;;  %v2147_v2 = vadd.f32 1.0, %v3847_v24  ;;  %v5355_v48 = vrot.slane %v5254_v16, %v551_v56  ;;  %v5359_v29 = vadd.f32 %v5020_v1, %v5259_v57  ;;  %6331 = vst [vmem:[#allocation67_spill] sm:$0xff] %v5366_v19  ;;  %v5369_v59 = vpop.f32.mrb[61].mxu1 }
 0x2c3   :  { %v5352_v8 = vrot.slane %v5254_v16, %v6329_v34  ;;  %v3851_v17 = vpop.eup %3850  ;;  %3870 = vrcp.f32 %v2145_v12  ;;  %v2154_v23 = vadd.f32 1.0, %v3849_v28  ;;  %v5362_v43 = vrot.slane %v5254_v16, %v559_v63  ;;  %6332 = vst [vmem:[#allocation68_spill] sm:$0xff] %v5369_v59  ;;  %v5371_v54 = vpop.f32.mrb[77].mxu0 }
 0x2c4   :  { %v3853_v20 = vpop.eup %3852  ;;  %3872 = vrcp.f32 %v2147_v2  ;;  %v2156_v62 = vadd.f32 1.0, %v3851_v17  ;;  %v3360_v56 = vmul.f32 -1.442695, %v5341_v7  ;;  %6333 = vst [vmem:[#allocation69_spill] sm:$0xff] %v5371_v54  ;;  %v3362_v9 = vmul.f32 -1.442695, %v5347_v18 }
 0x2c5   :  { %v3855_v49 = vpop.eup %3854  ;;  %3874 = vrcp.f32 %v2154_v23  ;;  %v2155_v1 = vadd.f32 1.0, %v3853_v20  ;;  %v5374_v16 = vpop.f32.mrb[62].mxu1  ;;  %v5380_v25 = vadd.f32 %v5022_v30, %v5352_v8  ;;  %v5384_v28 = vadd.f32 %v5026_v55, %v5355_v48  ;;  %v6337_v55 = vld [vmem:[#allocation28_spill] sm:$0xff] }
 0x2c6   :  { %6334 = vst [vmem:[#allocation70_spill] sm:$0xff] %v5374_v16  ;;  %v5376_v63 = vpop.f32.mrb[78].mxu0  ;;  %v3857_v24 = vpop.eup %3856  ;;  %3876 = vrcp.f32 %v2156_v62  ;;  %v2157_v12 = vadd.f32 1.0, %v3855_v49  ;;  %v3213_v23 = vmul.f32 -1.442695, %v5359_v29  ;;  %v5391_v20 = vadd.f32 %v5028_v52, %v5362_v43  ;;  %v6339_v52 = vld [vmem:[#allocation30_spill] sm:$0xff] }
 0x2c7   :  { %6335 = vst [vmem:[#allocation71_spill] sm:$0xff] %v5376_v63  ;;  %v5386_v2 = vpop.f32.mrb[63].mxu1  ;;  %v3859_v34 = vpop.eup %3858  ;;  %3878 = vrcp.f32 %v2155_v1  ;;  %v2164_v17 = vadd.f32 1.0, %v3857_v24  ;;  %v5395_v30 = vadd.f32 %v5033_v39, %v5259_v57  ;;  %v5399_v40 = vadd.f32 %v6337_v55, %v5352_v8  ;;  %v6338_v24 = vld [vmem:[#allocation29_spill] sm:$0xff] }
 0x2c8   :  { %6336 = vst [vmem:[#allocation72_spill] sm:$0xff] %v5386_v2  ;;  %v3861_v62 = vpop.eup %3860  ;;  %3880 = vrcp.f32 %v2157_v12  ;;  %v2166_v49 = vadd.f32 1.0, %v3859_v34  ;;  %v5403_v63 = vadd.f32 %v6338_v24, %v5355_v48  ;;  %v5407_v16 = vadd.f32 %v6339_v52, %v5362_v43  ;;  %v5416_v19 = vpop.f32.mrb[79].mxu0 }
 0x2c9   :  { %v3863_v2 = vpop.eup %3862  ;;  %3882 = vrcp.f32 %v2164_v17  ;;  %v2165_v1 = vadd.f32 1.0, %v3861_v62  ;;  %v3215_v39 = vmul.f32 -1.442695, %v5380_v25  ;;  %v3214_v54 = vmul.f32 -1.442695, %v5384_v28  ;;  %v6340_v62 = vld [vmem:[#allocation31_spill] sm:$0xff] }
 0x2ca   :  { %v3865_v12 = vpop.eup %3864  ;;  %3884 = vrcp.f32 %v2166_v49  ;;  %v2167_v34 = vadd.f32 1.0, %v3863_v2  ;;  %v3216_v17 = vmul.f32 -1.442695, %v5391_v20  ;;  %v5414_v24 = vadd.f32 %v6340_v62, %v5259_v57  ;;  %6341 = vst [vmem:[#allocation28_spill] sm:$0xff] %v5416_v19  ;;  %v6343_v62 = vld [vmem:[#allocation44_spill] sm:$0xff] }
 0x2cb   :  { %v3867_v55 = vpop.eup %3866  ;;  %3886 = vrcp.f32 %v2165_v1  ;;  %v2174_v59 = vadd.f32 1.0, %v3865_v12  ;;  %v3223_v2 = vmul.f32 -1.442695, %v5395_v30  ;;  %v3225_v49 = vmul.f32 -1.442695, %v5399_v40  ;;  %v6344_v19 = vld [vmem:[#allocation32_spill] sm:$0xff] }
 0x2cc   :  { %v3869_v52 = vpop.eup %3868  ;;  %3888 = vrcp.f32 %v2167_v34  ;;  %v2176_v61 = vadd.f32 1.0, %v3867_v55  ;;  %v3224_v1 = vmul.f32 -1.442695, %v5403_v63  ;;  %v3226_v12 = vmul.f32 -1.442695, %v5407_v16  ;;  %v6345_v55 = vld [vmem:[#allocation33_spill] sm:$0xff] }
 0x2cd   :  { %v3871_v44 = vpop.eup %3870  ;;  %v2626_v36 = vmul.f32 %v3869_v52, %v6342_v5  ;;  %3890 = vrcp.f32 %v2174_v59  ;;  %v5426_v34 = vadd.f32 %v6344_v19, %v5352_v8  ;;  %v5430_v27 = vadd.f32 %v6345_v55, %v5355_v48  ;;  %v6346_v19 = vld [vmem:[#allocation34_spill] sm:$0xff] }
 0x2ce   :  { %v3873_v58 = vpop.eup %3872  ;;  %v2625_v0 = vmul.f32 %v3871_v44, %v6343_v62  ;;  %3892 = vrcp.f32 %v2176_v61  ;;  %v3233_v52 = vmul.f32 -1.442695, %v5414_v24  ;;  %v5439_v62 = vadd.f32 %v6346_v19, %v5362_v43 }
 0x2cf   :  { %v3875_v41 = vpop.eup %3874  ;;  %v2826_v5 = vadd.f32 %v5325_v22, %v2626_v36  ;;  %v2627_v59 = vmul.f32 %v3873_v58, %v5163_v3  ;;  %3894 = vpow2.f32 %v3360_v56  ;;  %v6347_v3 = vld [vmem:[#allocation35_spill] sm:$0xff]  ;;  %v5447_v22 = vpop.f32.mrb[80].mxu0  ;;  %v3235_v56 = vmul.f32 -1.442695, %v5426_v34 }
 0x2d0   :  { %v3877_v10 = vpop.eup %3876  ;;  %v2813_v44 = vadd.f32 %v5333_v31, %v2625_v0  ;;  %v2634_v61 = vmul.f32 %v3875_v41, %v5172_v14  ;;  %3896 = vpow2.f32 %v3362_v9  ;;  %v5445_v58 = vadd.f32 %v6347_v3, %v5259_v57  ;;  %6348 = vst [vmem:[#allocation29_spill] sm:$0xff] %v5447_v22  ;;  %v5449_v0 = vpop.f32.mrb[64].mxu1 }
 0x2d1   :  { %v3879_v55 = vpop.eup %3878  ;;  %v2839_v38 = vadd.f32 %v5337_v50, %v2627_v59  ;;  %v2636_v36 = vmul.f32 %v3877_v10, %v5218_v42  ;;  %3898 = vpow2.f32 %v3213_v23  ;;  %6349 = vst [vmem:[#allocation30_spill] sm:$0xff] %v5449_v0  ;;  %v5454_v50 = vpop.f32.mrb[81].mxu0  ;;  %v3234_v59 = vmul.f32 -1.442695, %v5430_v27 }
 0x2d2   :  { %v3881_v14 = vpop.eup %3880  ;;  %v2801_v41 = vadd.f32 %v5343_v4, %v2634_v61  ;;  %v2635_v31 = vmul.f32 %v3879_v55, %v5226_v26  ;;  %3900 = vpow2.f32 %v3215_v39  ;;  %6350 = vst [vmem:[#allocation31_spill] sm:$0xff] %v5454_v50  ;;  %v5456_v42 = vpop.f32.mrb[65].mxu1  ;;  %v5466_v61 = vmul.f32 -1.442695, %v5439_v62 }
 0x2d3   :  { %6351 = vst [vmem:[#allocation39_spill] sm:$0xff] %v5456_v42  ;;  %v3883_v10 = vpop.eup %3882  ;;  %v2827_v9 = vadd.f32 %v2826_v5, %v2636_v36  ;;  %v2637_v23 = vmul.f32 %v3881_v14, %v5230_v60  ;;  %3902 = vpow2.f32 %v3214_v54  ;;  %v5460_v19 = vpop.f32.mrb[82].mxu0  ;;  %v6356_v14 = vld [vmem:[#allocation36_spill] sm:$0xff] }
 0x2d4   :  { %6352 = vst [vmem:[#allocation44_spill] sm:$0xff] %v5460_v19  ;;  %v5462_v3 = vpop.f32.mrb[66].mxu1  ;;  %v3885_v4 = vpop.eup %3884  ;;  %v2814_v26 = vadd.f32 %v2813_v44, %v2635_v31  ;;  %v2644_v39 = vmul.f32 %v3883_v10, %v5234_v37  ;;  %3904 = vpow2.f32 %v3216_v17  ;;  %v6357_v17 = vld [vmem:[#allocation37_spill] sm:$0xff] }
 0x2d5   :  { %6353 = vst [vmem:[#allocation32_spill] sm:$0xff] %v5462_v3  ;;  %v5468_v55 = vpop.f32.mrb[83].mxu0  ;;  %v5470_v5 = vpop.f32.mrb[67].mxu1  ;;  %v2840_v54 = vadd.f32 %v2839_v38, %v2637_v23  ;;  %v2646_v36 = vmul.f32 %v3885_v4, %v5246_v51  ;;  %3906 = vpow2.f32 %v3223_v2  ;;  %v5475_v3 = vadd.f32 %v6356_v14, %v5352_v8 }
 0x2d6   :  { %6354 = vst [vmem:[#allocation33_spill] sm:$0xff] %v5468_v55  ;;  %6355 = vst [vmem:[#allocation34_spill] sm:$0xff] %v5470_v5  ;;  %v3887_v60 = vpop.eup %3886  ;;  %v2802_v31 = vadd.f32 %v2801_v41, %v2644_v39  ;;  %3908 = vpow2.f32 %v3225_v49  ;;  %v5480_v10 = vadd.f32 %v6357_v17, %v5355_v48  ;;  %v5484_v51 = vmul.f32 -1.442695, %v5445_v58 }
 0x2d7   :  { %v3889_v44 = vpop.eup %3888  ;;  %v2645_v37 = vmul.f32 %v3887_v60, %v5280_v45  ;;  %v2828_v5 = vadd.f32 %v2827_v9, %v2646_v36  ;;  %3910 = vpow2.f32 %v3224_v1  ;;  %v6358_v45 = vld [vmem:[#allocation38_spill] sm:$0xff]  ;;  %v5499_v1 = vpop.f32.mrb[84].mxu0 }
 0x2d8   :  { %v3891_v55 = vpop.eup %3890  ;;  %v2647_v38 = vmul.f32 %v3889_v44, %v5290_v11  ;;  %3912 = vpow2.f32 %v3226_v12  ;;  %v5491_v49 = vadd.f32 %v6358_v45, %v5362_v43  ;;  %v5497_v11 = vmul.f32 -1.442695, %v5475_v3  ;;  %6359 = vst [vmem:[#allocation35_spill] sm:$0xff] %v5499_v1  ;;  %v5506_v36 = vpop.f32.mrb[85].mxu0  ;;  %v6363_v44 = vld [vmem:[#allocation40_spill] sm:$0xff] }
 0x2d9   :  { %v3893_v2 = vpop.eup %3892  ;;  %v5486_v23 = vadd.f32 %v2814_v26, %v2645_v37  ;;  %v2654_v41 = vmul.f32 %v3891_v55, %v5295_v13  ;;  %3914 = vpow2.f32 %v3233_v52  ;;  %v5501_v26 = vpop.f32.mrb[68].mxu1  ;;  %v5504_v55 = vmul.f32 -1.442695, %v5480_v10  ;;  %6361 = vst [vmem:[#allocation37_spill] sm:$0xff] %v5506_v36 }
 0x2da   :  { %v3895_v4 = vpop.eup %3894  ;;  %v5493_v39 = vadd.f32 %v2840_v54, %v2647_v38  ;;  %v2656_v9 = vmul.f32 %v3893_v2, %v5301_v53  ;;  %6360 = vst [vmem:[#allocation36_spill] sm:$0xff] %v5501_v26  ;;  %3916 = vpow2.f32 %v3235_v56  ;;  %v5508_v54 = vpop.f32.mrb[69].mxu1  ;;  %v5512_v37 = vadd.f32 %v6363_v44, %v5259_v57  ;;  %v6364_v56 = vld [vmem:[#allocation41_spill] sm:$0xff]  ;;  %v6365_v44 = vld [vmem:[#allocation42_spill] sm:$0xff] }
 0x2db   :  { %v3897_v60 = vpop.eup %3896  ;;  %v2803_v13 = vadd.f32 %v2802_v31, %v2654_v41  ;;  %v2175_v12 = vadd.f32 1.0, %v3895_v4  ;;  %6362 = vst [vmem:[#allocation38_spill] sm:$0xff] %v5508_v54  ;;  %3918 = vpow2.f32 %v3234_v59  ;;  %v5516_v2 = vadd.f32 %v6364_v56, %v5352_v8 }
 0x2dc   :  { %v3899_v53 = vpop.eup %3898  ;;  %v2829_v52 = vadd.f32 %v2828_v5, %v2656_v9  ;;  %v2177_v14 = vadd.f32 1.0, %v3897_v60  ;;  %v5519_v5 = vmul.f32 -1.442695, %v5491_v49  ;;  %v5523_v54 = vadd.f32 %v6365_v44, %v5355_v48 }
 0x2dd   :  { %v3901_v17 = vpop.eup %3900  ;;  %v2804_v38 = vrot.slane %v2803_v13, 4  ;;  %3920 = vrcp.f32 %v2175_v12  ;;  %v2028_v31 = vadd.f32 1.0, %v3899_v53  ;;  %v5526_v36 = vmul.f32 -1.442695, %v5512_v37 }
 0x2de   :  { %v3903_v41 = vpop.eup %3902  ;;  %v2830_v45 = vrot.slane %v2829_v52, 4  ;;  %3922 = vrcp.f32 %v2177_v14  ;;  %v2030_v4 = vadd.f32 1.0, %v3901_v17  ;;  %6366 = vst [vmem:[#allocation40_spill] sm:$0xff] %v5523_v54  ;;  %v5529_v1 = vmul.f32 -1.442695, %v5516_v2 }
 0x2df   :  { %v3905_v59 = vpop.eup %3904  ;;  %v2805_v9 = vadd.f32 %v2804_v38, %v2803_v13  ;;  %3924 = vrcp.f32 %v2028_v31  ;;  %v2029_v60 = vadd.f32 1.0, %v3903_v41  ;;  %v6367_v41 = vld [vmem:[#allocation43_spill] sm:$0xff] }
 0x2e0   :  { %v3907_v12 = vpop.eup %3906  ;;  %v2831_v53 = vadd.f32 %v2830_v45, %v2829_v52  ;;  %3926 = vrcp.f32 %v2030_v4  ;;  %v2031_v56 = vadd.f32 1.0, %v3905_v59  ;;  %v5533_v44 = vadd.f32 %v6367_v41, %v5362_v43  ;;  %v6369_v59 = vld [vmem:[#allocation45_spill] sm:$0xff]  ;;  %v6371_v41 = vld [vmem:[#allocation46_spill] sm:$0xff] }
 0x2e1   :  { %v3909_v14 = vpop.eup %3908  ;;  %v2806_v17 = vrot.slane %v2805_v9, 2  ;;  %3928 = vrcp.f32 %v2029_v60  ;;  %v2038_v26 = vadd.f32 1.0, %v3907_v12  ;;  %v5536_v4 = vmul.f32 -1.442695, %v5523_v54 }
 0x2e2   :  { %v3911_v13 = vpop.eup %3910  ;;  %v2832_v38 = vrot.slane %v2831_v53, 2  ;;  %3930 = vrcp.f32 %v2031_v56  ;;  %v2040_v31 = vadd.f32 1.0, %v3909_v14  ;;  %6368 = vst [vmem:[#allocation41_spill] sm:$0xff] %v5533_v44  ;;  %v5540_v60 = vadd.f32 %v6369_v59, %v5259_v57 }
 0x2e3   :  { %v3913_v52 = vpop.eup %3912  ;;  %3932 = vrcp.f32 %v2038_v26  ;;  %v2039_v45 = vadd.f32 1.0, %v3911_v13  ;;  %v2807_v19 = vadd.f32 %v2806_v17, %v2805_v9  ;;  %v5544_v0 = vadd.f32 %v6371_v41, %v5352_v8  ;;  %v6373_v26 = vld [vmem:[#allocation47_spill] sm:$0xff]  ;;  %v6375_v9 = vld [vmem:[#allocation48_spill] sm:$0xff] }
 0x2e4   :  { %6370 = vst [vmem:[#allocation42_spill] sm:$0xff] %v5540_v60  ;;  %v3915_v12 = vpop.eup %3914  ;;  %v2833_v42 = vadd.f32 %v2832_v38, %v2831_v53  ;;  %3934 = vrcp.f32 %v2040_v31  ;;  %v2041_v56 = vadd.f32 1.0, %v3913_v52  ;;  %v5548_v13 = vadd.f32 %v6373_v26, %v5355_v48  ;;  %v5560_v52 = vpop.f32.mrb[86].mxu0 }
 0x2e5   :  { %v3917_v14 = vpop.eup %3916  ;;  %3936 = vrcp.f32 %v2039_v45  ;;  %v2048_v50 = vadd.f32 1.0, %v3915_v12  ;;  %6372 = vst [vmem:[#allocation43_spill] sm:$0xff] %v5544_v0  ;;  %v5551_v54 = vmul.f32 -1.442695, %v5533_v44  ;;  %v5555_v53 = vadd.f32 %v6375_v9, %v5362_v43  ;;  %6377 = vst [vmem:[#allocation47_spill] sm:$0xff] %v5560_v52  ;;  %v5562_v45 = vpop.f32.mrb[70].mxu1 }
 0x2e6   :  { %6374 = vst [vmem:[#allocation45_spill] sm:$0xff] %v5548_v13  ;;  %v3919_v22 = vpop.eup %3918  ;;  %3938 = vrcp.f32 %v2041_v56  ;;  %v2050_v59 = vadd.f32 1.0, %v3917_v14  ;;  %v5558_v31 = vmul.f32 -1.442695, %v5540_v60  ;;  %6378 = vst [vmem:[#allocation48_spill] sm:$0xff] %v5562_v45  ;;  %v2808_v56 = vrot.slane %v2807_v19, 1 }
 0x2e7   :  { %6376 = vst [vmem:[#allocation46_spill] sm:$0xff] %v5555_v53  ;;  %v3921_v17 = vpop.eup %3920  ;;  %3940 = vrcp.f32 %v2048_v50  ;;  %v2049_v38 = vadd.f32 1.0, %v3919_v22  ;;  %v2834_v14 = vrot.slane %v2833_v42, 1  ;;  %v3265_v50 = vmul.f32 -1.442695, %v5544_v0  ;;  %v5570_v60 = vpop.f32.mrb[87].mxu0 }
 0x2e8   :  { %v3923_v12 = vpop.eup %3922  ;;  %v2655_v41 = vmul.f32 %v3921_v17, %v5341_v7  ;;  %3942 = vrcp.f32 %v2050_v59  ;;  %v5568_v22 = vmul.f32 -1.442695, %v5548_v13  ;;  %6379 = vst [vmem:[#allocation73_spill] sm:$0xff] %v5570_v60  ;;  %v5572_v52 = vpop.f32.mrb[71].mxu1  ;;  %v5577_v7 = vmul.f32 -1.442695, %v5555_v53 }
 0x2e9   :  { %v3925_v26 = vpop.eup %3924  ;;  %v2657_v9 = vmul.f32 %v3923_v12, %v5347_v18  ;;  %3944 = vrcp.f32 %v2049_v38  ;;  %6380 = vst [vmem:[#allocation74_spill] sm:$0xff] %v5572_v52  ;;  %v6381_v18 = vld [vmem:[#allocation19_spill] sm:$0xff]  ;;  %v6382_v12 = vld [vmem:[#allocation18_spill] sm:$0xff]  ;;  %v5593_v60 = vadd.f32 %v2808_v56, %v2807_v19  ;;  %v5595_v53 = vadd.f32 %v2834_v14, %v2833_v42 }
 0x2ea   :  { %v3927_v45 = vpop.eup %3926  ;;  %v2816_v44 = vadd.f32 %v5486_v23, %v2655_v41  ;;  %3946 = vpow2.f32 %v5466_v61  ;;  %v5581_v59 = vadd.f32 %v6381_v18, %v5259_v57  ;;  %v5587_v52 = vadd.f32 %v6382_v12, %v5352_v8  ;;  %v6383_v23 = vld [vmem:[#allocation22_spill] sm:$0xff] }
 0x2eb   :  { %v3929_v17 = vpop.eup %3928  ;;  %v2842_v38 = vadd.f32 %v5493_v39, %v2657_v9  ;;  %3948 = vpow2.f32 %v5484_v51  ;;  %v5591_v41 = vadd.f32 %v6383_v23, %v5355_v48  ;;  %v2508_v51 = vmul.f32 %v3925_v26, %v5359_v29  ;;  %v5607_v29 = vpop.f32.mrb[72].mxu1 }
 0x2ec   :  { %v3931_v61 = vpop.eup %3930  ;;  %v2817_v18 = vrot.slane %v2816_v44, 4  ;;  %3950 = vpow2.f32 %v5497_v11  ;;  %v2510_v9 = vmul.f32 %v3927_v45, %v5380_v25  ;;  %v2509_v23 = vmul.f32 %v3929_v17, %v5384_v28  ;;  %v5611_v28 = vpop.f32.mrb[73].mxu1 }
 0x2ed   :  { %v3933_v13 = vpop.eup %3932  ;;  %v2843_v39 = vrot.slane %v2842_v38, 4  ;;  %3952 = vpow2.f32 %v5504_v55  ;;  %v2511_v11 = vmul.f32 %v3931_v61, %v5391_v20 }
 0x2ee   :  { %v3935_v12 = vpop.eup %3934  ;;  %v2818_v0 = vadd.f32 %v2817_v18, %v2816_v44  ;;  %v2518_v19 = vmul.f32 %v3933_v13, %v5395_v30  ;;  %3954 = vpow2.f32 %v5519_v5 }
 0x2ef   :  { %v3937_v42 = vpop.eup %3936  ;;  %v2844_v56 = vadd.f32 %v2843_v39, %v2842_v38  ;;  %v2520_v14 = vmul.f32 %v3935_v12, %v5399_v40  ;;  %3956 = vpow2.f32 %v5526_v36  ;;  %v5615_v40 = vpop.f32.mrb[74].mxu1 }
 0x2f0   :  { %v3939_v25 = vpop.eup %3938  ;;  %v2819_v55 = vrot.slane %v2818_v0, 2  ;;  %v2719_v45 = vadd.f32 %v2518_v19, %v2508_v51  ;;  %v2519_v44 = vmul.f32 %v3937_v42, %v5403_v63  ;;  %3958 = vpow2.f32 %v5529_v1  ;;  %6384 = vst [vmem:[#allocation19_spill] sm:$0xff] %v5615_v40  ;;  %v5619_v63 = vpop.f32.mrb[75].mxu1 }
 0x2f1   :  { %v3941_v30 = vpop.eup %3940  ;;  %v2845_v5 = vrot.slane %v2844_v56, 2  ;;  %v2745_v13 = vadd.f32 %v2520_v14, %v2510_v9  ;;  %v2521_v20 = vmul.f32 %v3939_v25, %v5407_v16  ;;  %3960 = vpow2.f32 %v5536_v4  ;;  %6385 = vst [vmem:[#allocation18_spill] sm:$0xff] %v5619_v63 }
 0x2f2   :  { %v3943_v36 = vpop.eup %3942  ;;  %v2820_v26 = vadd.f32 %v2819_v55, %v2818_v0  ;;  %v2732_v17 = vadd.f32 %v2519_v44, %v2509_v23  ;;  %v2528_v38 = vmul.f32 %v3941_v30, %v5414_v24  ;;  %3962 = vpow2.f32 %v5551_v54 }
 0x2f3   :  { %v3945_v1 = vpop.eup %3944  ;;  %v2846_v61 = vadd.f32 %v2845_v5, %v2844_v56  ;;  %v5621_v18 = vadd.f32 %v2521_v20, %v2511_v11  ;;  %v2530_v39 = vmul.f32 %v3943_v36, %v5426_v34  ;;  %3964 = vpow2.f32 %v5558_v31  ;;  %v5637_v11 = vpop.f32.mrb[76].mxu1  ;;  %v6388_v5 = vld [vmem:[#allocation20_spill] sm:$0xff] }
 0x2f4   :  { %v3947_v16 = vpop.eup %3946  ;;  %v2821_v4 = vrot.slane %v2820_v26, 1  ;;  %v5625_v51 = vadd.f32 %v2719_v45, %v2528_v38  ;;  %v2529_v0 = vmul.f32 %v3945_v1, %v5430_v27  ;;  %3966 = vpow2.f32 %v3265_v50  ;;  %6386 = vst [vmem:[#allocation22_spill] sm:$0xff] %v5637_v11 }
 0x2f5   :  { %v3949_v24 = vpop.eup %3948  ;;  %v2847_v9 = vrot.slane %v2846_v61, 1  ;;  %v5628_v54 = vadd.f32 %v2745_v13, %v2530_v39  ;;  %v2051_v12 = vadd.f32 1.0, %v3947_v16  ;;  %3968 = vpow2.f32 %v5568_v22  ;;  %v6391_v39 = vld [vmem:[#allocation25_spill] sm:$0xff] }
 0x2f6   :  { %v3951_v23 = vpop.eup %3950  ;;  %v2822_v19 = vadd.f32 %v2821_v4, %v2820_v26  ;;  %v5631_v34 = vadd.f32 %v2732_v17, %v2529_v0  ;;  %v2058_v31 = vadd.f32 1.0, %v3949_v24  ;;  %3970 = vpow2.f32 %v5577_v7  ;;  %v5643_v7 = vpop.f32.mrb[77].mxu1  ;;  %v6392_v24 = vld [vmem:[#allocation49_spill] sm:$0xff] }
 0x2f7   :  { %v3953_v42 = vpop.eup %3952  ;;  %v2848_v56 = vadd.f32 %v2847_v9, %v2846_v61  ;;  %3972 = vrcp.f32 %v2051_v12  ;;  %v2060_v27 = vadd.f32 1.0, %v3951_v23  ;;  %v5635_v50 = vmul.f32 -1.442695, %v5581_v59  ;;  %6387 = vst [vmem:[#allocation75_spill] sm:$0xff] %v5643_v7  ;;  %v5650_v20 = vpop.f32.mrb[78].mxu1  ;;  %v6393_v12 = vld [vmem:[#allocation50_spill] sm:$0xff] }
 0x2f8   :  { %v3955_v14 = vpop.eup %3954  ;;  %v2989_v22 = vcombine.low %v5593_v60, %v2822_v19  ;;  %3974 = vrcp.f32 %v2058_v31  ;;  %v2059_v25 = vadd.f32 1.0, %v3953_v42  ;;  %v5641_v55 = vmul.f32 -1.442695, %v5587_v52  ;;  %6389 = vst [vmem:[#allocation20_spill] sm:$0xff] %v5650_v20  ;;  %v5656_v38 = vpop.f32.mrb[79].mxu1 }
 0x2f9   :  { %v3957_v45 = vpop.eup %3956  ;;  %v2990_v44 = vcombine.low %v5595_v53, %v2848_v56  ;;  %3976 = vrcp.f32 %v2060_v27  ;;  %v2061_v30 = vadd.f32 1.0, %v3955_v14  ;;  %v5648_v13 = vadd.f32 %v6388_v5, %v5362_v43  ;;  %6390 = vst [vmem:[#allocation76_spill] sm:$0xff] %v5656_v38  ;;  %v6394_v56 = vld [vmem:[#allocation51_spill] sm:$0xff] }
 0x2fa   :  { %v3959_v60 = vpop.eup %3958  ;;  %v2997_v36 = vrot.slane %v2989_v22, %v5058_v33  ;;  %3978 = vrcp.f32 %v2059_v25  ;;  %v2068_v26 = vadd.f32 1.0, %v3957_v45  ;;  %v5654_v17 = vmul.f32 -1.442695, %v5591_v41 }
 0x2fb   :  { %v3961_v53 = vpop.eup %3960  ;;  %v3004_v1 = vrot.slane %v2990_v44, %v5058_v33  ;;  %3980 = vrcp.f32 %v2061_v30  ;;  %v2070_v61 = vadd.f32 1.0, %v3959_v60  ;;  %v5661_v16 = vadd.f32 %v6391_v39, %v5259_v57 }
 0x2fc   :  { %v3963_v4 = vpop.eup %3962  ;;  %3982 = vrcp.f32 %v2068_v26  ;;  %v2069_v0 = vadd.f32 1.0, %v3961_v53  ;;  %v5665_v9 = vadd.f32 %v6392_v24, %v5352_v8  ;;  %v5669_v23 = vadd.f32 %v6393_v12, %v5355_v48 }
 0x2fd   :  { %v3965_v19 = vpop.eup %3964  ;;  %v3005_v31 = vcombine.low %v2997_v36, %v3004_v1  ;;  %3984 = vrcp.f32 %v2070_v61  ;;  %v2071_v42 = vadd.f32 1.0, %v3963_v4  ;;  %v5673_v27 = vadd.f32 %v6394_v56, %v5362_v43  ;;  %v5681_v36 = vpop.f32.mrb[80].mxu1 }
 0x2fe   :  { %v3967_v14 = vpop.eup %3966  ;;  %3986 = vrcp.f32 %v2069_v0  ;;  %v2078_v22 = vadd.f32 1.0, %v3965_v19  ;;  %v3276_v25 = vmul.f32 -1.442695, %v5648_v13  ;;  %v5678_v45 = vadd.f32 %v5204_v21, %v5259_v57  ;;  %6395 = vst [vmem:[#allocation25_spill] sm:$0xff] %v5681_v36  ;;  %v5690_v12 = vpop.f32.mrb[81].mxu1 }
 0x2ff   :  { %v3969_v44 = vpop.eup %3968  ;;  %v3035_v30 = vrot.slane %v3005_v31, 7  ;;  %3988 = vrcp.f32 %v2071_v42  ;;  %v2080_v5 = vadd.f32 1.0, %v3967_v14  ;;  %v3283_v60 = vmul.f32 -1.442695, %v5661_v16  ;;  %6397 = vst [vmem:[#allocation49_spill] sm:$0xff] %v5690_v12  ;;  %v5695_v14 = vpop.f32.mrb[82].mxu1 }
 0x300   :  { %v3971_v26 = vpop.eup %3970  ;;  %3990 = vrcp.f32 %v2078_v22  ;;  %v2079_v53 = vadd.f32 1.0, %v3969_v44  ;;  %v3285_v1 = vmul.f32 -1.442695, %v5665_v9  ;;  %v3284_v61 = vmul.f32 -1.442695, %v5669_v23  ;;  %6398 = vst [vmem:[#allocation50_spill] sm:$0xff] %v5695_v14 }
 0x301   :  { %v3973_v39 = vpop.eup %3972  ;;  %v6396_v21 = vcombine.low %v5237_v15, %v5241_v32  ;;  %3992 = vrcp.f32 %v2080_v5  ;;  %v2081_v0 = vadd.f32 1.0, %v3971_v26  ;;  %v3286_v24 = vmul.f32 -1.442695, %v5673_v27  ;;  %v5703_v5 = vpop.f32.mrb[83].mxu1 }
 0x302   :  { %v3975_v19 = vpop.eup %3974  ;;  %v2531_v42 = vmul.f32 %v3973_v39, %v5439_v62  ;;  %3994 = vrcp.f32 %v2079_v53  ;;  %v3293_v56 = vmul.f32 -1.442695, %v5678_v45  ;;  %v5701_v44 = vadd.f32 %v5206_v47, %v5352_v8  ;;  %6399 = vst [vmem:[#allocation51_spill] sm:$0xff] %v5703_v5 }
 0x303   :  { %v3037_v4 = vsel %vm3036_vm0, %v3035_v30, %v6396_v21  ;;  %v3977_v22 = vpop.eup %3976  ;;  %v2538_v32 = vmul.f32 %v3975_v19, %v5445_v58  ;;  %3996 = vrcp.f32 %v2081_v0 }
 0x304   :  { %v3039_v31 = vsel %vm3038_vm1, %v3035_v30, %v3037_v4  ;;  %v3979_v26 = vpop.eup %3978  ;;  %v2759_v53 = vadd.f32 %v5621_v18, %v2531_v42  ;;  %v2540_v39 = vmul.f32 %v3977_v22, %v5475_v3  ;;  %3998 = vpow2.f32 %v5635_v50 }
 0x305   :  { %v3041_v15 = vsel %vm3040_vm2, %v3035_v30, %v3039_v31  ;;  %v3981_v21 = vpop.eup %3980  ;;  %v2721_v4 = vadd.f32 %v5625_v51, %v2538_v32  ;;  %v2539_v58 = vmul.f32 %v3979_v26, %v5480_v10  ;;  %4000 = vpow2.f32 %v5641_v55  ;;  %v6401_v31 = vld [vmem:[#allocation40_spill] sm:$0xff] }
 0x306   :  { %v3043_v62 = vsel %vm3042_vm3, %v3035_v30, %v3041_v15  ;;  %v3983_v47 = vpop.eup %3982  ;;  %v2747_v0 = vadd.f32 %v5628_v54, %v2540_v39  ;;  %v2541_v19 = vmul.f32 %v3981_v21, %v5491_v49  ;;  %4002 = vpow2.f32 %v5654_v17  ;;  %v5730_v17 = vpop.f32.mrb[84].mxu1  ;;  %v6403_v15 = vld [vmem:[#allocation41_spill] sm:$0xff] }
 0x307   :  { %v5717_v18 = vadd.f32 %v5208_v46, %v5355_v48  ;;  %v3985_v3 = vpop.eup %3984  ;;  %3064 = vst [vmem:[#allocation2] sm:$0xff] %v3043_v62  ;;  %v2734_v50 = vadd.f32 %v5631_v34, %v2539_v58  ;;  %v2548_v51 = vmul.f32 %v3983_v47, %v5512_v37  ;;  %4004 = vpow2.f32 %v3276_v25  ;;  %6400 = vst [vmem:[#allocation77_spill] sm:$0xff] %v5730_v17  ;;  %v6405_v62 = vld [vmem:[#allocation42_spill] sm:$0xff]  ;;  %v6407_v58 = vld [vmem:[#allocation43_spill] sm:$0xff] }
 0x308   :  { %v5723_v10 = vadd.f32 %v5210_v6, %v5362_v43  ;;  %v3987_v54 = vpop.eup %3986  ;;  %v2760_v55 = vadd.f32 %v2759_v53, %v2541_v19  ;;  %v2550_v49 = vmul.f32 %v3985_v3, %v5516_v2  ;;  %4006 = vpow2.f32 %v3283_v60  ;;  %v5734_v6 = vpop.f32.mrb[85].mxu1  ;;  %v6408_v3 = vld [vmem:[#allocation45_spill] sm:$0xff] }
 0x309   :  { %v5728_v46 = vadd.f32 %v5212_v35, %v5259_v57  ;;  %v3989_v30 = vpop.eup %3988  ;;  %v2722_v34 = vadd.f32 %v2721_v4, %v2548_v51  ;;  %v2549_v37 = vmul.f32 %v3987_v54, %v6401_v31  ;;  %4008 = vpow2.f32 %v3285_v1  ;;  %6402 = vst [vmem:[#allocation40_spill] sm:$0xff] %v5734_v6  ;;  %v5738_v35 = vpop.f32.mrb[86].mxu1 }
 0x30a   :  { %v3295_v25 = vmul.f32 -1.442695, %v5701_v44  ;;  %v3991_v42 = vpop.eup %3990  ;;  %v2748_v22 = vadd.f32 %v2747_v0, %v2550_v49  ;;  %v2551_v2 = vmul.f32 %v3989_v30, %v6403_v15  ;;  %4010 = vpow2.f32 %v3284_v61  ;;  %6404 = vst [vmem:[#allocation41_spill] sm:$0xff] %v5738_v35  ;;  %v5742_v39 = vpop.f32.mrb[87].mxu1  ;;  %v6410_v30 = vld [vmem:[#allocation52_spill] sm:$0xff]  ;;  %v6421_v35 = vld [vmem:[#allocation59_spill] sm:$0xff] }
 0x30b   :  { %v3294_v60 = vmul.f32 -1.442695, %v5717_v18  ;;  %v3993_v32 = vpop.eup %3992  ;;  %v2735_v26 = vadd.f32 %v2734_v50, %v2549_v37  ;;  %v2558_v53 = vmul.f32 %v3991_v42, %v6405_v62  ;;  %4012 = vpow2.f32 %v3286_v24  ;;  %6406 = vst [vmem:[#allocation42_spill] sm:$0xff] %v5742_v39  ;;  %v6409_v24 = vld [vmem:[#allocation46_spill] sm:$0xff] }
 0x30c   :  { %v3296_v1 = vmul.f32 -1.442695, %v5723_v10  ;;  %v3995_v21 = vpop.eup %3994  ;;  %v2761_v4 = vadd.f32 %v2760_v55, %v2551_v2  ;;  %v2560_v47 = vmul.f32 %v3993_v32, %v6407_v58  ;;  %4014 = vpow2.f32 %v3293_v56  ;;  %v6412_v2 = vld [vmem:[#allocation53_spill] sm:$0xff]  ;;  %v6414_v58 = vld [vmem:[#allocation24_spill] sm:$0xff] }
 0x30d   :  { %v3303_v61 = vmul.f32 -1.442695, %v5728_v46  ;;  %v3997_v0 = vpop.eup %3996  ;;  %v5746_v19 = vadd.f32 %v2722_v34, %v2558_v53  ;;  %v2559_v51 = vmul.f32 %v3995_v21, %v6408_v3  ;;  %4016 = vpow2.f32 %v3295_v25  ;;  %v6411_v34 = vld [vmem:[#allocation21_spill] sm:$0xff] }
 0x30e   :  { %v3999_v50 = vpop.eup %3998  ;;  %v5749_v54 = vadd.f32 %v2748_v22, %v2560_v47  ;;  %v2561_v49 = vmul.f32 %v3997_v0, %v6409_v24  ;;  %4018 = vpow2.f32 %v3294_v60  ;;  %v5754_v55 = vadd.f32 %v6410_v30, %v5352_v8 }
 0x30f   :  { %v4001_v31 = vpop.eup %4000  ;;  %v5756_v56 = vadd.f32 %v2735_v26, %v2559_v51  ;;  %v2088_v37 = vadd.f32 1.0, %v3999_v50  ;;  %4020 = vpow2.f32 %v3296_v1  ;;  %v5760_v42 = vadd.f32 %v6411_v34, %v5355_v48  ;;  %v6413_v26 = vld [vmem:[#allocation23_spill] sm:$0xff] }
 0x310   :  { %v4003_v25 = vpop.eup %4002  ;;  %v5762_v15 = vadd.f32 %v2761_v4, %v2561_v49  ;;  %v2090_v22 = vadd.f32 1.0, %v4001_v31  ;;  %4022 = vpow2.f32 %v3303_v61  ;;  %v5766_v60 = vadd.f32 %v6412_v2, %v5362_v43 }
 0x311   :  { %v4005_v32 = vpop.eup %4004  ;;  %4024 = vrcp.f32 %v2088_v37  ;;  %v2089_v62 = vadd.f32 1.0, %v4003_v25  ;;  %v5770_v53 = vadd.f32 %v6413_v26, %v5259_v57  ;;  %v5774_v4 = vadd.f32 %v6414_v58, %v5352_v8  ;;  %v6415_v37 = vld [vmem:[#allocation26_spill] sm:$0xff] }
 0x312   :  { %v4007_v1 = vpop.eup %4006  ;;  %4026 = vrcp.f32 %v2090_v22  ;;  %v2091_v21 = vadd.f32 1.0, %v4005_v32  ;;  %v3305_v0 = vmul.f32 -1.442695, %v5754_v55  ;;  %v3304_v50 = vmul.f32 -1.442695, %v5760_v42  ;;  %v6416_v32 = vld [vmem:[#allocation54_spill] sm:$0xff] }
 0x313   :  { %v4009_v47 = vpop.eup %4008  ;;  %4028 = vrcp.f32 %v2089_v62  ;;  %v2098_v61 = vadd.f32 1.0, %v4007_v1  ;;  %v3306_v24 = vmul.f32 -1.442695, %v5766_v60  ;;  %v3313_v31 = vmul.f32 -1.442695, %v5770_v53 }
 0x314   :  { %v4011_v3 = vpop.eup %4010  ;;  %4030 = vrcp.f32 %v2091_v21  ;;  %v2100_v51 = vadd.f32 1.0, %v4009_v47  ;;  %v5782_v34 = vadd.f32 %v6415_v37, %v5355_v48  ;;  %v3315_v2 = vmul.f32 -1.442695, %v5774_v4  ;;  %v6417_v21 = vld [vmem:[#allocation55_spill] sm:$0xff]  ;;  %v6418_v47 = vld [vmem:[#allocation56_spill] sm:$0xff] }
 0x315   :  { %v4013_v49 = vpop.eup %4012  ;;  %4032 = vrcp.f32 %v2098_v61  ;;  %v2099_v30 = vadd.f32 1.0, %v4011_v3  ;;  %v5787_v62 = vadd.f32 %v6416_v32, %v5362_v43  ;;  %v5791_v58 = vadd.f32 %v6417_v21, %v5259_v57  ;;  %v6420_v32 = vld [vmem:[#allocation58_spill] sm:$0xff] }
 0x316   :  { %v4015_v25 = vpop.eup %4014  ;;  %4034 = vrcp.f32 %v2100_v51  ;;  %v2101_v22 = vadd.f32 1.0, %v4013_v49  ;;  %v5795_v61 = vadd.f32 %v6418_v47, %v5352_v8  ;;  %v6419_v49 = vld [vmem:[#allocation57_spill] sm:$0xff]  ;;  %v5803_v39 = vadd.f32 %v6420_v32, %v5362_v43 }
 0x317   :  { %v4017_v26 = vpop.eup %4016  ;;  %4036 = vrcp.f32 %v2099_v30  ;;  %v2108_v1 = vadd.f32 1.0, %v4015_v25  ;;  %v5799_v37 = vadd.f32 %v6419_v49, %v5355_v48  ;;  %v3314_v21 = vmul.f32 -1.442695, %v5782_v34  ;;  %v6422_v49 = vld [vmem:[#allocation60_spill] sm:$0xff] }
 0x318   :  { %v4019_v3 = vpop.eup %4018  ;;  %4038 = vrcp.f32 %v2101_v22  ;;  %v2110_v51 = vadd.f32 1.0, %v4017_v26  ;;  %v5808_v47 = vadd.f32 %v6421_v35, %v5259_v57  ;;  %v3316_v26 = vmul.f32 -1.442695, %v5787_v62 }
 0x319   :  { %v4021_v30 = vpop.eup %4020  ;;  %4040 = vrcp.f32 %v2108_v1  ;;  %v2109_v25 = vadd.f32 1.0, %v4019_v3  ;;  %v5813_v17 = vadd.f32 %v6422_v49, %v5352_v8  ;;  %v3323_v1 = vmul.f32 -1.442695, %v5791_v58 }
 0x31a   :  { %v4023_v6 = vpop.eup %4022  ;;  %4042 = vrcp.f32 %v2110_v51  ;;  %v2111_v22 = vadd.f32 1.0, %v4021_v30  ;;  %v3325_v3 = vmul.f32 -1.442695, %v5795_v61  ;;  %v3324_v51 = vmul.f32 -1.442695, %v5799_v37 }
 0x31b   :  { %v4025_v32 = vpop.eup %4024  ;;  %4044 = vrcp.f32 %v2109_v25  ;;  %v2118_v5 = vadd.f32 1.0, %v4023_v6  ;;  %v3326_v30 = vmul.f32 -1.442695, %v5803_v39  ;;  %v3333_v49 = vmul.f32 -1.442695, %v5808_v47  ;;  %v6423_v6 = vld [vmem:[#allocation61_spill] sm:$0xff] }
 0x31c   :  { %v4027_v14 = vpop.eup %4026  ;;  %v2568_v35 = vmul.f32 %v4025_v32, %v5581_v59  ;;  %4046 = vrcp.f32 %v2111_v22  ;;  %v5824_v25 = vadd.f32 %v6423_v6, %v5355_v48  ;;  %v5829_v22 = vmul.f32 -1.442695, %v5813_v17 }
 0x31d   :  { %v4029_v12 = vpop.eup %4028  ;;  %v2570_v36 = vmul.f32 %v4027_v14, %v5587_v52  ;;  %4048 = vrcp.f32 %v2118_v5  ;;  %v6424_v14 = vld [vmem:[#allocation62_spill] sm:$0xff] }
 0x31e   :  { %v4031_v38 = vpop.eup %4030  ;;  %v2724_v20 = vadd.f32 %v5746_v19, %v2568_v35  ;;  %v2569_v59 = vmul.f32 %v4029_v12, %v5591_v41  ;;  %4050 = vpow2.f32 %v3305_v0  ;;  %v5835_v5 = vadd.f32 %v6424_v14, %v5362_v43  ;;  %v6425_v41 = vld [vmem:[#allocation63_spill] sm:$0xff] }
 0x31f   :  { %v4033_v32 = vpop.eup %4032  ;;  %v2750_v7 = vadd.f32 %v5749_v54, %v2570_v36  ;;  %v2571_v52 = vmul.f32 %v4031_v38, %v5648_v13  ;;  %4052 = vpow2.f32 %v3304_v50  ;;  %v5841_v12 = vadd.f32 %v6425_v41, %v5259_v57  ;;  %v6426_v38 = vld [vmem:[#allocation64_spill] sm:$0xff] }
 0x320   :  { %v4035_v6 = vpop.eup %4034  ;;  %v2737_v11 = vadd.f32 %v5756_v56, %v2569_v59  ;;  %v2578_v19 = vmul.f32 %v4033_v32, %v5661_v16  ;;  %4054 = vpow2.f32 %v3306_v24  ;;  %v5847_v54 = vadd.f32 %v6426_v38, %v5352_v8 }
 0x321   :  { %v4037_v0 = vpop.eup %4036  ;;  %v2763_v36 = vadd.f32 %v5762_v15, %v2571_v52  ;;  %v2580_v13 = vmul.f32 %v4035_v6, %v5665_v9  ;;  %4056 = vpow2.f32 %v3313_v31  ;;  %v5851_v16 = vmul.f32 -1.442695, %v5824_v25 }
 0x322   :  { %v4039_v50 = vpop.eup %4038  ;;  %v2725_v35 = vadd.f32 %v2724_v20, %v2578_v19  ;;  %v2579_v56 = vmul.f32 %v4037_v0, %v5669_v23  ;;  %4058 = vpow2.f32 %v3315_v2  ;;  %v5855_v9 = vmul.f32 -1.442695, %v5835_v5  ;;  %v6427_v19 = vld [vmem:[#allocation65_spill] sm:$0xff] }
 0x323   :  { %v4041_v24 = vpop.eup %4040  ;;  %v2751_v59 = vadd.f32 %v2750_v7, %v2580_v13  ;;  %v2581_v32 = vmul.f32 %v4039_v50, %v5673_v27  ;;  %4060 = vpow2.f32 %v3314_v21  ;;  %v5860_v20 = vmul.f32 -1.442695, %v5841_v12 }
 0x324   :  { %v5857_v15 = vpop.eup %4042  ;;  %v2726_v31 = vrot.slane %v2725_v35, 4  ;;  %v2738_v52 = vadd.f32 %v2737_v11, %v2579_v56  ;;  %4062 = vpow2.f32 %v3316_v26  ;;  %v5865_v7 = vmul.f32 -1.442695, %v5847_v54 }
 0x325   :  { %v5862_v23 = vpop.eup %4044  ;;  %v2752_v2 = vrot.slane %v2751_v59, 4  ;;  %v2764_v14 = vadd.f32 %v2763_v36, %v2581_v32  ;;  %4064 = vpow2.f32 %v3323_v1  ;;  %v5871_v11 = vadd.f32 %v6427_v19, %v5355_v48 }
 0x326   :  { %v5867_v27 = vpop.eup %4046  ;;  %v2727_v21 = vadd.f32 %v2726_v31, %v2725_v35  ;;  %v2739_v6 = vrot.slane %v2738_v52, 4  ;;  %4066 = vpow2.f32 %v3325_v3  ;;  %v2588_v13 = vmul.f32 %v4041_v24, %v5678_v45 }
 0x327   :  { %v4049_v26 = vpop.eup %4048  ;;  %v2753_v41 = vadd.f32 %v2752_v2, %v2751_v59  ;;  %v2765_v0 = vrot.slane %v2764_v14, 4  ;;  %4068 = vpow2.f32 %v3324_v51 }
 0x328   :  { %v4051_v36 = vpop.eup %4050  ;;  %v2728_v1 = vrot.slane %v2727_v21, 2  ;;  %v2740_v38 = vadd.f32 %v2739_v6, %v2738_v52  ;;  %v2598_v50 = vmul.f32 %v4049_v26, %v5728_v46  ;;  %4070 = vpow2.f32 %v3326_v30 }
 0x329   :  { %v4053_v56 = vpop.eup %4052  ;;  %v2754_v35 = vrot.slane %v2753_v41, 2  ;;  %v2766_v32 = vadd.f32 %v2765_v0, %v2764_v14  ;;  %v2120_v3 = vadd.f32 1.0, %v4051_v36  ;;  %4072 = vpow2.f32 %v3333_v49 }
 0x32a   :  { %v4055_v31 = vpop.eup %4054  ;;  %v2729_v19 = vadd.f32 %v2728_v1, %v2727_v21  ;;  %v2741_v63 = vrot.slane %v2740_v38, 2  ;;  %v5875_v40 = vadd.f32 %v2598_v50, %v2588_v13  ;;  %v2119_v59 = vadd.f32 1.0, %v4053_v56 }
 0x32b   :  { %v4057_v2 = vpop.eup %4056  ;;  %v2755_v45 = vadd.f32 %v2754_v35, %v2753_v41  ;;  %v2767_v51 = vrot.slane %v2766_v32, 2  ;;  %4074 = vrcp.f32 %v2120_v3  ;;  %v2121_v24 = vadd.f32 1.0, %v4055_v31 }
 0x32c   :  { %v4059_v52 = vpop.eup %4058  ;;  %v2730_v6 = vrot.slane %v2729_v19, 1  ;;  %v2742_v46 = vadd.f32 %v2741_v63, %v2740_v38  ;;  %4076 = vrcp.f32 %v2119_v59  ;;  %v2128_v30 = vadd.f32 1.0, %v4057_v2  ;;  %v6428_v38 = vld [vmem:[#allocation66_spill] sm:$0xff] }
 0x32d   :  { %v4061_v26 = vpop.eup %4060  ;;  %v2756_v14 = vrot.slane %v2755_v45, 1  ;;  %v2768_v0 = vadd.f32 %v2767_v51, %v2766_v32  ;;  %4078 = vrcp.f32 %v2121_v24  ;;  %v2130_v49 = vadd.f32 1.0, %v4059_v52  ;;  %v6429_v51 = vld [vmem:[#allocation27_spill] sm:$0xff] }
 0x32e   :  { %v4063_v21 = vpop.eup %4062  ;;  %v2731_v36 = vadd.f32 %v2730_v6, %v2729_v19  ;;  %v2743_v13 = vrot.slane %v2742_v46, 1  ;;  %4080 = vrcp.f32 %v2128_v30  ;;  %v2129_v1 = vadd.f32 1.0, %v4061_v26 }
 0x32f   :  { %v4065_v50 = vpop.eup %4064  ;;  %v2757_v41 = vadd.f32 %v2756_v14, %v2755_v45  ;;  %v2769_v56 = vrot.slane %v2768_v0, 1  ;;  %4082 = vrcp.f32 %v2130_v49  ;;  %v2131_v35 = vadd.f32 1.0, %v4063_v21 }
 0x330   :  { %v4067_v3 = vpop.eup %4066  ;;  %v2744_v31 = vadd.f32 %v2743_v13, %v2742_v46  ;;  %4084 = vrcp.f32 %v2129_v1  ;;  %v2138_v63 = vadd.f32 1.0, %v4065_v50  ;;  %v5879_v59 = vadd.f32 %v6428_v38, %v5362_v43  ;;  %v6430_v46 = vld [vmem:[#allocation67_spill] sm:$0xff] }
 0x331   :  { %v4069_v32 = vpop.eup %4068  ;;  %v2770_v2 = vadd.f32 %v2769_v56, %v2768_v0  ;;  %4086 = vrcp.f32 %v2131_v35  ;;  %v2140_v19 = vadd.f32 1.0, %v4067_v3  ;;  %v5883_v24 = vadd.f32 %v6429_v51, %v5259_v57 }
 0x332   :  { %v4071_v45 = vpop.eup %4070  ;;  %v2964_v52 = vcombine.low %v2731_v36, %v2744_v31  ;;  %4088 = vrcp.f32 %v2138_v63  ;;  %v2139_v6 = vadd.f32 1.0, %v4069_v32  ;;  %v5887_v30 = vadd.f32 %v6430_v46, %v5352_v8 }
 0x333   :  { %v4073_v26 = vpop.eup %4072  ;;  %v2965_v14 = vcombine.low %v2757_v41, %v2770_v2  ;;  %4090 = vrcp.f32 %v2140_v19  ;;  %v2141_v49 = vadd.f32 1.0, %v4071_v45  ;;  %v3344_v0 = vmul.f32 -1.442695, %v5871_v11  ;;  %v6431_v41 = vld [vmem:[#allocation68_spill] sm:$0xff] }
 0x334   :  { %v5891_v21 = vrot.slane %v2964_v52, %v5058_v33  ;;  %4092 = vrcp.f32 %v2139_v6  ;;  %v2148_v13 = vadd.f32 1.0, %v4073_v26  ;;  %v3346_v1 = vmul.f32 -1.442695, %v5879_v59 }
 0x335   :  { %v4075_v36 = vpop.eup %4074  ;;  %v5895_v50 = vrot.slane %v2965_v14, %v5058_v33  ;;  %4094 = vrcp.f32 %v2141_v49  ;;  %v3353_v56 = vmul.f32 -1.442695, %v5883_v24  ;;  %v5900_v35 = vadd.f32 %v6431_v41, %v5355_v48 }
 0x336   :  { %v4077_v3 = vpop.eup %4076  ;;  %v2590_v31 = vmul.f32 %v5857_v15, %v5701_v44  ;;  %v2600_v63 = vmul.f32 %v4075_v36, %v5754_v55  ;;  %4096 = vrcp.f32 %v2148_v13  ;;  %v3355_v38 = vmul.f32 -1.442695, %v5887_v30 }
 0x337   :  { %v4079_v32 = vpop.eup %4078  ;;  %v2980_v2 = vcombine.low %v5891_v21, %v5895_v50  ;;  %v2589_v19 = vmul.f32 %v5862_v23, %v5717_v18  ;;  %v2599_v51 = vmul.f32 %v4077_v3, %v5760_v42  ;;  %4098 = vpow2.f32 %v5829_v22  ;;  %v6432_v18 = vld [vmem:[#allocation69_spill] sm:$0xff] }
 0x338   :  { %v4081_v45 = vpop.eup %4080  ;;  %v2591_v44 = vmul.f32 %v5867_v27, %v5723_v10  ;;  %v2875_v15 = vadd.f32 %v2600_v63, %v2590_v31  ;;  %v2601_v55 = vmul.f32 %v4079_v32, %v5766_v60  ;;  %4100 = vpow2.f32 %v5851_v16  ;;  %v6433_v10 = vld [vmem:[#allocation70_spill] sm:$0xff] }
 0x339   :  { %v4083_v52 = vpop.eup %4082  ;;  %v2862_v6 = vadd.f32 %v2599_v51, %v2589_v19  ;;  %v2608_v46 = vmul.f32 %v4081_v45, %v5770_v53  ;;  %4102 = vpow2.f32 %v5855_v9  ;;  %v5920_v42 = vadd.f32 %v6432_v18, %v5362_v43  ;;  %v6434_v9 = vld [vmem:[#allocation71_spill] sm:$0xff] }
 0x33a   :  { %v4085_v22 = vpop.eup %4084  ;;  %v2888_v23 = vadd.f32 %v2601_v55, %v2591_v44  ;;  %v2610_v26 = vmul.f32 %v4083_v52, %v5774_v4  ;;  %4104 = vpow2.f32 %v5860_v20  ;;  %v5926_v60 = vadd.f32 %v6433_v10, %v5259_v57 }
 0x33b   :  { %v4087_v16 = vpop.eup %4086  ;;  %v2850_v27 = vadd.f32 %v5875_v40, %v2608_v46  ;;  %v2609_v53 = vmul.f32 %v4085_v22, %v5782_v34  ;;  %4106 = vpow2.f32 %v5865_v7  ;;  %v5933_v14 = vadd.f32 %v6434_v9, %v5352_v8  ;;  %v6436_v22 = vld [vmem:[#allocation17_spill] sm:$0xff] }
 0x33c   :  { %v4089_v49 = vpop.eup %4088  ;;  %v2876_v13 = vadd.f32 %v2875_v15, %v2610_v26  ;;  %v2611_v4 = vmul.f32 %v4087_v16, %v5787_v62  ;;  %4108 = vpow2.f32 %v3344_v0  ;;  %v3354_v20 = vmul.f32 -1.442695, %v5900_v35 }
 0x33d   :  { %v4091_v57 = vpop.eup %4090  ;;  %v2863_v36 = vadd.f32 %v2862_v6, %v2609_v53  ;;  %v2618_v41 = vmul.f32 %v4089_v49, %v5791_v58  ;;  %4110 = vpow2.f32 %v3346_v1  ;;  %v3356_v40 = vmul.f32 -1.442695, %v5920_v42 }
 0x33e   :  { %v4093_v34 = vpop.eup %4092  ;;  %v2889_v7 = vadd.f32 %v2888_v23, %v2611_v4  ;;  %v2620_v3 = vmul.f32 %v4091_v57, %v5795_v61  ;;  %4112 = vpow2.f32 %v3353_v56  ;;  %v3363_v8 = vmul.f32 -1.442695, %v5926_v60  ;;  %v3070_v57 = vld [vmem:[#allocation2] sm:$0xff] }
 0x33f   :  { %v4095_v31 = vpop.eup %4094  ;;  %v2851_v63 = vadd.f32 %v2850_v27, %v2618_v41  ;;  %v2619_v62 = vmul.f32 %v4093_v34, %v5799_v37  ;;  %4114 = vpow2.f32 %v3355_v38  ;;  %v3365_v0 = vmul.f32 -1.442695, %v5933_v14  ;;  %v526_v37 = vld [vmem:[#allocation11 + $0x8] sm:$0x3]  ;;  %v6440_v34 = vld [vmem:[#allocation29_spill] sm:$0xff] }
 0x340   :  { %v4097_v32 = vpop.eup %4096  ;;  %v5943_v19 = vadd.f32 %v2876_v13, %v2620_v3  ;;  %v2621_v58 = vmul.f32 %v4095_v31, %v5803_v39  ;;  %4116 = vpow2.f32 %v3354_v20  ;;  %v6437_v23 = vsub.s32 0, %v6436_v22  ;;  %v6441_v31 = vld [vmem:[#allocation30_spill] sm:$0xff] }
 0x341   :  { %v4099_v1 = vpop.eup %4098  ;;  %v5946_v51 = vadd.f32 %v2863_v36, %v2619_v62  ;;  %v2628_v61 = vmul.f32 %v4097_v32, %v5808_v47  ;;  %4118 = vpow2.f32 %v3356_v40  ;;  %v6435_v47 = vld [vmem:[#allocation72_spill] sm:$0xff]  ;;  %v6438_v27 = vsub.s32 1, %v6436_v22 }
 0x342   :  { %v4101_v56 = vpop.eup %4100  ;;  %v5949_v45 = vadd.f32 %v2889_v7, %v2621_v58  ;;  %v2150_v44 = vadd.f32 1.0, %v4099_v1  ;;  %4120 = vpow2.f32 %v3363_v8  ;;  %v5955_v18 = vadd.f32 %v6435_v47, %v5355_v48  ;;  %v6439_v48 = vld [vmem:[#allocation28_spill] sm:$0xff]  ;;  %v6443_v58 = vld [vmem:[#allocation39_spill] sm:$0xff] }
 0x343   :  { %v4103_v38 = vpop.eup %4102  ;;  %v5951_v15 = vadd.f32 %v2851_v63, %v2628_v61  ;;  %v2149_v55 = vadd.f32 1.0, %v4101_v56  ;;  %4122 = vpow2.f32 %v3365_v0  ;;  %v5959_v26 = vrot.slane %v526_v37, %v6437_v23 }
 0x344   :  { %v4105_v52 = vpop.eup %4104  ;;  %4124 = vrcp.f32 %v2150_v44  ;;  %v2151_v39 = vadd.f32 1.0, %v4103_v38  ;;  %v5963_v53 = vrot.slane %v526_v37, %v6438_v27  ;;  %v5967_v20 = vadd.f32 %v6439_v48, %v5362_v43  ;;  %v6442_v43 = vld [vmem:[#allocation31_spill] sm:$0xff]  ;;  %v6444_v38 = vld [vmem:[#allocation44_spill] sm:$0xff] }
 0x345   :  { %v4107_v6 = vpop.eup %4106  ;;  %4126 = vrcp.f32 %v2149_v55  ;;  %v2158_v46 = vadd.f32 1.0, %v4105_v52  ;;  %v3364_v40 = vmul.f32 -1.442695, %v5955_v18  ;;  %v5972_v7 = vadd.f32 %v6440_v34, %v5959_v26 }
 0x346   :  { %v4109_v10 = vpop.eup %4108  ;;  %4128 = vrcp.f32 %v2151_v39  ;;  %v2160_v16 = vadd.f32 1.0, %v4107_v6  ;;  %v5976_v63 = vadd.f32 %v6441_v31, %v5959_v26  ;;  %v5980_v62 = vadd.f32 %v6442_v43, %v5963_v53 }
 0x347   :  { %v4111_v9 = vpop.eup %4110  ;;  %4130 = vrcp.f32 %v2158_v46  ;;  %v2159_v49 = vadd.f32 1.0, %v4109_v10  ;;  %v5984_v1 = vadd.f32 %v6443_v58, %v5963_v53  ;;  %v3073_v61 = vmul.f32 0.015625, %v3070_v57  ;;  %v6445_v46 = vld [vmem:[#allocation32_spill] sm:$0xff] }
 0x348   :  { %v4113_v13 = vpop.eup %4112  ;;  %4132 = vrcp.f32 %v2160_v16  ;;  %v2161_v4 = vadd.f32 1.0, %v4111_v9  ;;  %v3366_v37 = vmul.f32 -1.442695, %v5967_v20  ;;  %v5989_v55 = vadd.f32 %v6444_v38, %v5959_v26  ;;  %v6446_v16 = vld [vmem:[#allocation33_spill] sm:$0xff] }
 0x349   :  { %v4115_v36 = vpop.eup %4114  ;;  %4134 = vrcp.f32 %v2159_v49  ;;  %v2168_v41 = vadd.f32 1.0, %v4113_v13  ;;  %v3217_v6 = vmul.f32 -1.442695, %v5972_v7  ;;  %v5994_v47 = vadd.f32 %v6445_v46, %v5959_v26  ;;  %3076 = vst [vmem:[#allocation12] sm:$0xff] %v3073_v61 }
 0x34a   :  { %v4117_v3 = vpop.eup %4116  ;;  %4136 = vrcp.f32 %v2161_v4  ;;  %v2170_v8 = vadd.f32 1.0, %v4115_v36  ;;  %v3257_v10 = vmul.f32 -1.442695, %v5976_v63  ;;  %v5999_v27 = vadd.f32 %v6446_v16, %v5963_v53 }
 0x34b   :  { %v4119_v0 = vpop.eup %4118  ;;  %4138 = vrcp.f32 %v2168_v41  ;;  %v2169_v32 = vadd.f32 1.0, %v4117_v3  ;;  %v3218_v13 = vmul.f32 -1.442695, %v5980_v62  ;;  %v3258_v4 = vmul.f32 -1.442695, %v5984_v1  ;;  %v6447_v41 = vld [vmem:[#allocation34_spill] sm:$0xff] }
 0x34c   :  { %v4121_v56 = vpop.eup %4120  ;;  %4140 = vrcp.f32 %v2170_v8  ;;  %v2171_v44 = vadd.f32 1.0, %v4119_v0  ;;  %v3227_v36 = vmul.f32 -1.442695, %v5989_v55  ;;  %v6008_v34 = vadd.f32 %v6447_v41, %v5963_v53 }
 0x34d   :  { %v4123_v52 = vpop.eup %4122  ;;  %4142 = vrcp.f32 %v2169_v32  ;;  %v2178_v39 = vadd.f32 1.0, %v4121_v56  ;;  %v3267_v31 = vmul.f32 -1.442695, %v5994_v47  ;;  %v3228_v32 = vmul.f32 -1.442695, %v5999_v27 }
 0x34e   :  { %v4125_v22 = vpop.eup %4124  ;;  %4144 = vrcp.f32 %v2171_v44  ;;  %v2180_v23 = vadd.f32 1.0, %v4123_v52 }
 0x34f   :  { %v4127_v9 = vpop.eup %4126  ;;  %v2630_v49 = vmul.f32 %v4125_v22, %v5813_v17  ;;  %4146 = vrcp.f32 %v2178_v39 }
 0x350   :  { %v4129_v48 = vpop.eup %4128  ;;  %v2629_v57 = vmul.f32 %v4127_v9, %v5824_v25  ;;  %4148 = vrcp.f32 %v2180_v23 }
 0x351   :  { %v4131_v3 = vpop.eup %4130  ;;  %v2878_v8 = vadd.f32 %v5943_v19, %v2630_v49  ;;  %v2631_v17 = vmul.f32 %v4129_v48, %v5835_v5  ;;  %4150 = vpow2.f32 %v3364_v40  ;;  %v6448_v19 = vld [vmem:[#allocation35_spill] sm:$0xff] }
 0x352   :  { %v4133_v43 = vpop.eup %4132  ;;  %v2865_v0 = vadd.f32 %v5946_v51, %v2629_v57  ;;  %v2638_v25 = vmul.f32 %v4131_v3, %v5841_v12  ;;  %4152 = vpow2.f32 %v3366_v37  ;;  %v6020_v5 = vadd.f32 %v6448_v19, %v5959_v26  ;;  %v6449_v12 = vld [vmem:[#allocation36_spill] sm:$0xff] }
 0x353   :  { %v4135_v58 = vpop.eup %4134  ;;  %v2891_v61 = vadd.f32 %v5949_v45, %v2631_v17  ;;  %v2640_v56 = vmul.f32 %v4133_v43, %v5847_v54  ;;  %4154 = vpow2.f32 %v3217_v6  ;;  %v6026_v37 = vadd.f32 %v6449_v12, %v5959_v26  ;;  %v6450_v54 = vld [vmem:[#allocation37_spill] sm:$0xff] }
 0x354   :  { %v4137_v40 = vpop.eup %4136  ;;  %v2853_v44 = vadd.f32 %v5951_v15, %v2638_v25  ;;  %v2639_v51 = vmul.f32 %v4135_v58, %v5871_v11  ;;  %4156 = vpow2.f32 %v3257_v10  ;;  %v6031_v39 = vadd.f32 %v6450_v54, %v5963_v53 }
 0x355   :  { %v4139_v38 = vpop.eup %4138  ;;  %v2879_v52 = vadd.f32 %v2878_v8, %v2640_v56  ;;  %v2641_v45 = vmul.f32 %v4137_v40, %v5879_v59  ;;  %4158 = vpow2.f32 %v3218_v13  ;;  %v3268_v11 = vmul.f32 -1.442695, %v6008_v34  ;;  %v6452_v56 = vld [vmem:[#allocation47_spill] sm:$0xff] }
 0x356   :  { %v4141_v6 = vpop.eup %4140  ;;  %v2866_v46 = vadd.f32 %v2865_v0, %v2639_v51  ;;  %v2648_v15 = vmul.f32 %v4139_v38, %v5883_v24  ;;  %4160 = vpow2.f32 %v3258_v4  ;;  %v3237_v16 = vmul.f32 -1.442695, %v6020_v5 }
 0x357   :  { %v4143_v22 = vpop.eup %4142  ;;  %v2892_v23 = vadd.f32 %v2891_v61, %v2641_v45  ;;  %v2650_v10 = vmul.f32 %v4141_v6, %v5887_v30  ;;  %4162 = vpow2.f32 %v3227_v36  ;;  %v3277_v13 = vmul.f32 -1.442695, %v6026_v37  ;;  %v6454_v45 = vld [vmem:[#allocation73_spill] sm:$0xff] }
 0x358   :  { %v4145_v59 = vpop.eup %4144  ;;  %v2854_v9 = vadd.f32 %v2853_v44, %v2648_v15  ;;  %v2649_v49 = vmul.f32 %v4143_v22, %v5900_v35  ;;  %4164 = vpow2.f32 %v3267_v31  ;;  %v3238_v4 = vmul.f32 -1.442695, %v6031_v39  ;;  %v6453_v44 = vld [vmem:[#allocation48_spill] sm:$0xff] }
 0x359   :  { %v4147_v48 = vpop.eup %4146  ;;  %v2880_v57 = vadd.f32 %v2879_v52, %v2650_v10  ;;  %v2651_v24 = vmul.f32 %v4145_v59, %v5920_v42  ;;  %4166 = vpow2.f32 %v3228_v32  ;;  %v6451_v32 = vld [vmem:[#allocation38_spill] sm:$0xff]  ;;  %v6053_v19 = vadd.f32 %v6452_v56, %v5959_v26 }
 0x35a   :  { %v4149_v41 = vpop.eup %4148  ;;  %v6041_v3 = vadd.f32 %v2866_v46, %v2649_v49  ;;  %v2658_v30 = vmul.f32 %v4147_v48, %v5926_v60  ;;  %4168 = vpow2.f32 %v3268_v11  ;;  %v6049_v58 = vadd.f32 %v6451_v32, %v5963_v53  ;;  %v6455_v11 = vld [vmem:[#allocation74_spill] sm:$0xff] }
 0x35b   :  { %v4151_v36 = vpop.eup %4150  ;;  %v6044_v8 = vadd.f32 %v2892_v23, %v2651_v24  ;;  %v2660_v35 = vmul.f32 %v4149_v41, %v5933_v14  ;;  %4170 = vpow2.f32 %v3237_v16  ;;  %v6057_v51 = vadd.f32 %v6453_v44, %v5959_v26  ;;  %v6457_v56 = vld [vmem:[#allocation18_spill] sm:$0xff] }
 0x35c   :  { %v4153_v17 = vpop.eup %4152  ;;  %v2855_v31 = vadd.f32 %v2854_v9, %v2658_v30  ;;  %v2179_v43 = vadd.f32 1.0, %v4151_v36  ;;  %4172 = vpow2.f32 %v3277_v13  ;;  %v6061_v54 = vadd.f32 %v6454_v45, %v5963_v53  ;;  %v6459_v45 = vld [vmem:[#allocation75_spill] sm:$0xff] }
 0x35d   :  { %v4155_v42 = vpop.eup %4154  ;;  %v2881_v0 = vadd.f32 %v2880_v57, %v2660_v35  ;;  %v2181_v25 = vadd.f32 1.0, %v4153_v17  ;;  %4174 = vpow2.f32 %v3238_v4  ;;  %v3278_v15 = vmul.f32 -1.442695, %v6049_v58 }
 0x35e   :  { %v4157_v60 = vpop.eup %4156  ;;  %4176 = vrcp.f32 %v2179_v43  ;;  %v2032_v61 = vadd.f32 1.0, %v4155_v42  ;;  %v2856_v38 = vrot.slane %v2855_v31, 4  ;;  %v6066_v22 = vadd.f32 %v6455_v11, %v5963_v53 }
 0x35f   :  { %v4159_v14 = vpop.eup %4158  ;;  %4178 = vrcp.f32 %v2181_v25  ;;  %v2072_v40 = vadd.f32 1.0, %v4157_v60  ;;  %v2882_v10 = vrot.slane %v2881_v0, 4  ;;  %v3247_v59 = vmul.f32 -1.442695, %v6053_v19  ;;  %v6456_v25 = vld [vmem:[#allocation19_spill] sm:$0xff] }
 0x360   :  { %v4161_v12 = vpop.eup %4160  ;;  %4180 = vrcp.f32 %v2032_v61  ;;  %v2033_v52 = vadd.f32 1.0, %v4159_v14  ;;  %v3287_v13 = vmul.f32 -1.442695, %v6057_v51  ;;  %v6072_v48 = vadd.f32 %v5607_v29, %v5959_v26 }
 0x361   :  { %v4163_v6 = vpop.eup %4162  ;;  %4182 = vrcp.f32 %v2072_v40  ;;  %v2073_v46 = vadd.f32 1.0, %v4161_v12  ;;  %v2857_v24 = vadd.f32 %v2856_v38, %v2855_v31  ;;  %v3248_v41 = vmul.f32 -1.442695, %v6061_v54 }
 0x362   :  { %v4165_v23 = vpop.eup %4164  ;;  %4184 = vrcp.f32 %v2033_v52  ;;  %v2042_v16 = vadd.f32 1.0, %v4163_v6  ;;  %v3288_v35 = vmul.f32 -1.442695, %v6066_v22  ;;  %v6078_v17 = vadd.f32 %v5611_v28, %v5963_v53 }
 0x363   :  { %v4167_v9 = vpop.eup %4166  ;;  %4186 = vrcp.f32 %v2073_v46  ;;  %v2082_v49 = vadd.f32 1.0, %v4165_v23  ;;  %v2883_v42 = vadd.f32 %v2882_v10, %v2881_v0  ;;  %v6082_v31 = vadd.f32 %v6456_v25, %v5959_v26  ;;  %v6458_v0 = vld [vmem:[#allocation22_spill] sm:$0xff]  ;;  %v6460_v46 = vld [vmem:[#allocation20_spill] sm:$0xff] }
 0x364   :  { %v4169_v57 = vpop.eup %4168  ;;  %4188 = vrcp.f32 %v2042_v16  ;;  %v2043_v4 = vadd.f32 1.0, %v4167_v9  ;;  %v3297_v61 = vmul.f32 -1.442695, %v6072_v48  ;;  %v6087_v14 = vadd.f32 %v6457_v56, %v5963_v53 }
 0x365   :  { %v4171_v30 = vpop.eup %4170  ;;  %4190 = vrcp.f32 %v2082_v49  ;;  %v2083_v36 = vadd.f32 1.0, %v4169_v57  ;;  %v2858_v28 = vrot.slane %v2857_v24, 2  ;;  %v6091_v12 = vadd.f32 %v6458_v0, %v5959_v26 }
 0x366   :  { %v4173_v43 = vpop.eup %4172  ;;  %4192 = vrcp.f32 %v2043_v4  ;;  %v2052_v29 = vadd.f32 1.0, %v4171_v30  ;;  %v6096_v6 = vadd.f32 %v6459_v45, %v5963_v53  ;;  %v6100_v11 = vadd.f32 %v6460_v46, %v5959_v26 }
 0x367   :  { %v4175_v32 = vpop.eup %4174  ;;  %4194 = vrcp.f32 %v2083_v36  ;;  %v2092_v60 = vadd.f32 1.0, %v4173_v43  ;;  %v2884_v10 = vrot.slane %v2883_v42, 2  ;;  %v3298_v9 = vmul.f32 -1.442695, %v6078_v17 }
 0x368   :  { %v4177_v40 = vpop.eup %4176  ;;  %4196 = vrcp.f32 %v2052_v29  ;;  %v2053_v44 = vadd.f32 1.0, %v4175_v32  ;;  %v3307_v57 = vmul.f32 -1.442695, %v6082_v31  ;;  %v3308_v4 = vmul.f32 -1.442695, %v6087_v14 }
 0x369   :  { %v4179_v38 = vpop.eup %4178  ;;  %v2659_v52 = vmul.f32 %v4177_v40, %v5955_v18  ;;  %4198 = vrcp.f32 %v2092_v60  ;;  %v2859_v36 = vadd.f32 %v2858_v28, %v2857_v24  ;;  %v3317_v29 = vmul.f32 -1.442695, %v6091_v12  ;;  %v6461_v40 = vld [vmem:[#allocation76_spill] sm:$0xff] }
 0x36a   :  { %v4181_v23 = vpop.eup %4180  ;;  %v2661_v16 = vmul.f32 %v4179_v38, %v5967_v20  ;;  %4200 = vrcp.f32 %v2053_v44  ;;  %v3318_v32 = vmul.f32 -1.442695, %v6096_v6  ;;  %v2885_v60 = vadd.f32 %v2884_v10, %v2883_v42 }
 0x36b   :  { %v6104_v49 = vpop.eup %4182  ;;  %v2868_v18 = vadd.f32 %v6041_v3, %v2659_v52  ;;  %4202 = vpow2.f32 %v3278_v15  ;;  %v3327_v3 = vmul.f32 -1.442695, %v6100_v11  ;;  %v6117_v24 = vadd.f32 %v6461_v40, %v5963_v53 }
 0x36c   :  { %v4185_v30 = vpop.eup %4184  ;;  %v2894_v43 = vadd.f32 %v6044_v8, %v2661_v16  ;;  %4204 = vpow2.f32 %v3247_v59  ;;  %v2512_v28 = vmul.f32 %v4181_v23, %v5972_v7  ;;  %v2860_v0 = vrot.slane %v2859_v36, 1 }
 0x36d   :  { %v6111_v20 = vpop.eup %4186  ;;  %v2869_v25 = vrot.slane %v2868_v18, 4  ;;  %4206 = vpow2.f32 %v3287_v13  ;;  %v2513_v52 = vmul.f32 %v4185_v30, %v5980_v62  ;;  %v2886_v16 = vrot.slane %v2885_v60, 1 }
 0x36e   :  { %v4189_v15 = vpop.eup %4188  ;;  %v2895_v56 = vrot.slane %v2894_v43, 4  ;;  %4208 = vpow2.f32 %v3248_v41  ;;  %v3328_v7 = vmul.f32 -1.442695, %v6117_v24  ;;  %v2861_v30 = vadd.f32 %v2860_v0, %v2859_v36  ;;  %v6462_v0 = vld [vmem:[#allocation25_spill] sm:$0xff] }
 0x36f   :  { %v6119_v8 = vpop.eup %4190  ;;  %v2870_v59 = vadd.f32 %v2869_v25, %v2868_v18  ;;  %v2522_v44 = vmul.f32 %v4189_v15, %v5989_v55  ;;  %4210 = vpow2.f32 %v3288_v35 }
 0x370   :  { %v4193_v13 = vpop.eup %4192  ;;  %v2896_v38 = vadd.f32 %v2895_v56, %v2894_v43  ;;  %4212 = vpow2.f32 %v3297_v61  ;;  %v2887_v56 = vadd.f32 %v2886_v16, %v2885_v60 }
 0x371   :  { %v6124_v42 = vpop.eup %4194  ;;  %v2871_v41 = vrot.slane %v2870_v59, 2  ;;  %v2771_v45 = vadd.f32 %v2522_v44, %v2512_v28  ;;  %v2523_v46 = vmul.f32 %v4193_v13, %v5999_v27  ;;  %4214 = vpow2.f32 %v3298_v9 }
 0x372   :  { %v4197_v10 = vpop.eup %4196  ;;  %v2897_v18 = vrot.slane %v2896_v38, 2  ;;  %4216 = vpow2.f32 %v3307_v57 }
 0x373   :  { %v6128_v55 = vpop.eup %4198  ;;  %v2872_v35 = vadd.f32 %v2871_v41, %v2870_v59  ;;  %v2784_v23 = vadd.f32 %v2523_v46, %v2513_v52  ;;  %v2532_v62 = vmul.f32 %v4197_v10, %v6020_v5  ;;  %4218 = vpow2.f32 %v3308_v4 }
 0x374   :  { %v4201_v61 = vpop.eup %4200  ;;  %v2898_v43 = vadd.f32 %v2897_v18, %v2896_v38  ;;  %4220 = vpow2.f32 %v3317_v29  ;;  %v6138_v38 = vadd.f32 %v6462_v0, %v5959_v26 }
 0x375   :  { %v4203_v25 = vpop.eup %4202  ;;  %v2873_v27 = vrot.slane %v2872_v35, 1  ;;  %v6131_v9 = vadd.f32 %v2771_v45, %v2532_v62  ;;  %v2533_v15 = vmul.f32 %v4201_v61, %v6031_v39  ;;  %4222 = vpow2.f32 %v3318_v32 }
 0x376   :  { %v4205_v57 = vpop.eup %4204  ;;  %v2899_v40 = vrot.slane %v2898_v43, 1  ;;  %v2093_v28 = vadd.f32 1.0, %v4203_v25  ;;  %4224 = vpow2.f32 %v3327_v3  ;;  %v6463_v3 = vld [vmem:[#allocation49_spill] sm:$0xff]  ;;  %v3337_v62 = vmul.f32 -1.442695, %v6138_v38  ;;  %v6464_v25 = vld [vmem:[#allocation50_spill] sm:$0xff] }
 0x377   :  { %v4207_v59 = vpop.eup %4206  ;;  %v2874_v44 = vadd.f32 %v2873_v27, %v2872_v35  ;;  %v6134_v5 = vadd.f32 %v2784_v23, %v2533_v15  ;;  %v2062_v4 = vadd.f32 1.0, %v4205_v57  ;;  %4226 = vpow2.f32 %v3328_v7 }
 0x378   :  { %v4209_v36 = vpop.eup %4208  ;;  %v2900_v29 = vadd.f32 %v2899_v40, %v2898_v43  ;;  %4228 = vrcp.f32 %v2093_v28  ;;  %v2102_v13 = vadd.f32 1.0, %v4207_v59  ;;  %v6142_v52 = vadd.f32 %v6463_v3, %v5963_v53  ;;  %v6465_v40 = vld [vmem:[#allocation51_spill] sm:$0xff] }
 0x379   :  { %v4211_v39 = vpop.eup %4210  ;;  %v3006_v32 = vcombine.low %v2861_v30, %v2874_v44  ;;  %4230 = vrcp.f32 %v2062_v4  ;;  %v2063_v60 = vadd.f32 1.0, %v4209_v36  ;;  %v6150_v27 = vadd.f32 %v6464_v25, %v5959_v26  ;;  %v6466_v4 = vld [vmem:[#allocation77_spill] sm:$0xff] }
 0x37a   :  { %v4213_v41 = vpop.eup %4212  ;;  %v3007_v45 = vcombine.low %v2887_v56, %v2900_v29  ;;  %4232 = vrcp.f32 %v2102_v13  ;;  %v2103_v46 = vadd.f32 1.0, %v4211_v39  ;;  %v3338_v43 = vmul.f32 -1.442695, %v6142_v52  ;;  %v6467_v29 = vld [vmem:[#allocation40_spill] sm:$0xff] }
 0x37b   :  { %v4215_v10 = vpop.eup %4214  ;;  %v3014_v16 = vrot.slane %v3006_v32, %v5058_v33  ;;  %4234 = vrcp.f32 %v2063_v60  ;;  %v2112_v18 = vadd.f32 1.0, %v4213_v41  ;;  %v6154_v28 = vadd.f32 %v6465_v40, %v5963_v53  ;;  %v6468_v60 = vld [vmem:[#allocation41_spill] sm:$0xff] }
 0x37c   :  { %v4217_v7 = vpop.eup %4216  ;;  %v3021_v35 = vrot.slane %v3007_v45, %v5058_v33  ;;  %4236 = vrcp.f32 %v2103_v46  ;;  %v2113_v23 = vadd.f32 1.0, %v4215_v10  ;;  %v6158_v36 = vadd.f32 %v6466_v4, %v5959_v26  ;;  %v6469_v10 = vld [vmem:[#allocation42_spill] sm:$0xff] }
 0x37d   :  { %v4219_v61 = vpop.eup %4218  ;;  %4238 = vrcp.f32 %v2112_v18  ;;  %v2122_v30 = vadd.f32 1.0, %v4217_v7  ;;  %v6162_v13 = vadd.f32 %v6467_v29, %v5963_v53  ;;  %v6166_v3 = vadd.f32 %v6468_v60, %v5959_v26 }
 0x37e   :  { %v4221_v15 = vpop.eup %4220  ;;  %v3022_v57 = vcombine.low %v3014_v16, %v3021_v35  ;;  %4240 = vrcp.f32 %v2113_v23  ;;  %v2123_v56 = vadd.f32 1.0, %v4219_v61  ;;  %v3347_v46 = vmul.f32 -1.442695, %v6150_v27 }
 0x37f   :  { %v4223_v59 = vpop.eup %4222  ;;  %4242 = vrcp.f32 %v2122_v30  ;;  %v2132_v44 = vadd.f32 1.0, %v4221_v15  ;;  %v6171_v16 = vadd.f32 %v6469_v10, %v5963_v53  ;;  %v3348_v26 = vmul.f32 -1.442695, %v6154_v28 }
 0x380   :  { %v4225_v0 = vpop.eup %4224  ;;  %v3046_v39 = vrot.slane %v3022_v57, 7  ;;  %4244 = vrcp.f32 %v2123_v56  ;;  %v2133_v32 = vadd.f32 1.0, %v4223_v59  ;;  %v3357_v30 = vmul.f32 -1.442695, %v6158_v36 }
 0x381   :  { %v4227_v41 = vpop.eup %4226  ;;  %4246 = vrcp.f32 %v2132_v44  ;;  %v2142_v45 = vadd.f32 1.0, %v4225_v0  ;;  %v3358_v25 = vmul.f32 -1.442695, %v6162_v13  ;;  %v3367_v21 = vmul.f32 -1.442695, %v6166_v3 }
 0x382   :  { %v4229_v18 = vpop.eup %4228  ;;  %v3047_v7 = vsel %vm3036_vm0, %v3046_v39, %v2980_v2  ;;  %4248 = vrcp.f32 %v2133_v32  ;;  %v2143_v35 = vadd.f32 1.0, %v4227_v41  ;;  %v2552_v56 = vmul.f32 %v6104_v49, %v5976_v63 }
 0x383   :  { %v4231_v23 = vpop.eup %4230  ;;  %v3048_v61 = vsel %vm3038_vm1, %v3046_v39, %v3047_v7  ;;  %4250 = vrcp.f32 %v2142_v45  ;;  %v3368_v40 = vmul.f32 -1.442695, %v6171_v16  ;;  %v2562_v0 = vmul.f32 %v6119_v8, %v5994_v47 }
 0x384   :  { %v4233_v53 = vpop.eup %4232  ;;  %v3049_v15 = vsel %vm3040_vm2, %v3046_v39, %v3048_v61  ;;  %v2542_v57 = vmul.f32 %v4231_v23, %v6053_v19  ;;  %4252 = vrcp.f32 %v2143_v35  ;;  %v2553_v19 = vmul.f32 %v6111_v20, %v5984_v1 }
 0x385   :  { %v4235_v50 = vpop.eup %4234  ;;  %v3050_v2 = vsel %vm3042_vm3, %v3046_v39, %v3049_v15  ;;  %4254 = vpow2.f32 %v3337_v62  ;;  %v2563_v39 = vmul.f32 %v6124_v42, %v6008_v34  ;;  %v2572_v49 = vmul.f32 %v6128_v55, %v6026_v37 }
 0x386   :  { %v4237_v59 = vpop.eup %4236  ;;  %v2773_v44 = vadd.f32 %v6131_v9, %v2542_v57  ;;  %v2543_v4 = vmul.f32 %v4235_v50, %v6061_v54  ;;  %4256 = vpow2.f32 %v3338_v43  ;;  %v2573_v43 = vmul.f32 %v4229_v18, %v6049_v58 }
 0x387   :  { %v4239_v29 = vpop.eup %4238  ;;  %4258 = vpow2.f32 %v3347_v46  ;;  %v3074_v20 = vmul.f32 0.015625, %v3050_v2  ;;  %v2582_v37 = vmul.f32 %v4233_v53, %v6057_v51  ;;  %v2583_v10 = vmul.f32 %v4237_v59, %v6066_v22 }
 0x388   :  { %v4241_v63 = vpop.eup %4240  ;;  %v2774_v62 = vadd.f32 %v2773_v44, %v2552_v56  ;;  %v2786_v9 = vadd.f32 %v6134_v5, %v2543_v4  ;;  %4260 = vpow2.f32 %v3348_v26  ;;  %v2592_v1 = vmul.f32 %v4239_v29, %v6072_v48 }
 0x389   :  { %v4243_v54 = vpop.eup %4242  ;;  %4262 = vpow2.f32 %v3357_v30  ;;  %v2593_v55 = vmul.f32 %v4241_v63, %v6078_v17  ;;  %3077 = vst [vmem:[#allocation12 + $0x8] sm:$0xff] %v3074_v20 }
 0x38a   :  { %v4245_v47 = vpop.eup %4244  ;;  %v2775_v8 = vadd.f32 %v2774_v62, %v2562_v0  ;;  %v2787_v32 = vadd.f32 %v2786_v9, %v2553_v19  ;;  %v2602_v34 = vmul.f32 %v4243_v54, %v6082_v31  ;;  %4264 = vpow2.f32 %v3358_v25 }
 0x38b   :  { %v4247_v42 = vpop.eup %4246  ;;  %v2603_v5 = vmul.f32 %v4245_v47, %v6087_v14  ;;  %4266 = vpow2.f32 %v3367_v21 }
 0x38c   :  { %v4249_v58 = vpop.eup %4248  ;;  %v2776_v60 = vadd.f32 %v2775_v8, %v2572_v49  ;;  %v2788_v48 = vadd.f32 %v2787_v32, %v2563_v39  ;;  %v2901_v41 = vadd.f32 %v2602_v34, %v2592_v1  ;;  %v2612_v45 = vmul.f32 %v4247_v42, %v6091_v12 }
 0x38d   :  { %v4251_v46 = vpop.eup %4250  ;;  %v2914_v31 = vadd.f32 %v2603_v5, %v2593_v55  ;;  %v2613_v18 = vmul.f32 %v4249_v58, %v6096_v6  ;;  %4268 = vpow2.f32 %v3368_v40 }
 0x38e   :  { %v4253_v51 = vpop.eup %4252  ;;  %v2777_v7 = vadd.f32 %v2776_v60, %v2582_v37  ;;  %v2789_v17 = vadd.f32 %v2788_v48, %v2573_v43  ;;  %v2902_v35 = vadd.f32 %v2901_v41, %v2612_v45  ;;  %v2622_v14 = vmul.f32 %v4251_v46, %v6100_v11 }
 0x38f   :  { %v4255_v26 = vpop.eup %4254  ;;  %v2915_v23 = vadd.f32 %v2914_v31, %v2613_v18  ;;  %v2623_v61 = vmul.f32 %v4253_v51, %v6117_v24 }
 0x390   :  { %v4257_v30 = vpop.eup %4256  ;;  %v2778_v25 = vrot.slane %v2777_v7, 4  ;;  %v2790_v12 = vadd.f32 %v2789_v17, %v2583_v10  ;;  %v2903_v53 = vadd.f32 %v2902_v35, %v2622_v14  ;;  %v2152_v15 = vadd.f32 1.0, %v4255_v26 }
 0x391   :  { %v4259_v22 = vpop.eup %4258  ;;  %v2916_v57 = vadd.f32 %v2915_v23, %v2623_v61  ;;  %v2153_v21 = vadd.f32 1.0, %v4257_v30 }
 0x392   :  { %v4261_v6 = vpop.eup %4260  ;;  %v2779_v50 = vadd.f32 %v2778_v25, %v2777_v7  ;;  %v2791_v2 = vrot.slane %v2790_v12, 4  ;;  %4270 = vrcp.f32 %v2152_v15  ;;  %v2162_v56 = vadd.f32 1.0, %v4259_v22 }
 0x393   :  { %v4263_v40 = vpop.eup %4262  ;;  %4272 = vrcp.f32 %v2153_v21  ;;  %v2163_v11 = vadd.f32 1.0, %v4261_v6 }
 0x394   :  { %v4265_v59 = vpop.eup %4264  ;;  %v2780_v44 = vrot.slane %v2779_v50, 2  ;;  %v2792_v4 = vadd.f32 %v2791_v2, %v2790_v12  ;;  %4274 = vrcp.f32 %v2162_v56  ;;  %v2172_v24 = vadd.f32 1.0, %v4263_v40 }
 0x395   :  { %v4267_v29 = vpop.eup %4266  ;;  %4276 = vrcp.f32 %v2163_v11  ;;  %v2173_v19 = vadd.f32 1.0, %v4265_v59 }
 0x396   :  { %v2781_v0 = vadd.f32 %v2780_v44, %v2779_v50  ;;  %v2793_v39 = vrot.slane %v2792_v4, 2  ;;  %4278 = vrcp.f32 %v2172_v24  ;;  %v2182_v63 = vadd.f32 1.0, %v4267_v29  ;;  %v2666_v50 = vld [vmem:[#allocation2 + $0x10] sm:$0xf] }
 0x397   :  { %v4269_v49 = vpop.eup %4268  ;;  %4280 = vrcp.f32 %v2173_v19 }
 0x398   :  { %v2782_v62 = vrot.slane %v2781_v0, 1  ;;  %v2794_v9 = vadd.f32 %v2793_v39, %v2792_v4  ;;  %4282 = vrcp.f32 %v2182_v63  ;;  %v2183_v54 = vadd.f32 1.0, %v4269_v49 }
 0x39a   :  { %v2783_v43 = vadd.f32 %v2782_v62, %v2781_v0  ;;  %v2795_v1 = vrot.slane %v2794_v9, 1  ;;  %4284 = vrcp.f32 %v2183_v54 }
 0x39c   :  { %v4271_v20 = vpop.eup %4270  ;;  %v2796_v47 = vadd.f32 %v2795_v1, %v2794_v9 }
 0x39d   :  { %v4273_v8 = vpop.eup %4272  ;;  %v2632_v32 = vmul.f32 %v4271_v20, %v6138_v38 }
 0x39e   :  { %v4275_v34 = vpop.eup %4274  ;;  %v2981_v42 = vcombine.low %v2783_v43, %v2796_v47  ;;  %v2633_v37 = vmul.f32 %v4273_v8, %v6142_v52 }
 0x39f   :  { %v4277_v55 = vpop.eup %4276  ;;  %v2904_v5 = vadd.f32 %v2903_v53, %v2632_v32  ;;  %v2642_v58 = vmul.f32 %v4275_v34, %v6150_v27 }
 0x3a0   :  { %v4279_v60 = vpop.eup %4278  ;;  %v2917_v48 = vadd.f32 %v2916_v57, %v2633_v37  ;;  %v2643_v41 = vmul.f32 %v4277_v55, %v6154_v28  ;;  %v2988_v21 = vrot.slane %v2981_v42, %v5058_v33 }
 0x3a1   :  { %v4281_v45 = vpop.eup %4280  ;;  %v2905_v46 = vadd.f32 %v2904_v5, %v2642_v58  ;;  %v2652_v10 = vmul.f32 %v4279_v60, %v6158_v36 }
 0x3a2   :  { %v4283_v31 = vpop.eup %4282  ;;  %v2918_v18 = vadd.f32 %v2917_v48, %v2643_v41  ;;  %v2653_v38 = vmul.f32 %v4281_v45, %v6162_v13 }
 0x3a3   :  { %v2906_v51 = vadd.f32 %v2905_v46, %v2652_v10  ;;  %v2662_v7 = vmul.f32 %v4283_v31, %v6166_v3 }
 0x3a4   :  { %v4285_v52 = vpop.eup %4284  ;;  %v2919_v17 = vadd.f32 %v2918_v18, %v2653_v38 }
 0x3a5   :  { %v2907_v35 = vadd.f32 %v2906_v51, %v2662_v7  ;;  %v2663_v27 = vmul.f32 %v4285_v52, %v6171_v16 }
 0x3a7   :  { %v2908_v14 = vrot.slane %v2907_v35, 4  ;;  %v2920_v26 = vadd.f32 %v2919_v17, %v2663_v27 }
 0x3a9   :  { %v2909_v23 = vadd.f32 %v2908_v14, %v2907_v35  ;;  %v2921_v28 = vrot.slane %v2920_v26, 4 }
 0x3ab   :  { %v2910_v61 = vrot.slane %v2909_v23, 2  ;;  %v2922_v30 = vadd.f32 %v2921_v28, %v2920_v26 }
 0x3ad   :  { %v2911_v25 = vadd.f32 %v2910_v61, %v2909_v23  ;;  %v2923_v36 = vrot.slane %v2922_v30, 2 }
 0x3af   :  { %v2912_v12 = vrot.slane %v2911_v25, 1  ;;  %v2924_v53 = vadd.f32 %v2923_v36, %v2922_v30 }
 0x3b1   :  { %v2913_v15 = vadd.f32 %v2912_v12, %v2911_v25  ;;  %v2925_v13 = vrot.slane %v2924_v53, 1 }
 0x3b3   :  { %v2926_v22 = vadd.f32 %v2925_v13, %v2924_v53 }
 0x3b5   :  { %v3023_v57 = vcombine.low %v2913_v15, %v2926_v22 }
 0x3b7   :  { %v3030_v3 = vrot.slane %v3023_v57, %v5058_v33 }
 0x3b9   :  { %v3053_v6 = vrot.slane %v3030_v3, 7 }
 0x3bb   :  { %v3054_v16 = vsel %vm3036_vm0, %v3053_v6, %v2988_v21 }
 0x3bc   :  { %v3055_v2 = vsel %vm3038_vm1, %v3053_v6, %v3054_v16 }
 0x3bd   :  { %v3056_v56 = vsel %vm3040_vm2, %v3053_v6, %v3055_v2 }
 0x3be   :  { %v3057_v40 = vsel %vm3042_vm3, %v3053_v6, %v3056_v56 }
 0x3bf   :  { %v3063_v11 = vadd.f32 %v3057_v40, %v2666_v50 }
 0x3c1   :  { %3066 = vst [vmem:[#allocation2 + $0x10] sm:$0xf] %v3063_v11 }
 0x3c8   :  { %v3072_v59 = vld [vmem:[#allocation2 + $0x10] sm:$0xf] }
 0x3c9   :  { %v3075_v44 = vmul.f32 0.015625, %v3072_v59 }
 0x3cb   :  { %3078 = vst [vmem:[#allocation12 + $0x10] sm:$0xf] %v3075_v44 }
 0x3cc   :  { %4408 = shalt.err (!%p4405_p2)
}
 0x3cd   :  { %s4409_s21 = scalar_lea.hbm %s6241_s5, 320 }
 0x3ce   :  { %p4410_p3 = scmp.ne.s32.totalorder %s6241_s5, %s4409_s21  ;;  %p4413_p4 = scmp.lt.u32.totalorder %s4409_s21, %s6241_s5 }
 0x3d0   :  { %p4415_p5 = pnand %p4413_p4, %p4410_p3 }
 0x3d2   :  { %4418 = shalt.err (!%p4415_p5)
}
 0x3d3   :  { %3088 = dma.vmem_to_hbm [thread:$0]  %s3086_s29, 320, %s6241_s5, [#allocation5]  }
 0x3d4   :  { %4425 = dma.done.wait [#allocation5], 320  }
 0x3d5   :  { %4426 = vsyncadd [#allocation5], 4294966976 }
 0x3d6   :  { %3092 = vsyncpa [#allocation4], 1 }
 0x3d7   :  { %3093 = vsyncpa [#allocation7], 1 }
 0x3d8   :  { %3094 = vsyncpa [#allocation10], 1 }
 0x3d9   :  { %3095 = vsyncpa [#allocation5], 1 }

</bundles_post_ra>
